<compile_context>
chip_gen: v6e
topology: v6e:2x2x1
jax: 0.10.0
libtpu: 0.0.40
codegen_flags: <defaults>
</compile_context>

<pallas_src>
import functools

import jax
import jax.numpy as jnp
from jax.experimental import pallas as pl
from jax.experimental.pallas import tpu as pltpu

_HALO = 128          # in-kernel tap column offsets must stay below this
_TILE_M = 4096       # default lane-tile size (amortizes per-grid-step overhead)


# ---------------------------------------------------------------------------
# helpers
# ---------------------------------------------------------------------------
def _round_up(x, m):
    return ((x + m - 1) // m) * m


def _tiling(m, tile_m=_TILE_M):
    """Pick the M (lane) tile: as large as possible, but with >=2 grid steps
    when m allows it so the "parallel" axis shards across TensorCores."""
    m128 = _round_up(max(m, 1), 128)
    tile = min(tile_m, m128)
    if m128 >= 256 and m128 // tile < 2:
        tile = _round_up(m128 // 2, 128)
    m_pad = _round_up(m, tile)
    return tile, m_pad


def _cparams(est_bytes):
    limit = int(min(max(4 * int(est_bytes) + (1 << 20), 16 << 20), 48 << 20))
    return pltpu.CompilerParams(dimension_semantics=("parallel",),
                                vmem_limit_bytes=limit)


# ---------------------------------------------------------------------------
# Pallas kernels
# ---------------------------------------------------------------------------
def _tap_gemm_kernel(w_ref, b_ref, *rest, taps, tile_m, act):
    """Fused im2col + GEMM:  o = act(sum_t W[:, cols_t] @ X_src[rows_t, m+off_t] + b).

    Each input ref holds a whole flattened activation (VMEM-resident, constant
    index_map).  `taps` is a static tuple of
        (source_idx, row_start, n_rows, col_offset, weight_col_start)
    descriptors; col_offset < _HALO, so every tap is an aligned dynamic lane
    load of (rows, tile+HALO) followed by a static sub-slice.
    """
    x_refs, o_ref = rest[:-1], rest[-1]
    col0 = pl.multiple_of(pl.program_id(0) * tile_m, 128)
    acc = jnp.zeros(o_ref.shape, jnp.float32)
    for (src, r0, k, coff, w0) in taps:
        slab = x_refs[src][pl.ds(r0, k), pl.ds(col0, tile_m + _HALO)]
        a = slab[:, coff:coff + tile_m]
        acc = acc + jnp.dot(w_ref[:, w0:w0 + k], a,
                            preferred_element_type=jnp.float32)
    acc = acc + b_ref[...]
    if act == "relu":
        acc = jnp.maximum(acc, 0.0)
    o_ref[...] = acc.astype(o_ref.dtype)


def _q_attention_kernel(wg_ref, wx_ref, wc_ref, g_ref, x_ref, o_ref):
    """Fused Q_Attention on (C, M) layout; g and x are separate refs (no concat).

    net = relu(Wg@g + Wx@x); q = Wc@net; gate = sigmoid(|q|); out = gate * x.
    """
    x = x_ref[...]
    net = jnp.dot(wg_ref[...], g_ref[...], preferred_element_type=jnp.float32)
    net = net + jnp.dot(wx_ref[...], x, preferred_element_type=jnp.float32)
    net = jnp.maximum(net, 0.0).astype(jnp.bfloat16)          # bf16 before 2nd MXU dot
    q = jnp.dot(wc_ref[...], net, preferred_element_type=jnp.float32)    # (4, T)
    mod = jnp.sqrt(jnp.sum(q * q, axis=0, keepdims=True))                # (1, T)
    gate = pl.reciprocal(1.0 + jnp.exp(-mod), approx=True)               # EUP sigmoid
    o_ref[...] = (gate * x.astype(jnp.float32)).astype(o_ref.dtype)


# ---------------------------------------------------------------------------
# Pallas wrappers
# ---------------------------------------------------------------------------
def _tap_gemm(w, b, xs, taps, m_valid, *, act, out_dtype, tile_m=_TILE_M):
    """o[:, :m_valid] = act(sum_t w[:, cols_t] @ xs[src_t][rows_t, m+off_t] + b)."""
    c_out = w.shape[0]
    assert max(t[3] for t in taps) < _HALO
    tile, m_pad = _tiling(m_valid, tile_m)
    cols = m_pad + _HALO
    xs_p = [jnp.pad(x.astype(jnp.bfloat16), ((0, 0), (0, cols - x.shape[1])))
            for x in xs]

    k_total = sum(t[2] for t in taps)
    out_isize = jnp.dtype(out_dtype).itemsize
    est = (w.size * 2 + b.size * 4 + sum(x.size * 2 for x in xs_p)
           + 2 * c_out * tile * (4 + out_isize))
    cost = pl.CostEstimate(
        flops=2 * c_out * k_total * m_pad,
        transcendentals=0,
        bytes_accessed=int(w.size * 2 + sum(x.size * 2 for x in xs_p)
                           + c_out * m_pad * out_isize),
    )
    in_specs = ([pl.BlockSpec(tuple(w.shape), lambda i: (0, 0)),
                 pl.BlockSpec(tuple(b.shape), lambda i: (0, 0))]
                + [pl.BlockSpec(tuple(x.shape), lambda i: (0, 0)) for x in xs_p])
    out = pl.pallas_call(
        functools.partial(_tap_gemm_kernel, taps=tuple(taps), tile_m=tile, act=act),
        out_shape=jax.ShapeDtypeStruct((c_out, m_pad), out_dtype),
        grid=(m_pad // tile,),
        in_specs=in_specs,
        out_specs=pl.BlockSpec((c_out, tile), lambda i: (0, i)),
        compiler_params=_cparams(est),
        cost_estimate=cost,
    )(w, b, *xs_p)
    return out[:, :m_valid]


def qconv3x3_s2p1(x_cm, w_mat, b_col, *, act, out_dtype, tile_m=_TILE_M):
    """Quaternion conv k=3, s=2, p=1 on channel-major input.

    x_cm: (C_in, N, H, W); w_mat: (C_out, 9*C_in), columns ordered
    (tap = dh*3 + dw, ci).  The padded input is space-to-depth split into its 4
    stride phases so every tap is a contiguous column offset of the flattened
    plane-major buffer; patch extraction is fused into the kernel.
    Returns (C_out, N, H//2, W//2) in `out_dtype`.
    """
    c_in, n, h, wd = x_cm.shape
    assert h % 2 == 0 and wd % 2 == 0
    ho, wo = h // 2, wd // 2
    h2, w2 = ho + 1, wo + 1                      # phase-plane dims of padded input
    xp = jnp.pad(x_cm, ((0, 0), (0, 0), (1, 1), (1, 1)))
    planes = [xp[:, :, ph::2, pw::2] for ph in (0, 1) for pw in (0, 1)]
    xin = jnp.stack(planes, axis=0).reshape(4 * c_in, n * h2 * w2)
    taps = []
    for dh in range(3):
        for dw in range(3):
            plane = (dh % 2) * 2 + (dw % 2)
            coff = (dh // 2) * w2 + (dw // 2)
            taps.append((0, plane * c_in, c_in, coff, (dh * 3 + dw) * c_in))
    out = _tap_gemm(w_mat, b_col, [xin], taps, n * h2 * w2,
                    act=act, out_dtype=out_dtype, tile_m=tile_m)
    c_out = w_mat.shape[0]
    return out.reshape(c_out, n, h2, w2)[:, :, :ho, :wo]


def qtconv3x3_s2p1op1(xs_cm, w_mat, b_col, c_out, *, act, out_dtype, tile_m=_TILE_M):
    """Quaternion transpose conv k=3, s=2, p=1, output_padding=1, channel-major.

    All 4 output phases merged into ONE GEMM (weights stacked along C_out, union
    2x2 taps along K); tap extraction fused in-kernel; output assembled with a
    single pixel-shuffle (no strided scatters).  Multiple sources (d6's
    quaternion-component concat) are separate refs with pre-split weight cols.
    xs_cm: list of (C_s, N, H, W); returns (C_out, N, 2H, 2W).
    """
    n, h, wd = xs_cm[0].shape[1:]
    hp, wp = h + 1, wd + 1
    xs_flat = [jnp.pad(x, ((0, 0), (0, 0), (0, 1), (0, 1))).reshape(x.shape[0], n * hp * wp)
               for x in xs_cm]
    taps, wcol = [], 0
    for oh in (0, 1):
        for ow in (0, 1):
            for s, x in enumerate(xs_cm):
                cs = x.shape[0]
                taps.append((s, 0, cs, oh * wp + ow, wcol))
                wcol += cs
    out = _tap_gemm(w_mat, b_col, xs_flat, taps, n * hp * wp,
                    act=act, out_dtype=out_dtype, tile_m=tile_m)
    out = out.reshape(2, 2, c_out, n, hp, wp)[:, :, :, :, :h, :wd]
    return out.transpose(2, 3, 4, 0, 5, 1).reshape(c_out, n, 2 * h, 2 * wd)


def pallas_q_attention(g_cm, x_cm, wg, wx, wc, *, out_dtype=jnp.bfloat16,
                       tile_m=_TILE_M):
    """g_cm, x_cm: (32, N, H, W) bf16 channel-major; returns (32, N, H, W)."""
    c, n, h, wd = x_cm.shape
    m = n * h * wd
    tile, m_pad = _tiling(m, tile_m)
    g2 = jnp.pad(g_cm.reshape(c, m), ((0, 0), (0, m_pad - m)))
    x2 = jnp.pad(x_cm.reshape(c, m), ((0, 0), (0, m_pad - m)))
    est = (2 * c * c + 4 * c) * 2 + 4 * c * tile * 2 + 2 * c * tile * 4
    out = pl.pallas_call(
        _q_attention_kernel,
        out_shape=jax.ShapeDtypeStruct((c, m_pad), out_dtype),
        grid=(m_pad // tile,),
        in_specs=[
            pl.BlockSpec((c, c), lambda i: (0, 0)),
            pl.BlockSpec((c, c), lambda i: (0, 0)),
            pl.BlockSpec((4, c), lambda i: (0, 0)),
            pl.BlockSpec((c, tile), lambda i: (0, i)),
            pl.BlockSpec((c, tile), lambda i: (0, i)),
        ],
        out_specs=pl.BlockSpec((c, tile), lambda i: (0, i)),
        compiler_params=_cparams(est),
        cost_estimate=pl.CostEstimate(
            flops=2 * (2 * c) * c * m_pad + 2 * 4 * c * m_pad + 8 * m_pad,
            transcendentals=2 * m_pad,
            bytes_accessed=2 * 2 * c * m_pad + 2 * (2 * c * c + 4 * c)
                           + c * m_pad * jnp.dtype(out_dtype).itemsize),
    )(wg, wx, wc, g2, x2)
    return out[:, :m].reshape(c, n, h, wd)


# ---------------------------------------------------------------------------
# Quaternion weight assembly (one-time, hoisted out of the forward path)
# ---------------------------------------------------------------------------
def quat_hamilton_cat(r, i, j, k):
    """Hamilton-product block weight, identical to quaternion_conv's torch.cat."""
    row_r = jnp.concatenate([r, -i, -j, -k], axis=1)
    row_i = jnp.concatenate([i,  r, -k,  j], axis=1)
    row_j = jnp.concatenate([j,  k,  r, -i], axis=1)
    row_k = jnp.concatenate([k, -j,  i,  r], axis=1)
    return jnp.concatenate([row_r, row_i, row_j, row_k], axis=0)


def build_tconv_weight(Wt):
    """Merged 4-phase weight for a k=3/s=2/p=1/op=1 transpose conv.

    Wt: (C_in, C_out, 3, 3).  Returns (4*C_out, 4*C_in):
    rows  = (phase py*2+px, co), cols = (tap oh*2+ow, ci);
    entry = Wt[ci, co, dh(py,oh), dw(px,ow)] (zero for the unused tap).
    """
    c_in, c_out = Wt.shape[0], Wt.shape[1]
    dmap = {(0, 0): 1, (1, 0): 2, (1, 1): 0}
    rows = []
    for py in (0, 1):
        for px in (0, 1):
            cols = []
            for oh in (0, 1):
                for ow in (0, 1):
                    if (py, oh) in dmap and (px, ow) in dmap:
                        blk = Wt[:, :, dmap[(py, oh)], dmap[(px, ow)]].T
                    else:
                        blk = jnp.zeros((c_out, c_in), Wt.dtype)
                    cols.append(blk)
            rows.append(jnp.concatenate(cols, axis=1))
    return jnp.concatenate(rows, axis=0)


def init_params(key):
    keys = iter(jax.random.split(key, 64))

    def w(shape, scale=0.1):
        return scale * jax.random.normal(next(keys), shape, jnp.float32)

    p = {}
    # e1: QuaternionConv(4, 32, k=3, s=2, p=1)  -> comps (8, 1, 3, 3)
    p["e1_W"] = quat_hamilton_cat(*[w((8, 1, 3, 3)) for _ in range(4)])
    p["e1_b"] = w((32,))
    # e2: QuaternionConv(32, 40, k=3, s=2, p=1) -> comps (10, 8, 3, 3)
    p["e2_W"] = quat_hamilton_cat(*[w((10, 8, 3, 3)) for _ in range(4)])
    p["e2_b"] = w((40,))
    # attention: convg/convx QuaternionConv(32,32,k=1,bias=False) -> comps (8,8,1,1)
    p["attg_W"] = quat_hamilton_cat(*[w((8, 8, 1, 1)) for _ in range(4)])
    p["attx_W"] = quat_hamilton_cat(*[w((8, 8, 1, 1)) for _ in range(4)])
    # attention: conv QuaternionConv(32,4,k=1,bias=False) -> comps (1,8,1,1)
    p["attc_W"] = quat_hamilton_cat(*[w((1, 8, 1, 1)) for _ in range(4)])
    # d5: QuaternionTransposeConv(40, 32, k=3, s=2, p=1, op=1) -> comps (10, 8, 3, 3)
    p["d5_W"] = quat_hamilton_cat(*[w((10, 8, 3, 3)) for _ in range(4)])
    p["d5_b"] = w((32,))
    # d6: QuaternionTransposeConv(64, 4, k=3, s=2, p=1, op=1) -> comps (16, 1, 3, 3)
    p["d6_W"] = quat_hamilton_cat(*[w((16, 1, 3, 3)) for _ in range(4)])
    p["d6_b"] = w((4,))
    return p


def prepare_params(p):
    """One-time kernel-ready weight prep (reorder, merge phases, cast, bias col)."""
    def conv_w(W):                       # (C_out, C_in, 3, 3) -> (C_out, 9*C_in)
        co, ci = W.shape[0], W.shape[1]  # cols ordered (tap = dh*3+dw, ci)
        return W.transpose(0, 2, 3, 1).reshape(co, 9 * ci).astype(jnp.bfloat16)

    def bias_col(b):
        return jnp.asarray(b, jnp.float32).reshape(-1, 1)

    # d6 consumes cat([att_r,d5_r,att_i,d5_i,att_j,d5_j,att_k,d5_k]); fold that
    # channel interleave into the weight columns so the concat never happens.
    att_src = [(a // 8) * 16 + (a % 8) for a in range(32)]
    d5_src = [(a // 8) * 16 + 8 + (a % 8) for a in range(32)]
    d6_perm = jnp.array(att_src + d5_src, jnp.int32)

    return {
        "e1_wm": conv_w(p["e1_W"]), "e1_b": bias_col(p["e1_b"]),
        "e2_wm": conv_w(p["e2_W"]), "e2_b": bias_col(p["e2_b"]),
        "att_wg": p["attg_W"][:, :, 0, 0].astype(jnp.bfloat16),
        "att_wx": p["attx_W"][:, :, 0, 0].astype(jnp.bfloat16),
        "att_wc": p["attc_W"][:, :, 0, 0].astype(jnp.bfloat16),
        "d5_wm": build_tconv_weight(p["d5_W"]).astype(jnp.bfloat16),
        "d5_b": bias_col(jnp.tile(p["d5_b"], 4)),
        "d6_wm": build_tconv_weight(p["d6_W"][d6_perm]).astype(jnp.bfloat16),
        "d6_b": bias_col(jnp.tile(p["d6_b"], 4)),
    }


# ---------------------------------------------------------------------------
# QA_QCAE forward
# ---------------------------------------------------------------------------
def qa_qcae_forward(prep, x):
    # x: (N, 4, H, W) f32 -> channel-major bf16 once; channel-major thereafter.
    x_cm = x.transpose(1, 0, 2, 3).astype(jnp.bfloat16)
    e1 = qconv3x3_s2p1(x_cm, prep["e1_wm"], prep["e1_b"],
                       act="relu", out_dtype=jnp.bfloat16)
    e2 = qconv3x3_s2p1(e1, prep["e2_wm"], prep["e2_b"],
                       act="relu", out_dtype=jnp.bfloat16)
    d5 = qtconv3x3_s2p1op1([e2], prep["d5_wm"], prep["d5_b"], c_out=32,
                           act="relu", out_dtype=jnp.bfloat16)
    att = pallas_q_attention(e1, d5, prep["att_wg"], prep["att_wx"],
                             prep["att_wc"], out_dtype=jnp.bfloat16)
    # d6 takes (att, d5) as two refs; the quaternion-component concat is folded
    # into the weight column permutation.  output_act = ReLU fused in-kernel.
    d6 = qtconv3x3_s2p1op1([att, d5], prep["d6_wm"], prep["d6_b"], c_out=4,
                           act="relu", out_dtype=jnp.float32)
    return d6.transpose(1, 0, 2, 3)      # back to (N, 4, H, W) f32


if __name__ == "__main__":
    key = jax.random.PRNGKey(0)
    kp, kx = jax.random.split(key)
    params = init_params(kp)
    prep = prepare_params(params)
    x = jax.random.normal(kx, (2, 4, 16, 16), jnp.float32)

    out = jax.block_until_ready(jax.jit(qa_qcae_forward)(prep, x))
    assert out.shape == (2, 4, 16, 16), out.shape
    assert bool(jnp.all(jnp.isfinite(out)))
    print("KERNEL_OK")
</pallas_src>

<mosaic_0001>
module attributes {stable_mosaic.version = 11 : i64} {
  func.func @_tap_gemm_kernel(%arg0: i32, %arg1: memref<32x36xbf16, #tpu.memory_space<vmem>>, %arg2: memref<32x1xf32, #tpu.memory_space<vmem>>, %arg3: memref<16x384xbf16, #tpu.memory_space<vmem>>, %arg4: memref<32x128xbf16, #tpu.memory_space<vmem>>) attributes {dimension_semantics = [#tpu.dimension_semantics<parallel>], iteration_bounds = array<i64: 2>, scalar_prefetch = 0 : i64, scratch_operands = 0 : i64, tpu.core_type = #tpu.core_type<tc>, window_params = [{pipeline_mode = #tpu.pipeline_mode<synchronous>, transform_indices = @transform_0, window_bounds = array<i64: 32, 36>}, {pipeline_mode = #tpu.pipeline_mode<synchronous>, transform_indices = @transform_1, window_bounds = array<i64: 32, 1>}, {pipeline_mode = #tpu.pipeline_mode<synchronous>, transform_indices = @transform_2, window_bounds = array<i64: 16, 384>}, {transform_indices = @transform_3, window_bounds = array<i64: 32, 128>}]} {
    %c128_i32 = arith.constant 128 : i32
    %0 = arith.muli %arg0, %c128_i32 : i32
    %1 = tpu.assume_multiple %0, 128 : i32
    %cst = arith.constant 0.000000e+00 : f32
    %2 = vector.broadcast %cst : f32 to vector<32x128xf32>
    %c0 = arith.constant 0 : index
    %3 = arith.index_cast %1 : i32 to index
    %4 = vector.load %arg3[%c0, %3] : memref<16x384xbf16, #tpu.memory_space<vmem>>, vector<4x256xbf16>
    %5 = vector.extract_strided_slice %4 {offsets = [0, 0], sizes = [4, 128], strides = [1, 1]} : vector<4x256xbf16> to vector<4x128xbf16>
    %c0_0 = arith.constant 0 : index
    %c0_1 = arith.constant 0 : index
    %6 = vector.load %arg1[%c0_0, %c0_1] : memref<32x36xbf16, #tpu.memory_space<vmem>>, vector<32x4xbf16>
    %cst_2 = arith.constant dense<0.000000e+00> : vector<32x128xf32>
    %7 = tpu.matmul %6, %5, %cst_2 {dimension_numbers = #tpu.dot_dimension_numbers<[1], [0], [0], [1], [0, 0, 1, 1], [], []>} : vector<32x4xbf16>, vector<4x128xbf16>, vector<32x128xf32> -> vector<32x128xf32>
    %8 = arith.addf %2, %7 : vector<32x128xf32>
    %c4 = arith.constant 4 : index
    %9 = arith.index_cast %1 : i32 to index
    %10 = vector.load %arg3[%c4, %9] : memref<16x384xbf16, #tpu.memory_space<vmem>>, vector<4x256xbf16>
    %11 = vector.extract_strided_slice %10 {offsets = [0, 0], sizes = [4, 128], strides = [1, 1]} : vector<4x256xbf16> to vector<4x128xbf16>
    %c0_3 = arith.constant 0 : index
    %c4_4 = arith.constant 4 : index
    %12 = vector.load %arg1[%c0_3, %c4_4] : memref<32x36xbf16, #tpu.memory_space<vmem>>, vector<32x4xbf16>
    %cst_5 = arith.constant dense<0.000000e+00> : vector<32x128xf32>
    %13 = tpu.matmul %12, %11, %cst_5 {dimension_numbers = #tpu.dot_dimension_numbers<[1], [0], [0], [1], [0, 0, 1, 1], [], []>} : vector<32x4xbf16>, vector<4x128xbf16>, vector<32x128xf32> -> vector<32x128xf32>
    %14 = arith.addf %8, %13 : vector<32x128xf32>
    %c0_6 = arith.constant 0 : index
    %15 = arith.index_cast %1 : i32 to index
    %16 = vector.load %arg3[%c0_6, %15] : memref<16x384xbf16, #tpu.memory_space<vmem>>, vector<4x256xbf16>
    %17 = vector.extract_strided_slice %16 {offsets = [0, 1], sizes = [4, 128], strides = [1, 1]} : vector<4x256xbf16> to vector<4x128xbf16>
    %c0_7 = arith.constant 0 : index
    %c8 = arith.constant 8 : index
    %18 = vector.load %arg1[%c0_7, %c8] : memref<32x36xbf16, #tpu.memory_space<vmem>>, vector<32x4xbf16>
    %cst_8 = arith.constant dense<0.000000e+00> : vector<32x128xf32>
    %19 = tpu.matmul %18, %17, %cst_8 {dimension_numbers = #tpu.dot_dimension_numbers<[1], [0], [0], [1], [0, 0, 1, 1], [], []>} : vector<32x4xbf16>, vector<4x128xbf16>, vector<32x128xf32> -> vector<32x128xf32>
    %20 = arith.addf %14, %19 : vector<32x128xf32>
    %c8_9 = arith.constant 8 : index
    %21 = arith.index_cast %1 : i32 to index
    %22 = vector.load %arg3[%c8_9, %21] : memref<16x384xbf16, #tpu.memory_space<vmem>>, vector<4x256xbf16>
    %23 = vector.extract_strided_slice %22 {offsets = [0, 0], sizes = [4, 128], strides = [1, 1]} : vector<4x256xbf16> to vector<4x128xbf16>
    %c0_10 = arith.constant 0 : index
    %c12 = arith.constant 12 : index
    %24 = vector.load %arg1[%c0_10, %c12] : memref<32x36xbf16, #tpu.memory_space<vmem>>, vector<32x4xbf16>
    %cst_11 = arith.constant dense<0.000000e+00> : vector<32x128xf32>
    %25 = tpu.matmul %24, %23, %cst_11 {dimension_numbers = #tpu.dot_dimension_numbers<[1], [0], [0], [1], [0, 0, 1, 1], [], []>} : vector<32x4xbf16>, vector<4x128xbf16>, vector<32x128xf32> -> vector<32x128xf32>
    %26 = arith.addf %20, %25 : vector<32x128xf32>
    %c12_12 = arith.constant 12 : index
    %27 = arith.index_cast %1 : i32 to index
    %28 = vector.load %arg3[%c12_12, %27] : memref<16x384xbf16, #tpu.memory_space<vmem>>, vector<4x256xbf16>
    %29 = vector.extract_strided_slice %28 {offsets = [0, 0], sizes = [4, 128], strides = [1, 1]} : vector<4x256xbf16> to vector<4x128xbf16>
    %c0_13 = arith.constant 0 : index
    %c16 = arith.constant 16 : index
    %30 = vector.load %arg1[%c0_13, %c16] : memref<32x36xbf16, #tpu.memory_space<vmem>>, vector<32x4xbf16>
    %cst_14 = arith.constant dense<0.000000e+00> : vector<32x128xf32>
    %31 = tpu.matmul %30, %29, %cst_14 {dimension_numbers = #tpu.dot_dimension_numbers<[1], [0], [0], [1], [0, 0, 1, 1], [], []>} : vector<32x4xbf16>, vector<4x128xbf16>, vector<32x128xf32> -> vector<32x128xf32>
    %32 = arith.addf %26, %31 : vector<32x128xf32>
    %c8_15 = arith.constant 8 : index
    %33 = arith.index_cast %1 : i32 to index
    %34 = vector.load %arg3[%c8_15, %33] : memref<16x384xbf16, #tpu.memory_space<vmem>>, vector<4x256xbf16>
    %35 = vector.extract_strided_slice %34 {offsets = [0, 1], sizes = [4, 128], strides = [1, 1]} : vector<4x256xbf16> to vector<4x128xbf16>
    %c0_16 = arith.constant 0 : index
    %c20 = arith.constant 20 : index
    %36 = vector.load %arg1[%c0_16, %c20] : memref<32x36xbf16, #tpu.memory_space<vmem>>, vector<32x4xbf16>
    %cst_17 = arith.constant dense<0.000000e+00> : vector<32x128xf32>
    %37 = tpu.matmul %36, %35, %cst_17 {dimension_numbers = #tpu.dot_dimension_numbers<[1], [0], [0], [1], [0, 0, 1, 1], [], []>} : vector<32x4xbf16>, vector<4x128xbf16>, vector<32x128xf32> -> vector<32x128xf32>
    %38 = arith.addf %32, %37 : vector<32x128xf32>
    %c0_18 = arith.constant 0 : index
    %39 = arith.index_cast %1 : i32 to index
    %40 = vector.load %arg3[%c0_18, %39] : memref<16x384xbf16, #tpu.memory_space<vmem>>, vector<4x256xbf16>
    %41 = vector.extract_strided_slice %40 {offsets = [0, 9], sizes = [4, 128], strides = [1, 1]} : vector<4x256xbf16> to vector<4x128xbf16>
    %c0_19 = arith.constant 0 : index
    %c24 = arith.constant 24 : index
    %42 = vector.load %arg1[%c0_19, %c24] : memref<32x36xbf16, #tpu.memory_space<vmem>>, vector<32x4xbf16>
    %cst_20 = arith.constant dense<0.000000e+00> : vector<32x128xf32>
    %43 = tpu.matmul %42, %41, %cst_20 {dimension_numbers = #tpu.dot_dimension_numbers<[1], [0], [0], [1], [0, 0, 1, 1], [], []>} : vector<32x4xbf16>, vector<4x128xbf16>, vector<32x128xf32> -> vector<32x128xf32>
    %44 = arith.addf %38, %43 : vector<32x128xf32>
    %c4_21 = arith.constant 4 : index
    %45 = arith.index_cast %1 : i32 to index
    %46 = vector.load %arg3[%c4_21, %45] : memref<16x384xbf16, #tpu.memory_space<vmem>>, vector<4x256xbf16>
    %47 = vector.extract_strided_slice %46 {offsets = [0, 9], sizes = [4, 128], strides = [1, 1]} : vector<4x256xbf16> to vector<4x128xbf16>
    %c0_22 = arith.constant 0 : index
    %c28 = arith.constant 28 : index
    %48 = vector.load %arg1[%c0_22, %c28] : memref<32x36xbf16, #tpu.memory_space<vmem>>, vector<32x4xbf16>
    %cst_23 = arith.constant dense<0.000000e+00> : vector<32x128xf32>
    %49 = tpu.matmul %48, %47, %cst_23 {dimension_numbers = #tpu.dot_dimension_numbers<[1], [0], [0], [1], [0, 0, 1, 1], [], []>} : vector<32x4xbf16>, vector<4x128xbf16>, vector<32x128xf32> -> vector<32x128xf32>
    %50 = arith.addf %44, %49 : vector<32x128xf32>
    %c0_24 = arith.constant 0 : index
    %51 = arith.index_cast %1 : i32 to index
    %52 = vector.load %arg3[%c0_24, %51] : memref<16x384xbf16, #tpu.memory_space<vmem>>, vector<4x256xbf16>
    %53 = vector.extract_strided_slice %52 {offsets = [0, 10], sizes = [4, 128], strides = [1, 1]} : vector<4x256xbf16> to vector<4x128xbf16>
    %c0_25 = arith.constant 0 : index
    %c32 = arith.constant 32 : index
    %54 = vector.load %arg1[%c0_25, %c32] : memref<32x36xbf16, #tpu.memory_space<vmem>>, vector<32x4xbf16>
    %cst_26 = arith.constant dense<0.000000e+00> : vector<32x128xf32>
    %55 = tpu.matmul %54, %53, %cst_26 {dimension_numbers = #tpu.dot_dimension_numbers<[1], [0], [0], [1], [0, 0, 1, 1], [], []>} : vector<32x4xbf16>, vector<4x128xbf16>, vector<32x128xf32> -> vector<32x128xf32>
    %56 = arith.addf %50, %55 : vector<32x128xf32>
    %c0_27 = arith.constant 0 : index
    %c0_28 = arith.constant 0 : index
    %57 = vector.load %arg2[%c0_27, %c0_28] : memref<32x1xf32, #tpu.memory_space<vmem>>, vector<32x1xf32>
    %58 = vector.broadcast %57 : vector<32x1xf32> to vector<32x128xf32>
    %59 = arith.addf %56, %58 : vector<32x128xf32>
    %cst_29 = arith.constant 0.000000e+00 : f32
    %60 = vector.broadcast %cst_29 : f32 to vector<32x128xf32>
    %61 = arith.maximumf %59, %60 : vector<32x128xf32>
    %62 = arith.truncf %61 : vector<32x128xf32> to vector<32x128xbf16>
    %c0_30 = arith.constant 0 : index
    %c0_31 = arith.constant 0 : index
    %63 = vector.load %arg4[%c0_30, %c0_31] : memref<32x128xbf16, #tpu.memory_space<vmem>>, vector<32x128xbf16>
    tpu.vector_store %arg4[%c0_30, %c0_31], %62 {strides = array<i32>} : memref<32x128xbf16, #tpu.memory_space<vmem>>, vector<32x128xbf16>,
    return
  }
  func.func @transform_0(%arg0: i32) -> (i32, i32) {
    %c0_i32 = arith.constant 0 : i32
    %c0_i32_0 = arith.constant 0 : i32
    %c0_i32_1 = arith.constant 0 : i32
    return %c0_i32, %c0_i32_0 : i32, i32
  }
  func.func @transform_1(%arg0: i32) -> (i32, i32) {
    %c0_i32 = arith.constant 0 : i32
    %c0_i32_0 = arith.constant 0 : i32
    %c0_i32_1 = arith.constant 0 : i32
    return %c0_i32, %c0_i32_0 : i32, i32
  }
  func.func @transform_2(%arg0: i32) -> (i32, i32) {
    %c0_i32 = arith.constant 0 : i32
    %c0_i32_0 = arith.constant 0 : i32
    %c0_i32_1 = arith.constant 0 : i32
    return %c0_i32, %c0_i32_0 : i32, i32
  }
  func.func @transform_3(%arg0: i32) -> (i32, i32) {
    %c0_i32 = arith.constant 0 : i32
    %c0_i32_0 = arith.constant 0 : i32
    return %c0_i32, %arg0 : i32, i32
  }
}

module attributes {stable_mosaic.version = 11 : i64} {
  func.func @_tap_gemm_kernel(%arg0: i32, %arg1: memref<40x288xbf16, #tpu.memory_space<vmem>>, %arg2: memref<40x1xf32, #tpu.memory_space<vmem>>, %arg3: memref<128x256xbf16, #tpu.memory_space<vmem>>, %arg4: memref<40x128xbf16, #tpu.memory_space<vmem>>) attributes {dimension_semantics = [#tpu.dimension_semantics<parallel>], iteration_bounds = array<i64: 1>, scalar_prefetch = 0 : i64, scratch_operands = 0 : i64, tpu.core_type = #tpu.core_type<tc>, window_params = [{pipeline_mode = #tpu.pipeline_mode<synchronous>, transform_indices = @transform_0, window_bounds = array<i64: 40, 288>}, {pipeline_mode = #tpu.pipeline_mode<synchronous>, transform_indices = @transform_1, window_bounds = array<i64: 40, 1>}, {pipeline_mode = #tpu.pipeline_mode<synchronous>, transform_indices = @transform_2, window_bounds = array<i64: 128, 256>}, {transform_indices = @transform_3, window_bounds = array<i64: 40, 128>}]} {
    %c128_i32 = arith.constant 128 : i32
    %0 = arith.muli %arg0, %c128_i32 : i32
    %1 = tpu.assume_multiple %0, 128 : i32
    %cst = arith.constant 0.000000e+00 : f32
    %2 = vector.broadcast %cst : f32 to vector<40x128xf32>
    %c0 = arith.constant 0 : index
    %3 = arith.index_cast %1 : i32 to index
    %4 = vector.load %arg3[%c0, %3] : memref<128x256xbf16, #tpu.memory_space<vmem>>, vector<32x256xbf16>
    %5 = vector.extract_strided_slice %4 {offsets = [0, 0], sizes = [32, 128], strides = [1, 1]} : vector<32x256xbf16> to vector<32x128xbf16>
    %c0_0 = arith.constant 0 : index
    %c0_1 = arith.constant 0 : index
    %6 = vector.load %arg1[%c0_0, %c0_1] : memref<40x288xbf16, #tpu.memory_space<vmem>>, vector<40x32xbf16>
    %cst_2 = arith.constant dense<0.000000e+00> : vector<40x128xf32>
    %7 = tpu.matmul %6, %5, %cst_2 {dimension_numbers = #tpu.dot_dimension_numbers<[1], [0], [0], [1], [0, 0, 1, 1], [], []>} : vector<40x32xbf16>, vector<32x128xbf16>, vector<40x128xf32> -> vector<40x128xf32>
    %8 = arith.addf %2, %7 : vector<40x128xf32>
    %c32 = arith.constant 32 : index
    %9 = arith.index_cast %1 : i32 to index
    %10 = vector.load %arg3[%c32, %9] : memref<128x256xbf16, #tpu.memory_space<vmem>>, vector<32x256xbf16>
    %11 = vector.extract_strided_slice %10 {offsets = [0, 0], sizes = [32, 128], strides = [1, 1]} : vector<32x256xbf16> to vector<32x128xbf16>
    %c0_3 = arith.constant 0 : index
    %c32_4 = arith.constant 32 : index
    %12 = vector.load %arg1[%c0_3, %c32_4] : memref<40x288xbf16, #tpu.memory_space<vmem>>, vector<40x32xbf16>
    %cst_5 = arith.constant dense<0.000000e+00> : vector<40x128xf32>
    %13 = tpu.matmul %12, %11, %cst_5 {dimension_numbers = #tpu.dot_dimension_numbers<[1], [0], [0], [1], [0, 0, 1, 1], [], []>} : vector<40x32xbf16>, vector<32x128xbf16>, vector<40x128xf32> -> vector<40x128xf32>
    %14 = arith.addf %8, %13 : vector<40x128xf32>
    %c0_6 = arith.constant 0 : index
    %15 = arith.index_cast %1 : i32 to index
    %16 = vector.load %arg3[%c0_6, %15] : memref<128x256xbf16, #tpu.memory_space<vmem>>, vector<32x256xbf16>
    %17 = vector.extract_strided_slice %16 {offsets = [0, 1], sizes = [32, 128], strides = [1, 1]} : vector<32x256xbf16> to vector<32x128xbf16>
    %c0_7 = arith.constant 0 : index
    %c64 = arith.constant 64 : index
    %18 = vector.load %arg1[%c0_7, %c64] : memref<40x288xbf16, #tpu.memory_space<vmem>>, vector<40x32xbf16>
    %cst_8 = arith.constant dense<0.000000e+00> : vector<40x128xf32>
    %19 = tpu.matmul %18, %17, %cst_8 {dimension_numbers = #tpu.dot_dimension_numbers<[1], [0], [0], [1], [0, 0, 1, 1], [], []>} : vector<40x32xbf16>, vector<32x128xbf16>, vector<40x128xf32> -> vector<40x128xf32>
    %20 = arith.addf %14, %19 : vector<40x128xf32>
    %c64_9 = arith.constant 64 : index
    %21 = arith.index_cast %1 : i32 to index
    %22 = vector.load %arg3[%c64_9, %21] : memref<128x256xbf16, #tpu.memory_space<vmem>>, vector<32x256xbf16>
    %23 = vector.extract_strided_slice %22 {offsets = [0, 0], sizes = [32, 128], strides = [1, 1]} : vector<32x256xbf16> to vector<32x128xbf16>
    %c0_10 = arith.constant 0 : index
    %c96 = arith.constant 96 : index
    %24 = vector.load %arg1[%c0_10, %c96] : memref<40x288xbf16, #tpu.memory_space<vmem>>, vector<40x32xbf16>
    %cst_11 = arith.constant dense<0.000000e+00> : vector<40x128xf32>
    %25 = tpu.matmul %24, %23, %cst_11 {dimension_numbers = #tpu.dot_dimension_numbers<[1], [0], [0], [1], [0, 0, 1, 1], [], []>} : vector<40x32xbf16>, vector<32x128xbf16>, vector<40x128xf32> -> vector<40x128xf32>
    %26 = arith.addf %20, %25 : vector<40x128xf32>
    %c96_12 = arith.constant 96 : index
    %27 = arith.index_cast %1 : i32 to index
    %28 = vector.load %arg3[%c96_12, %27] : memref<128x256xbf16, #tpu.memory_space<vmem>>, vector<32x256xbf16>
    %29 = vector.extract_strided_slice %28 {offsets = [0, 0], sizes = [32, 128], strides = [1, 1]} : vector<32x256xbf16> to vector<32x128xbf16>
    %c0_13 = arith.constant 0 : index
    %c128 = arith.constant 128 : index
    %30 = vector.load %arg1[%c0_13, %c128] : memref<40x288xbf16, #tpu.memory_space<vmem>>, vector<40x32xbf16>
    %cst_14 = arith.constant dense<0.000000e+00> : vector<40x128xf32>
    %31 = tpu.matmul %30, %29, %cst_14 {dimension_numbers = #tpu.dot_dimension_numbers<[1], [0], [0], [1], [0, 0, 1, 1], [], []>} : vector<40x32xbf16>, vector<32x128xbf16>, vector<40x128xf32> -> vector<40x128xf32>
    %32 = arith.addf %26, %31 : vector<40x128xf32>
    %c64_15 = arith.constant 64 : index
    %33 = arith.index_cast %1 : i32 to index
    %34 = vector.load %arg3[%c64_15, %33] : memref<128x256xbf16, #tpu.memory_space<vmem>>, vector<32x256xbf16>
    %35 = vector.extract_strided_slice %34 {offsets = [0, 1], sizes = [32, 128], strides = [1, 1]} : vector<32x256xbf16> to vector<32x128xbf16>
    %c0_16 = arith.constant 0 : index
    %c160 = arith.constant 160 : index
    %36 = vector.load %arg1[%c0_16, %c160] : memref<40x288xbf16, #tpu.memory_space<vmem>>, vector<40x32xbf16>
    %cst_17 = arith.constant dense<0.000000e+00> : vector<40x128xf32>
    %37 = tpu.matmul %36, %35, %cst_17 {dimension_numbers = #tpu.dot_dimension_numbers<[1], [0], [0], [1], [0, 0, 1, 1], [], []>} : vector<40x32xbf16>, vector<32x128xbf16>, vector<40x128xf32> -> vector<40x128xf32>
    %38 = arith.addf %32, %37 : vector<40x128xf32>
    %c0_18 = arith.constant 0 : index
    %39 = arith.index_cast %1 : i32 to index
    %40 = vector.load %arg3[%c0_18, %39] : memref<128x256xbf16, #tpu.memory_space<vmem>>, vector<32x256xbf16>
    %41 = vector.extract_strided_slice %40 {offsets = [0, 5], sizes = [32, 128], strides = [1, 1]} : vector<32x256xbf16> to vector<32x128xbf16>
    %c0_19 = arith.constant 0 : index
    %c192 = arith.constant 192 : index
    %42 = vector.load %arg1[%c0_19, %c192] : memref<40x288xbf16, #tpu.memory_space<vmem>>, vector<40x32xbf16>
    %cst_20 = arith.constant dense<0.000000e+00> : vector<40x128xf32>
    %43 = tpu.matmul %42, %41, %cst_20 {dimension_numbers = #tpu.dot_dimension_numbers<[1], [0], [0], [1], [0, 0, 1, 1], [], []>} : vector<40x32xbf16>, vector<32x128xbf16>, vector<40x128xf32> -> vector<40x128xf32>
    %44 = arith.addf %38, %43 : vector<40x128xf32>
    %c32_21 = arith.constant 32 : index
    %45 = arith.index_cast %1 : i32 to index
    %46 = vector.load %arg3[%c32_21, %45] : memref<128x256xbf16, #tpu.memory_space<vmem>>, vector<32x256xbf16>
    %47 = vector.extract_strided_slice %46 {offsets = [0, 5], sizes = [32, 128], strides = [1, 1]} : vector<32x256xbf16> to vector<32x128xbf16>
    %c0_22 = arith.constant 0 : index
    %c224 = arith.constant 224 : index
    %48 = vector.load %arg1[%c0_22, %c224] : memref<40x288xbf16, #tpu.memory_space<vmem>>, vector<40x32xbf16>
    %cst_23 = arith.constant dense<0.000000e+00> : vector<40x128xf32>
    %49 = tpu.matmul %48, %47, %cst_23 {dimension_numbers = #tpu.dot_dimension_numbers<[1], [0], [0], [1], [0, 0, 1, 1], [], []>} : vector<40x32xbf16>, vector<32x128xbf16>, vector<40x128xf32> -> vector<40x128xf32>
    %50 = arith.addf %44, %49 : vector<40x128xf32>
    %c0_24 = arith.constant 0 : index
    %51 = arith.index_cast %1 : i32 to index
    %52 = vector.load %arg3[%c0_24, %51] : memref<128x256xbf16, #tpu.memory_space<vmem>>, vector<32x256xbf16>
    %53 = vector.extract_strided_slice %52 {offsets = [0, 6], sizes = [32, 128], strides = [1, 1]} : vector<32x256xbf16> to vector<32x128xbf16>
    %c0_25 = arith.constant 0 : index
    %c256 = arith.constant 256 : index
    %54 = vector.load %arg1[%c0_25, %c256] : memref<40x288xbf16, #tpu.memory_space<vmem>>, vector<40x32xbf16>
    %cst_26 = arith.constant dense<0.000000e+00> : vector<40x128xf32>
    %55 = tpu.matmul %54, %53, %cst_26 {dimension_numbers = #tpu.dot_dimension_numbers<[1], [0], [0], [1], [0, 0, 1, 1], [], []>} : vector<40x32xbf16>, vector<32x128xbf16>, vector<40x128xf32> -> vector<40x128xf32>
    %56 = arith.addf %50, %55 : vector<40x128xf32>
    %c0_27 = arith.constant 0 : index
    %c0_28 = arith.constant 0 : index
    %57 = vector.load %arg2[%c0_27, %c0_28] : memref<40x1xf32, #tpu.memory_space<vmem>>, vector<40x1xf32>
    %58 = vector.broadcast %57 : vector<40x1xf32> to vector<40x128xf32>
    %59 = arith.addf %56, %58 : vector<40x128xf32>
    %cst_29 = arith.constant 0.000000e+00 : f32
    %60 = vector.broadcast %cst_29 : f32 to vector<40x128xf32>
    %61 = arith.maximumf %59, %60 : vector<40x128xf32>
    %62 = arith.truncf %61 : vector<40x128xf32> to vector<40x128xbf16>
    %c0_30 = arith.constant 0 : index
    %c0_31 = arith.constant 0 : index
    %63 = vector.load %arg4[%c0_30, %c0_31] : memref<40x128xbf16, #tpu.memory_space<vmem>>, vector<40x128xbf16>
    tpu.vector_store %arg4[%c0_30, %c0_31], %62 {strides = array<i32>} : memref<40x128xbf16, #tpu.memory_space<vmem>>, vector<40x128xbf16>,
    return
  }
  func.func @transform_0(%arg0: i32) -> (i32, i32) {
    %c0_i32 = arith.constant 0 : i32
    %c0_i32_0 = arith.constant 0 : i32
    %c0_i32_1 = arith.constant 0 : i32
    return %c0_i32, %c0_i32_0 : i32, i32
  }
  func.func @transform_1(%arg0: i32) -> (i32, i32) {
    %c0_i32 = arith.constant 0 : i32
    %c0_i32_0 = arith.constant 0 : i32
    %c0_i32_1 = arith.constant 0 : i32
    return %c0_i32, %c0_i32_0 : i32, i32
  }
  func.func @transform_2(%arg0: i32) -> (i32, i32) {
    %c0_i32 = arith.constant 0 : i32
    %c0_i32_0 = arith.constant 0 : i32
    %c0_i32_1 = arith.constant 0 : i32
    return %c0_i32, %c0_i32_0 : i32, i32
  }
  func.func @transform_3(%arg0: i32) -> (i32, i32) {
    %c0_i32 = arith.constant 0 : i32
    %c0_i32_0 = arith.constant 0 : i32
    return %c0_i32, %arg0 : i32, i32
  }
}

module attributes {stable_mosaic.version = 11 : i64} {
  func.func @_tap_gemm_kernel(%arg0: i32, %arg1: memref<128x160xbf16, #tpu.memory_space<vmem>>, %arg2: memref<128x1xf32, #tpu.memory_space<vmem>>, %arg3: memref<40x256xbf16, #tpu.memory_space<vmem>>, %arg4: memref<128x128xbf16, #tpu.memory_space<vmem>>) attributes {dimension_semantics = [#tpu.dimension_semantics<parallel>], iteration_bounds = array<i64: 1>, scalar_prefetch = 0 : i64, scratch_operands = 0 : i64, tpu.core_type = #tpu.core_type<tc>, window_params = [{pipeline_mode = #tpu.pipeline_mode<synchronous>, transform_indices = @transform_0, window_bounds = array<i64: 128, 160>}, {pipeline_mode = #tpu.pipeline_mode<synchronous>, transform_indices = @transform_1, window_bounds = array<i64: 128, 1>}, {pipeline_mode = #tpu.pipeline_mode<synchronous>, transform_indices = @transform_2, window_bounds = array<i64: 40, 256>}, {transform_indices = @transform_3, window_bounds = array<i64: 128, 128>}]} {
    %c128_i32 = arith.constant 128 : i32
    %0 = arith.muli %arg0, %c128_i32 : i32
    %1 = tpu.assume_multiple %0, 128 : i32
    %cst = arith.constant 0.000000e+00 : f32
    %2 = vector.broadcast %cst : f32 to vector<128x128xf32>
    %c0 = arith.constant 0 : index
    %3 = arith.index_cast %1 : i32 to index
    %4 = vector.load %arg3[%c0, %3] : memref<40x256xbf16, #tpu.memory_space<vmem>>, vector<40x256xbf16>
    %5 = vector.extract_strided_slice %4 {offsets = [0, 0], sizes = [40, 128], strides = [1, 1]} : vector<40x256xbf16> to vector<40x128xbf16>
    %c0_0 = arith.constant 0 : index
    %c0_1 = arith.constant 0 : index
    %6 = vector.load %arg1[%c0_0, %c0_1] : memref<128x160xbf16, #tpu.memory_space<vmem>>, vector<128x40xbf16>
    %cst_2 = arith.constant dense<0.000000e+00> : vector<128x128xf32>
    %7 = tpu.matmul %6, %5, %cst_2 {dimension_numbers = #tpu.dot_dimension_numbers<[1], [0], [0], [1], [0, 0, 1, 1], [], []>} : vector<128x40xbf16>, vector<40x128xbf16>, vector<128x128xf32> -> vector<128x128xf32>
    %8 = arith.addf %2, %7 : vector<128x128xf32>
    %c0_3 = arith.constant 0 : index
    %9 = arith.index_cast %1 : i32 to index
    %10 = vector.load %arg3[%c0_3, %9] : memref<40x256xbf16, #tpu.memory_space<vmem>>, vector<40x256xbf16>
    %11 = vector.extract_strided_slice %10 {offsets = [0, 1], sizes = [40, 128], strides = [1, 1]} : vector<40x256xbf16> to vector<40x128xbf16>
    %c0_4 = arith.constant 0 : index
    %c40 = arith.constant 40 : index
    %12 = vector.load %arg1[%c0_4, %c40] : memref<128x160xbf16, #tpu.memory_space<vmem>>, vector<128x40xbf16>
    %cst_5 = arith.constant dense<0.000000e+00> : vector<128x128xf32>
    %13 = tpu.matmul %12, %11, %cst_5 {dimension_numbers = #tpu.dot_dimension_numbers<[1], [0], [0], [1], [0, 0, 1, 1], [], []>} : vector<128x40xbf16>, vector<40x128xbf16>, vector<128x128xf32> -> vector<128x128xf32>
    %14 = arith.addf %8, %13 : vector<128x128xf32>
    %c0_6 = arith.constant 0 : index
    %15 = arith.index_cast %1 : i32 to index
    %16 = vector.load %arg3[%c0_6, %15] : memref<40x256xbf16, #tpu.memory_space<vmem>>, vector<40x256xbf16>
    %17 = vector.extract_strided_slice %16 {offsets = [0, 5], sizes = [40, 128], strides = [1, 1]} : vector<40x256xbf16> to vector<40x128xbf16>
    %c0_7 = arith.constant 0 : index
    %c80 = arith.constant 80 : index
    %18 = vector.load %arg1[%c0_7, %c80] : memref<128x160xbf16, #tpu.memory_space<vmem>>, vector<128x40xbf16>
    %cst_8 = arith.constant dense<0.000000e+00> : vector<128x128xf32>
    %19 = tpu.matmul %18, %17, %cst_8 {dimension_numbers = #tpu.dot_dimension_numbers<[1], [0], [0], [1], [0, 0, 1, 1], [], []>} : vector<128x40xbf16>, vector<40x128xbf16>, vector<128x128xf32> -> vector<128x128xf32>
    %20 = arith.addf %14, %19 : vector<128x128xf32>
    %c0_9 = arith.constant 0 : index
    %21 = arith.index_cast %1 : i32 to index
    %22 = vector.load %arg3[%c0_9, %21] : memref<40x256xbf16, #tpu.memory_space<vmem>>, vector<40x256xbf16>
    %23 = vector.extract_strided_slice %22 {offsets = [0, 6], sizes = [40, 128], strides = [1, 1]} : vector<40x256xbf16> to vector<40x128xbf16>
    %c0_10 = arith.constant 0 : index
    %c120 = arith.constant 120 : index
    %24 = vector.load %arg1[%c0_10, %c120] : memref<128x160xbf16, #tpu.memory_space<vmem>>, vector<128x40xbf16>
    %cst_11 = arith.constant dense<0.000000e+00> : vector<128x128xf32>
    %25 = tpu.matmul %24, %23, %cst_11 {dimension_numbers = #tpu.dot_dimension_numbers<[1], [0], [0], [1], [0, 0, 1, 1], [], []>} : vector<128x40xbf16>, vector<40x128xbf16>, vector<128x128xf32> -> vector<128x128xf32>
    %26 = arith.addf %20, %25 : vector<128x128xf32>
    %c0_12 = arith.constant 0 : index
    %c0_13 = arith.constant 0 : index
    %27 = vector.load %arg2[%c0_12, %c0_13] : memref<128x1xf32, #tpu.memory_space<vmem>>, vector<128x1xf32>
    %28 = vector.broadcast %27 : vector<128x1xf32> to vector<128x128xf32>
    %29 = arith.addf %26, %28 : vector<128x128xf32>
    %cst_14 = arith.constant 0.000000e+00 : f32
    %30 = vector.broadcast %cst_14 : f32 to vector<128x128xf32>
    %31 = arith.maximumf %29, %30 : vector<128x128xf32>
    %32 = arith.truncf %31 : vector<128x128xf32> to vector<128x128xbf16>
    %c0_15 = arith.constant 0 : index
    %c0_16 = arith.constant 0 : index
    %33 = vector.load %arg4[%c0_15, %c0_16] : memref<128x128xbf16, #tpu.memory_space<vmem>>, vector<128x128xbf16>
    tpu.vector_store %arg4[%c0_15, %c0_16], %32 {strides = array<i32>} : memref<128x128xbf16, #tpu.memory_space<vmem>>, vector<128x128xbf16>,
    return
  }
  func.func @transform_0(%arg0: i32) -> (i32, i32) {
    %c0_i32 = arith.constant 0 : i32
    %c0_i32_0 = arith.constant 0 : i32
    %c0_i32_1 = arith.constant 0 : i32
    return %c0_i32, %c0_i32_0 : i32, i32
  }
  func.func @transform_1(%arg0: i32) -> (i32, i32) {
    %c0_i32 = arith.constant 0 : i32
    %c0_i32_0 = arith.constant 0 : i32
    %c0_i32_1 = arith.constant 0 : i32
    return %c0_i32, %c0_i32_0 : i32, i32
  }
  func.func @transform_2(%arg0: i32) -> (i32, i32) {
    %c0_i32 = arith.constant 0 : i32
    %c0_i32_0 = arith.constant 0 : i32
    %c0_i32_1 = arith.constant 0 : i32
    return %c0_i32, %c0_i32_0 : i32, i32
  }
  func.func @transform_3(%arg0: i32) -> (i32, i32) {
    %c0_i32 = arith.constant 0 : i32
    %c0_i32_0 = arith.constant 0 : i32
    return %c0_i32, %arg0 : i32, i32
  }
}

module attributes {stable_mosaic.version = 11 : i64} {
  func.func @_q_attention_kernel(%arg0: i32, %arg1: memref<32x32xbf16, #tpu.memory_space<vmem>>, %arg2: memref<32x32xbf16, #tpu.memory_space<vmem>>, %arg3: memref<4x32xbf16, #tpu.memory_space<vmem>>, %arg4: memref<32x128xbf16, #tpu.memory_space<vmem>>, %arg5: memref<32x128xbf16, #tpu.memory_space<vmem>>, %arg6: memref<32x128xbf16, #tpu.memory_space<vmem>>) attributes {dimension_semantics = [#tpu.dimension_semantics<parallel>], iteration_bounds = array<i64: 1>, scalar_prefetch = 0 : i64, scratch_operands = 0 : i64, tpu.core_type = #tpu.core_type<tc>, window_params = [{pipeline_mode = #tpu.pipeline_mode<synchronous>, transform_indices = @transform_0, window_bounds = array<i64: 32, 32>}, {pipeline_mode = #tpu.pipeline_mode<synchronous>, transform_indices = @transform_1, window_bounds = array<i64: 32, 32>}, {pipeline_mode = #tpu.pipeline_mode<synchronous>, transform_indices = @transform_2, window_bounds = array<i64: 4, 32>}, {transform_indices = @transform_3, window_bounds = array<i64: 32, 128>}, {transform_indices = @transform_4, window_bounds = array<i64: 32, 128>}, {transform_indices = @transform_5, window_bounds = array<i64: 32, 128>}]} {
    %c0 = arith.constant 0 : index
    %c0_0 = arith.constant 0 : index
    %0 = vector.load %arg5[%c0, %c0_0] : memref<32x128xbf16, #tpu.memory_space<vmem>>, vector<32x128xbf16>
    %c0_1 = arith.constant 0 : index
    %c0_2 = arith.constant 0 : index
    %1 = vector.load %arg1[%c0_1, %c0_2] : memref<32x32xbf16, #tpu.memory_space<vmem>>, vector<32x32xbf16>
    %c0_3 = arith.constant 0 : index
    %c0_4 = arith.constant 0 : index
    %2 = vector.load %arg4[%c0_3, %c0_4] : memref<32x128xbf16, #tpu.memory_space<vmem>>, vector<32x128xbf16>
    %cst = arith.constant dense<0.000000e+00> : vector<32x128xf32>
    %3 = tpu.matmul %1, %2, %cst {dimension_numbers = #tpu.dot_dimension_numbers<[1], [0], [0], [1], [0, 0, 1, 1], [], []>} : vector<32x32xbf16>, vector<32x128xbf16>, vector<32x128xf32> -> vector<32x128xf32>
    %c0_5 = arith.constant 0 : index
    %c0_6 = arith.constant 0 : index
    %4 = vector.load %arg2[%c0_5, %c0_6] : memref<32x32xbf16, #tpu.memory_space<vmem>>, vector<32x32xbf16>
    %cst_7 = arith.constant dense<0.000000e+00> : vector<32x128xf32>
    %5 = tpu.matmul %4, %0, %cst_7 {dimension_numbers = #tpu.dot_dimension_numbers<[1], [0], [0], [1], [0, 0, 1, 1], [], []>} : vector<32x32xbf16>, vector<32x128xbf16>, vector<32x128xf32> -> vector<32x128xf32>
    %6 = arith.addf %3, %5 : vector<32x128xf32>
    %cst_8 = arith.constant 0.000000e+00 : f32
    %7 = vector.broadcast %cst_8 : f32 to vector<32x128xf32>
    %8 = arith.maximumf %6, %7 : vector<32x128xf32>
    %9 = arith.truncf %8 : vector<32x128xf32> to vector<32x128xbf16>
    %c0_9 = arith.constant 0 : index
    %c0_10 = arith.constant 0 : index
    %10 = vector.load %arg3[%c0_9, %c0_10] : memref<4x32xbf16, #tpu.memory_space<vmem>>, vector<4x32xbf16>
    %cst_11 = arith.constant dense<0.000000e+00> : vector<4x128xf32>
    %11 = tpu.matmul %10, %9, %cst_11 {dimension_numbers = #tpu.dot_dimension_numbers<[1], [0], [0], [1], [0, 0, 1, 1], [], []>} : vector<4x32xbf16>, vector<32x128xbf16>, vector<4x128xf32> -> vector<4x128xf32>
    %12 = arith.mulf %11, %11 : vector<4x128xf32>
    %cst_12 = arith.constant dense<0.000000e+00> : vector<128xf32>
    %13 = vector.multi_reduction <add>, %12, %cst_12 [0] : vector<4x128xf32> to vector<128xf32>
    %14 = vector.shape_cast %13 : vector<128xf32> to vector<1x128xf32>
    %15 = math.sqrt %14 : vector<1x128xf32>
    %cst_13 = arith.constant 0.000000e+00 : f32
    %16 = vector.broadcast %cst_13 : f32 to vector<1x128xf32>
    %17 = arith.subf %16, %15 : vector<1x128xf32>
    %18 = math.exp %17 : vector<1x128xf32>
    %cst_14 = arith.constant 1.000000e+00 : f32
    %19 = vector.broadcast %cst_14 : f32 to vector<1x128xf32>
    %20 = arith.addf %19, %18 : vector<1x128xf32>
    %21 = tpu.reciprocal %20 {approx = true} : vector<1x128xf32> -> vector<1x128xf32>
    %22 = arith.extf %0 : vector<32x128xbf16> to vector<32x128xf32>
    %23 = vector.broadcast %21 : vector<1x128xf32> to vector<32x128xf32>
    %24 = arith.mulf %23, %22 : vector<32x128xf32>
    %25 = arith.truncf %24 : vector<32x128xf32> to vector<32x128xbf16>
    %c0_15 = arith.constant 0 : index
    %c0_16 = arith.constant 0 : index
    %26 = vector.load %arg6[%c0_15, %c0_16] : memref<32x128xbf16, #tpu.memory_space<vmem>>, vector<32x128xbf16>
    tpu.vector_store %arg6[%c0_15, %c0_16], %25 {strides = array<i32>} : memref<32x128xbf16, #tpu.memory_space<vmem>>, vector<32x128xbf16>,
    return
  }
  func.func @transform_0(%arg0: i32) -> (i32, i32) {
    %c0_i32 = arith.constant 0 : i32
    %c0_i32_0 = arith.constant 0 : i32
    %c0_i32_1 = arith.constant 0 : i32
    return %c0_i32, %c0_i32_0 : i32, i32
  }
  func.func @transform_1(%arg0: i32) -> (i32, i32) {
    %c0_i32 = arith.constant 0 : i32
    %c0_i32_0 = arith.constant 0 : i32
    %c0_i32_1 = arith.constant 0 : i32
    return %c0_i32, %c0_i32_0 : i32, i32
  }
  func.func @transform_2(%arg0: i32) -> (i32, i32) {
    %c0_i32 = arith.constant 0 : i32
    %c0_i32_0 = arith.constant 0 : i32
    %c0_i32_1 = arith.constant 0 : i32
    return %c0_i32, %c0_i32_0 : i32, i32
  }
  func.func @transform_3(%arg0: i32) -> (i32, i32) {
    %c0_i32 = arith.constant 0 : i32
    %c0_i32_0 = arith.constant 0 : i32
    return %c0_i32, %arg0 : i32, i32
  }
  func.func @transform_4(%arg0: i32) -> (i32, i32) {
    %c0_i32 = arith.constant 0 : i32
    %c0_i32_0 = arith.constant 0 : i32
    return %c0_i32, %arg0 : i32, i32
  }
  func.func @transform_5(%arg0: i32) -> (i32, i32) {
    %c0_i32 = arith.constant 0 : i32
    %c0_i32_0 = arith.constant 0 : i32
    return %c0_i32, %arg0 : i32, i32
  }
}

module attributes {stable_mosaic.version = 11 : i64} {
  func.func @_tap_gemm_kernel(%arg0: i32, %arg1: memref<16x256xbf16, #tpu.memory_space<vmem>>, %arg2: memref<16x1xf32, #tpu.memory_space<vmem>>, %arg3: memref<32x384xbf16, #tpu.memory_space<vmem>>, %arg4: memref<32x384xbf16, #tpu.memory_space<vmem>>, %arg5: memref<16x128xf32, #tpu.memory_space<vmem>>) attributes {dimension_semantics = [#tpu.dimension_semantics<parallel>], iteration_bounds = array<i64: 2>, scalar_prefetch = 0 : i64, scratch_operands = 0 : i64, tpu.core_type = #tpu.core_type<tc>, window_params = [{pipeline_mode = #tpu.pipeline_mode<synchronous>, transform_indices = @transform_0, window_bounds = array<i64: 16, 256>}, {pipeline_mode = #tpu.pipeline_mode<synchronous>, transform_indices = @transform_1, window_bounds = array<i64: 16, 1>}, {pipeline_mode = #tpu.pipeline_mode<synchronous>, transform_indices = @transform_2, window_bounds = array<i64: 32, 384>}, {pipeline_mode = #tpu.pipeline_mode<synchronous>, transform_indices = @transform_3, window_bounds = array<i64: 32, 384>}, {transform_indices = @transform_4, window_bounds = array<i64: 16, 128>}]} {
    %c128_i32 = arith.constant 128 : i32
    %0 = arith.muli %arg0, %c128_i32 : i32
    %1 = tpu.assume_multiple %0, 128 : i32
    %cst = arith.constant 0.000000e+00 : f32
    %2 = vector.broadcast %cst : f32 to vector<16x128xf32>
    %c0 = arith.constant 0 : index
    %3 = arith.index_cast %1 : i32 to index
    %4 = vector.load %arg3[%c0, %3] : memref<32x384xbf16, #tpu.memory_space<vmem>>, vector<32x256xbf16>
    %5 = vector.extract_strided_slice %4 {offsets = [0, 0], sizes = [32, 128], strides = [1, 1]} : vector<32x256xbf16> to vector<32x128xbf16>
    %c0_0 = arith.constant 0 : index
    %c0_1 = arith.constant 0 : index
    %6 = vector.load %arg1[%c0_0, %c0_1] : memref<16x256xbf16, #tpu.memory_space<vmem>>, vector<16x32xbf16>
    %cst_2 = arith.constant dense<0.000000e+00> : vector<16x128xf32>
    %7 = tpu.matmul %6, %5, %cst_2 {dimension_numbers = #tpu.dot_dimension_numbers<[1], [0], [0], [1], [0, 0, 1, 1], [], []>} : vector<16x32xbf16>, vector<32x128xbf16>, vector<16x128xf32> -> vector<16x128xf32>
    %8 = arith.addf %2, %7 : vector<16x128xf32>
    %c0_3 = arith.constant 0 : index
    %9 = arith.index_cast %1 : i32 to index
    %10 = vector.load %arg4[%c0_3, %9] : memref<32x384xbf16, #tpu.memory_space<vmem>>, vector<32x256xbf16>
    %11 = vector.extract_strided_slice %10 {offsets = [0, 0], sizes = [32, 128], strides = [1, 1]} : vector<32x256xbf16> to vector<32x128xbf16>
    %c0_4 = arith.constant 0 : index
    %c32 = arith.constant 32 : index
    %12 = vector.load %arg1[%c0_4, %c32] : memref<16x256xbf16, #tpu.memory_space<vmem>>, vector<16x32xbf16>
    %cst_5 = arith.constant dense<0.000000e+00> : vector<16x128xf32>
    %13 = tpu.matmul %12, %11, %cst_5 {dimension_numbers = #tpu.dot_dimension_numbers<[1], [0], [0], [1], [0, 0, 1, 1], [], []>} : vector<16x32xbf16>, vector<32x128xbf16>, vector<16x128xf32> -> vector<16x128xf32>
    %14 = arith.addf %8, %13 : vector<16x128xf32>
    %c0_6 = arith.constant 0 : index
    %15 = arith.index_cast %1 : i32 to index
    %16 = vector.load %arg3[%c0_6, %15] : memref<32x384xbf16, #tpu.memory_space<vmem>>, vector<32x256xbf16>
    %17 = vector.extract_strided_slice %16 {offsets = [0, 1], sizes = [32, 128], strides = [1, 1]} : vector<32x256xbf16> to vector<32x128xbf16>
    %c0_7 = arith.constant 0 : index
    %c64 = arith.constant 64 : index
    %18 = vector.load %arg1[%c0_7, %c64] : memref<16x256xbf16, #tpu.memory_space<vmem>>, vector<16x32xbf16>
    %cst_8 = arith.constant dense<0.000000e+00> : vector<16x128xf32>
    %19 = tpu.matmul %18, %17, %cst_8 {dimension_numbers = #tpu.dot_dimension_numbers<[1], [0], [0], [1], [0, 0, 1, 1], [], []>} : vector<16x32xbf16>, vector<32x128xbf16>, vector<16x128xf32> -> vector<16x128xf32>
    %20 = arith.addf %14, %19 : vector<16x128xf32>
    %c0_9 = arith.constant 0 : index
    %21 = arith.index_cast %1 : i32 to index
    %22 = vector.load %arg4[%c0_9, %21] : memref<32x384xbf16, #tpu.memory_space<vmem>>, vector<32x256xbf16>
    %23 = vector.extract_strided_slice %22 {offsets = [0, 1], sizes = [32, 128], strides = [1, 1]} : vector<32x256xbf16> to vector<32x128xbf16>
    %c0_10 = arith.constant 0 : index
    %c96 = arith.constant 96 : index
    %24 = vector.load %arg1[%c0_10, %c96] : memref<16x256xbf16, #tpu.memory_space<vmem>>, vector<16x32xbf16>
    %cst_11 = arith.constant dense<0.000000e+00> : vector<16x128xf32>
    %25 = tpu.matmul %24, %23, %cst_11 {dimension_numbers = #tpu.dot_dimension_numbers<[1], [0], [0], [1], [0, 0, 1, 1], [], []>} : vector<16x32xbf16>, vector<32x128xbf16>, vector<16x128xf32> -> vector<16x128xf32>
    %26 = arith.addf %20, %25 : vector<16x128xf32>
    %c0_12 = arith.constant 0 : index
    %27 = arith.index_cast %1 : i32 to index
    %28 = vector.load %arg3[%c0_12, %27] : memref<32x384xbf16, #tpu.memory_space<vmem>>, vector<32x256xbf16>
    %29 = vector.extract_strided_slice %28 {offsets = [0, 9], sizes = [32, 128], strides = [1, 1]} : vector<32x256xbf16> to vector<32x128xbf16>
    %c0_13 = arith.constant 0 : index
    %c128 = arith.constant 128 : index
    %30 = vector.load %arg1[%c0_13, %c128] : memref<16x256xbf16, #tpu.memory_space<vmem>>, vector<16x32xbf16>
    %cst_14 = arith.constant dense<0.000000e+00> : vector<16x128xf32>
    %31 = tpu.matmul %30, %29, %cst_14 {dimension_numbers = #tpu.dot_dimension_numbers<[1], [0], [0], [1], [0, 0, 1, 1], [], []>} : vector<16x32xbf16>, vector<32x128xbf16>, vector<16x128xf32> -> vector<16x128xf32>
    %32 = arith.addf %26, %31 : vector<16x128xf32>
    %c0_15 = arith.constant 0 : index
    %33 = arith.index_cast %1 : i32 to index
    %34 = vector.load %arg4[%c0_15, %33] : memref<32x384xbf16, #tpu.memory_space<vmem>>, vector<32x256xbf16>
    %35 = vector.extract_strided_slice %34 {offsets = [0, 9], sizes = [32, 128], strides = [1, 1]} : vector<32x256xbf16> to vector<32x128xbf16>
    %c0_16 = arith.constant 0 : index
    %c160 = arith.constant 160 : index
    %36 = vector.load %arg1[%c0_16, %c160] : memref<16x256xbf16, #tpu.memory_space<vmem>>, vector<16x32xbf16>
    %cst_17 = arith.constant dense<0.000000e+00> : vector<16x128xf32>
    %37 = tpu.matmul %36, %35, %cst_17 {dimension_numbers = #tpu.dot_dimension_numbers<[1], [0], [0], [1], [0, 0, 1, 1], [], []>} : vector<16x32xbf16>, vector<32x128xbf16>, vector<16x128xf32> -> vector<16x128xf32>
    %38 = arith.addf %32, %37 : vector<16x128xf32>
    %c0_18 = arith.constant 0 : index
    %39 = arith.index_cast %1 : i32 to index
    %40 = vector.load %arg3[%c0_18, %39] : memref<32x384xbf16, #tpu.memory_space<vmem>>, vector<32x256xbf16>
    %41 = vector.extract_strided_slice %40 {offsets = [0, 10], sizes = [32, 128], strides = [1, 1]} : vector<32x256xbf16> to vector<32x128xbf16>
    %c0_19 = arith.constant 0 : index
    %c192 = arith.constant 192 : index
    %42 = vector.load %arg1[%c0_19, %c192] : memref<16x256xbf16, #tpu.memory_space<vmem>>, vector<16x32xbf16>
    %cst_20 = arith.constant dense<0.000000e+00> : vector<16x128xf32>
    %43 = tpu.matmul %42, %41, %cst_20 {dimension_numbers = #tpu.dot_dimension_numbers<[1], [0], [0], [1], [0, 0, 1, 1], [], []>} : vector<16x32xbf16>, vector<32x128xbf16>, vector<16x128xf32> -> vector<16x128xf32>
    %44 = arith.addf %38, %43 : vector<16x128xf32>
    %c0_21 = arith.constant 0 : index
    %45 = arith.index_cast %1 : i32 to index
    %46 = vector.load %arg4[%c0_21, %45] : memref<32x384xbf16, #tpu.memory_space<vmem>>, vector<32x256xbf16>
    %47 = vector.extract_strided_slice %46 {offsets = [0, 10], sizes = [32, 128], strides = [1, 1]} : vector<32x256xbf16> to vector<32x128xbf16>
    %c0_22 = arith.constant 0 : index
    %c224 = arith.constant 224 : index
    %48 = vector.load %arg1[%c0_22, %c224] : memref<16x256xbf16, #tpu.memory_space<vmem>>, vector<16x32xbf16>
    %cst_23 = arith.constant dense<0.000000e+00> : vector<16x128xf32>
    %49 = tpu.matmul %48, %47, %cst_23 {dimension_numbers = #tpu.dot_dimension_numbers<[1], [0], [0], [1], [0, 0, 1, 1], [], []>} : vector<16x32xbf16>, vector<32x128xbf16>, vector<16x128xf32> -> vector<16x128xf32>
    %50 = arith.addf %44, %49 : vector<16x128xf32>
    %c0_24 = arith.constant 0 : index
    %c0_25 = arith.constant 0 : index
    %51 = vector.load %arg2[%c0_24, %c0_25] : memref<16x1xf32, #tpu.memory_space<vmem>>, vector<16x1xf32>
    %52 = vector.broadcast %51 : vector<16x1xf32> to vector<16x128xf32>
    %53 = arith.addf %50, %52 : vector<16x128xf32>
    %cst_26 = arith.constant 0.000000e+00 : f32
    %54 = vector.broadcast %cst_26 : f32 to vector<16x128xf32>
    %55 = arith.maximumf %53, %54 : vector<16x128xf32>
    %c0_27 = arith.constant 0 : index
    %c0_28 = arith.constant 0 : index
    %56 = vector.load %arg5[%c0_27, %c0_28] : memref<16x128xf32, #tpu.memory_space<vmem>>, vector<16x128xf32>
    tpu.vector_store %arg5[%c0_27, %c0_28], %55 {strides = array<i32>} : memref<16x128xf32, #tpu.memory_space<vmem>>, vector<16x128xf32>,
    return
  }
  func.func @transform_0(%arg0: i32) -> (i32, i32) {
    %c0_i32 = arith.constant 0 : i32
    %c0_i32_0 = arith.constant 0 : i32
    %c0_i32_1 = arith.constant 0 : i32
    return %c0_i32, %c0_i32_0 : i32, i32
  }
  func.func @transform_1(%arg0: i32) -> (i32, i32) {
    %c0_i32 = arith.constant 0 : i32
    %c0_i32_0 = arith.constant 0 : i32
    %c0_i32_1 = arith.constant 0 : i32
    return %c0_i32, %c0_i32_0 : i32, i32
  }
  func.func @transform_2(%arg0: i32) -> (i32, i32) {
    %c0_i32 = arith.constant 0 : i32
    %c0_i32_0 = arith.constant 0 : i32
    %c0_i32_1 = arith.constant 0 : i32
    return %c0_i32, %c0_i32_0 : i32, i32
  }
  func.func @transform_3(%arg0: i32) -> (i32, i32) {
    %c0_i32 = arith.constant 0 : i32
    %c0_i32_0 = arith.constant 0 : i32
    %c0_i32_1 = arith.constant 0 : i32
    return %c0_i32, %c0_i32_0 : i32, i32
  }
  func.func @transform_4(%arg0: i32) -> (i32, i32) {
    %c0_i32 = arith.constant 0 : i32
    %c0_i32_0 = arith.constant 0 : i32
    return %c0_i32, %arg0 : i32, i32
  }
}

</mosaic_0001>

<bundles_post_ra>
// kernel: qa_qcae_forward.5
= control target key start
LH: loop header
LB: loop body
LE: loop exit
PB: predicated region body
PF: predicated region fallthrough
CT: control target
= control target key end

     0   :  { %s1206_s12 = smov 0   ;;  %s1208_s13 = smov 0   ;;  %s1342_s0 = inlined_call_operand.vmem [shape: bf16[32,36], index: 0, kind: input, shape index: {}]   ;;  %s1343_s1 = inlined_call_operand.vmem [shape: f32[32,1], index: 1, kind: input, shape index: {}]   ;;  %s1344_s2 = inlined_call_operand.vmem [shape: bf16[16,384], index: 2, kind: input, shape index: {}]   ;;  %s1345_s3 = inlined_call_operand.vmem [shape: bf16[32,256], index: 3, kind: output, shape index: {}]  }
   0x1   :  { %s1210_s14 = smov 0  }
   0x2 LB: > { %s1219_s15 = sadd.s32 4294967295, %s1172_s14   ;;  %s1221_s16 = sadd.s32 1, %s1172_s14   ;;  %s1172_s14 = sphi %s1210_s14, %s1349_s14   ;;  %s1168_s13 = sphi %s1208_s13, %s1348_s13   ;;  %s1164_s12 = sphi %s1206_s12, %s1347_s12  }
   0x3   : > { %s80_s17 = ssub.s32 %s1172_s14, %s1221_s16  ;;  %s83_s18 = sadd.s32 1, %s1168_s13 }
   0x4   : > { %p81_p0 = scmp.eq.s32.totalorder %s80_s17, 0  ;;  %p93_p1 = scmp.ne.s32.totalorder %s1168_s13, %s1164_s12 }
   0x5   : > { %p94_p2 = scmp.eq.s32.totalorder %s1219_s15, 1  ;;  %p959_p3 = scmp.ge.s32.totalorder %s1172_s14, 1 }
   0x6   : > { %s1229_s19 = scalar_select %p81_p0, %s1168_s13, %s83_s18  }
   0x7   : > { %p1231_p4 = por %p94_p2, %p93_p1  ;;  %p127_p5 = scmp.lt.s32.totalorder %s1172_s14, 3 }
   0x9   : > { %p128_p6 = pnand %p959_p3, %p127_p5 }
   0xa   : > { %s961_s23 = sshll.u32 (!%p128_p6), %s1219_s15, 7  ;;  %s1174_s24 = smov (!%p128_p6), 124  }
   0xb   : > { %131 = sbr.rel (%p128_p6) target bundleno = 399 (0x18f), region = 32  ;;  %s147_s27 = sshra.s32 (!%p128_p6), %s961_s23, 7 }
   0xc   : > { %s962_s28 = sshll.u32 (!%p128_p6), %s147_s27, 2  ;;  %s1175_s5 = smov (!%p128_p6), 127  }
   0xd   : > { %s1252_s4 = scalar_lea.vmem (!%p128_p6), %s1344_s2, %s962_s28  ;;  %s1176_s6 = smov (!%p128_p6), 120  }
   0xe   : > { %s1177_s7 = smov (!%p128_p6), 116   ;;  %s1178_s8 = smov (!%p128_p6), 112  }
   0xf   : > { %s1179_s9 = smov (!%p128_p6), 119   ;;  %s1180_s10 = smov (!%p128_p6), 108  }
  0x10   : > { %v1238_v0 = vld [vmem:[%s1342_s0] sm:$0xff]   ;;  %v1245_v1 = vld [vmem:[%s1342_s0 + $0x8] sm:$0xff]   ;;  %vm175_vm0 = vcmask 31744   ;;  %vm182_vm1 = vcmask 1041408   ;;  %s1181_s11 = smov 104   ;;  %s1182_s14 = smov 118  }
  0x11   : > { %167 = vrot.lane.b32.xlu0 %v1238_v0, %s1174_s24  ;;  %1048 = vmatprep.mubr.msk.bf16.mxu1 %vm175_vm0, %v1238_v0  ;;  %v151_v2 = vld [vmem:[%s1252_s4] sm:$0x33]  ;;  %v156_v4 = vld [vmem:[%s1252_s4] sm:$0xcc]  ;;  %v370_v8 = vld [vmem:[%s1252_s4 + $0xc] sm:$0x33] }
  0x12   : > { %v970_v3 = vcombine.low %v151_v2, %v151_v2  ;;  %v965_v5 = vcombine.low %v156_v4, %v156_v4  ;;  %1095 = vmatprep.subr.msk.bf16.mxu1 %vm182_vm1, %v151_v2  ;;  %v242_v6 = vsel %vm182_vm1, %v151_v2, 0  ;;  %v971_v7 = vcombine.high %v151_v2, %v151_v2  ;;  %s1184_s17 = smov 100   ;;  %s1185_s18 = smov 96   ;;  %v802_v17 = vld [vmem:[%s1343_s1] sm:$0xff]  ;;  %v805_v18 = vld [vmem:[%s1343_s1 + $0x18] sm:$0xff]  ;;  %v803_v19 = vld [vmem:[%s1343_s1 + $0x8] sm:$0xff] }
  0x13   : > { %1047 = vmatpush3.bf16.msra.mxu1 %v242_v6  ;;  %v382_v10 = vsel %vm182_vm1, %v370_v8, 0  ;;  %v979_v12 = vcombine.low %v370_v8, %v370_v8  ;;  %v980_v13 = vcombine.high %v370_v8, %v370_v8  ;;  %v985_v14 = vcombine.high %v156_v4, %v156_v4  ;;  %v804_v20 = vld [vmem:[%s1343_s1 + $0x10] sm:$0xff]  ;;  %v1149_v24 = vld [vmem:[%s1252_s4 + $0xc] ss:$0 sps:$4 sm:$0xcc]   ;;  %s142_s29 = sand.u32 1, %s1164_s12  }
  0x14   : > { %302 = vrot.lane.b32.xlu1 %v970_v3, %s1175_s5  ;;  %v174_v9 = vrot.slane %v965_v5, 2  ;;  %1097 = vmatprep.subr.msk.bf16.mxu1 %vm182_vm1, %v370_v8  ;;  %v1183_v16 = vmov 0   ;;  %vm306_vm2 = vcmask 1039360   ;;  %v445_v27 = vrot.slane %v1149_v24, 2  ;;  %s960_s30 = sshll.u32 %s142_s29, 4  ;;  %s995_s12 = sshll.u32 (%p1231_p4), %s1219_s15, 2 }
  0x15   : > { %169 = vrot.lane.b32.xlu0 %v1245_v1, %s1174_s24  ;;  %v662_v15 = vrot.slane %v985_v14, 2  ;;  %1140 = vset.pattern.permute.xlu1 %v1183_v16  ;;  %vm592_vm3 = vcmask 973824   ;;  %vm738_vm4 = vcmask 965632   ;;  %s144_s4 = scalar_lea.vmem [#allocation2], %s960_s30 }
  0x16   : > { %1094 = vmatprep.subr.msk.bf16.mxu0 %vm182_vm1, %v174_v9  ;;  %v184_v11 = vsel %vm182_vm1, %v174_v9, 0  ;;  %1049 = vmatmul.mubr.msk.bf16.vlgmr.msra.gmra.mxu1 %vm175_vm0, %v1245_v1  ;;  %v453_v32 = vsel %vm182_vm1, %v445_v27, 0 }
  0x17   : > { %1041 = vmatpush3.bf16.msra.mxu0 %v184_v11  ;;  %1059 = vmatpush3.bf16.msra.mxu1 %v382_v10 }
  0x18   : > { %304 = vrot.lane.b32.xlu1 %v971_v7, %s1175_s5  ;;  %1139 = vset.pattern.permute.xlu0 %v1183_v16 }
  0x19   : > { %293 = vrot.lane.b32.xlu0 %v1238_v0, %s1176_s6 }
  0x1c   : > { %295 = vrot.lane.b32.xlu1 %v1245_v1, %s1176_s6 }
  0x1d   : > { %371 = vrot.lane.b32.xlu0 %v1238_v0, %s1177_s7 }
  0x20   : > { %373 = vrot.lane.b32.xlu1 %v1245_v1, %s1177_s7  ;;  %s862_s7 = scalar_lea.vmem (%p1231_p4), %s1345_s3, %s995_s12 }
  0x21   : > { %438 = vrot.lane.b32.xlu0 %v1238_v0, %s1178_s8 }
  0x24   : > { %440 = vrot.lane.b32.xlu1 %v1245_v1, %s1178_s8 }
  0x25   : > { %517 = vrot.lane.b32.xlu0 %v979_v12, %s1175_s5 }
  0x28   : > { %519 = vrot.lane.b32.xlu1 %v980_v13, %s1175_s5 }
  0x29   : > { %588 = vrot.lane.b32.xlu0 %v970_v3, %s1179_s9 }
  0x2c   : > { %590 = vrot.lane.b32.xlu1 %v971_v7, %s1179_s9 }
  0x2d   : > { %508 = vrot.lane.b32.xlu0 %v1238_v0, %s1180_s10 }
  0x30   : > { %510 = vrot.lane.b32.xlu1 %v1245_v1, %s1180_s10 }
  0x31   : > { %584 = vrot.lane.b32.xlu0 %v1238_v0, %s1181_s11 }
  0x34   : > { %586 = vrot.lane.b32.xlu1 %v1245_v1, %s1181_s11 }
  0x35   : > { %663 = vrot.lane.b32.xlu0 %v174_v9, %s1179_s9 }
  0x38   : > { %665 = vrot.lane.b32.xlu1 %v662_v15, %s1179_s9 }
  0x39   : > { %734 = vrot.lane.b32.xlu0 %v970_v3, %s1182_s14 }
  0x3c   : > { %736 = vrot.lane.b32.xlu1 %v971_v7, %s1182_s14 }
  0x3d   : > { %656 = vrot.lane.b32.xlu0 %v1238_v0, %s1184_s17 }
  0x40   : > { %658 = vrot.lane.b32.xlu1 %v1245_v1, %s1184_s17 }
  0x41   : > { %730 = vrot.lane.b32.xlu0 %v1238_v0, %s1185_s18 }
  0x44   : > { %732 = vrot.lane.b32.xlu1 %v1245_v1, %s1185_s18 }
  0x45   : > { %808 = vperm.xlu0 %1139, %v802_v17  }
  0x48   : > { %813 = vperm.xlu1 %1140, %v803_v19  }
  0x49   : > { %823 = vperm.xlu0 %1139, %v805_v18  }
  0x4c   : > { %818 = vperm.xlu1 %1140, %v804_v20  }
  0x83   : > { %v168_v21 = vpop.permute.xlu0 %167 }
  0x84   : > { %1042 = vmatprep.mubr.msk.bf16.mxu0 %vm175_vm0, %v168_v21 }
  0x86   : > { %v303_v23 = vpop.permute.xlu1 %302 }
  0x87   : > { %v170_v22 = vpop.permute.xlu0 %169 }
  0x88   : > { %1043 = vmatmul.mubr.msk.bf16.vlgmr.msra.gmra.mxu0 %vm175_vm0, %v170_v22 }
  0x8a   : > { %v305_v26 = vpop.permute.xlu1 %304 }
  0x8b   : > { %v294_v25 = vpop.permute.xlu0 %293  ;;  %v307_v28 = vsel %vm306_vm2, %v303_v23, %v305_v26 }
  0x8c   : > { %1054 = vmatprep.mubr.msk.bf16.mxu0 %vm175_vm0, %v294_v25  ;;  %v315_v29 = vsel %vm182_vm1, %v307_v28, 0  ;;  %1096 = vmatprep.subr.msk.bf16.mxu0 %vm182_vm1, %v307_v28 }
  0x8d   : > { %1053 = vmatpush3.bf16.msra.mxu0 %v315_v29 }
  0x8e   : > { %v296_v31 = vpop.permute.xlu1 %295  ;;  %1098 = vmatprep.subr.msk.bf16.mxu0 %vm182_vm1, %v445_v27 }
  0x8f   : > { %v372_v30 = vpop.permute.xlu0 %371 }
  0x90   : > { %1060 = vmatprep.mubr.msk.bf16.mxu1 %vm175_vm0, %v372_v30  ;;  %1055 = vmatmul.mubr.msk.bf16.vlgmr.msra.gmra.mxu0 %vm175_vm0, %v296_v31 }
  0x91   : > { %1065 = vmatpush3.bf16.msra.mxu0 %v453_v32 }
  0x92   : > { %v374_v34 = vpop.permute.xlu1 %373 }
  0x93   : > { %v439_v33 = vpop.permute.xlu0 %438  ;;  %1061 = vmatmul.mubr.msk.bf16.vlgmr.msra.gmra.mxu1 %vm175_vm0, %v374_v34 }
  0x94   : > { %1066 = vmatprep.mubr.msk.bf16.mxu0 %vm175_vm0, %v439_v33 }
  0x96   : > { %v441_v36 = vpop.permute.xlu1 %440 }
  0x97   : > { %v518_v35 = vpop.permute.xlu0 %517 }
  0x98   : > { %1067 = vmatmul.mubr.msk.bf16.vlgmr.msra.gmra.mxu0 %vm175_vm0, %v441_v36 }
  0x9a   : > { %v520_v38 = vpop.permute.xlu1 %519 }
  0x9b   : > { %v589_v37 = vpop.permute.xlu0 %588  ;;  %v521_v39 = vsel %vm306_vm2, %v518_v35, %v520_v38 }
  0x9c   : > { %v529_v40 = vsel %vm182_vm1, %v521_v39, 0  ;;  %1099 = vmatprep.subr.msk.bf16.mxu1 %vm182_vm1, %v521_v39 }
  0x9d   : > { %1071 = vmatpush3.bf16.msra.mxu1 %v529_v40 }
  0x9e   : > { %v591_v42 = vpop.permute.xlu1 %590 }
  0x9f   : > { %v509_v41 = vpop.permute.xlu0 %508  ;;  %v593_v43 = vsel %vm592_vm3, %v589_v37, %v591_v42 }
  0xa0   : > { %1072 = vmatprep.mubr.msk.bf16.mxu1 %vm175_vm0, %v509_v41  ;;  %v601_v44 = vsel %vm182_vm1, %v593_v43, 0  ;;  %1100 = vmatprep.subr.msk.bf16.mxu0 %vm182_vm1, %v593_v43 }
  0xa1   : > { %1077 = vmatpush3.bf16.msra.mxu0 %v601_v44 }
  0xa2   : > { %v511_v46 = vpop.permute.xlu1 %510 }
  0xa3   : > { %v585_v45 = vpop.permute.xlu0 %584  ;;  %1073 = vmatmul.mubr.msk.bf16.vlgmr.msra.gmra.mxu1 %vm175_vm0, %v511_v46 }
  0xa4   : > { %1078 = vmatprep.mubr.msk.bf16.mxu0 %vm175_vm0, %v585_v45 }
  0xa6   : > { %v587_v48 = vpop.permute.xlu1 %586 }
  0xa7   : > { %v664_v47 = vpop.permute.xlu0 %663  ;;  %1079 = vmatmul.mubr.msk.bf16.vlgmr.msra.gmra.mxu0 %vm175_vm0, %v587_v48 }
  0xaa   : > { %v666_v50 = vpop.permute.xlu1 %665 }
  0xab   : > { %v735_v49 = vpop.permute.xlu0 %734  ;;  %v667_v51 = vsel %vm592_vm3, %v664_v47, %v666_v50 }
  0xac   : > { %v675_v52 = vsel %vm182_vm1, %v667_v51, 0  ;;  %1101 = vmatprep.subr.msk.bf16.mxu1 %vm182_vm1, %v667_v51 }
  0xad   : > { %1083 = vmatpush3.bf16.msra.mxu1 %v675_v52 }
  0xae   : > { %v737_v54 = vpop.permute.xlu1 %736 }
  0xaf   : > { %v657_v53 = vpop.permute.xlu0 %656  ;;  %v739_v55 = vsel %vm738_vm4, %v735_v49, %v737_v54 }
  0xb0   : > { %1084 = vmatprep.mubr.msk.bf16.mxu1 %vm175_vm0, %v657_v53  ;;  %v747_v56 = vsel %vm182_vm1, %v739_v55, 0  ;;  %1102 = vmatprep.subr.msk.bf16.mxu0 %vm182_vm1, %v739_v55 }
  0xb1   : > { %1089 = vmatpush3.bf16.msra.mxu0 %v747_v56 }
  0xb2   : > { %v659_v58 = vpop.permute.xlu1 %658 }
  0xb3   : > { %v731_v57 = vpop.permute.xlu0 %730  ;;  %1085 = vmatmul.mubr.msk.bf16.vlgmr.msra.gmra.mxu1 %vm175_vm0, %v659_v58 }
  0xb4   : > { %1090 = vmatprep.mubr.msk.bf16.mxu0 %vm175_vm0, %v731_v57 }
  0xb6   : > { %v733_v59 = vpop.permute.xlu1 %732 }
  0xb7   : > { %1091 = vmatmul.mubr.msk.bf16.vlgmr.msra.gmra.mxu0 %vm175_vm0, %v733_v59 }
  0xc0   : > { %v809_v49 = vpop.permute.xlu0 %808 }
  0xc3   : > { %v814_v37 = vpop.permute.xlu1 %813 }
  0xc7   : > { %v819_v56 = vpop.permute.xlu1 %818 }
  0xd6   : > { %v1050_v62 = vpop.f32.mrf.mxu1 }
  0xd8   : > { %v278_v0 = vpop.f32.mrf.mxu1 }
  0xda   : > { %v1051_v3 = vpop.f32.mrf.mxu1 }
  0xdc   : > { %v281_v6 = vpop.f32.mrf.mxu1 }
 0x148   : > { %v1044_v60 = vpop.f32.mrf.mxu0 }
 0x149   : > { %v287_v17 = vadd.f32 %v1050_v62, %v1044_v60 }
 0x14a   : > { %v220_v61 = vpop.f32.mrf.mxu0 }
 0x14b   : > { %v279_v20 = vadd.f32 %v278_v0, %v220_v61 }
 0x14c   : > { %v1045_v63 = vpop.f32.mrf.mxu0 }
 0x14d   : > { %v290_v22 = vadd.f32 %v1051_v3, %v1045_v63 }
 0x14e   : > { %v223_v1 = vpop.f32.mrf.mxu0 }
 0x14f   : > { %v282_v26 = vadd.f32 %v281_v6, %v223_v1 }
 0x150   : > { %v1056_v2 = vpop.f32.mrf.mxu0 }
 0x151   : > { %v368_v21 = vadd.f32 %v1056_v2, %v287_v17  ;;  %v824_v2 = vpop.permute.xlu0 %823 }
 0x152   : > { %v351_v4 = vpop.f32.mrf.mxu0 }
 0x153   : > { %v1062_v7 = vpop.f32.mrf.mxu1  ;;  %v366_v23 = vadd.f32 %v351_v4, %v279_v20 }
 0x154   : > { %v1057_v5 = vpop.f32.mrf.mxu0  ;;  %v435_v27 = vadd.f32 %v1062_v7, %v368_v21 }
 0x155   : > { %v418_v9 = vpop.f32.mrf.mxu1  ;;  %v369_v28 = vadd.f32 %v1057_v5, %v290_v22 }
 0x156   : > { %v354_v8 = vpop.f32.mrf.mxu0  ;;  %v433_v29 = vadd.f32 %v418_v9, %v366_v23 }
 0x157   : > { %v1063_v11 = vpop.f32.mrf.mxu1  ;;  %v367_v30 = vadd.f32 %v354_v8, %v282_v26 }
 0x158   : > { %v1068_v10 = vpop.f32.mrf.mxu0  ;;  %v436_v34 = vadd.f32 %v1063_v11, %v369_v28 }
 0x159   : > { %v421_v13 = vpop.f32.mrf.mxu1  ;;  %v506_v31 = vadd.f32 %v1068_v10, %v435_v27 }
 0x15a   : > { %v489_v12 = vpop.f32.mrf.mxu0  ;;  %v434_v39 = vadd.f32 %v421_v13, %v367_v30 }
 0x15b   : > { %v504_v35 = vadd.f32 %v489_v12, %v433_v29 }
 0x15c   : > { %v1069_v14 = vpop.f32.mrf.mxu0 }
 0x15d   : > { %v507_v40 = vadd.f32 %v1069_v14, %v436_v34 }
 0x15e   : > { %v492_v16 = vpop.f32.mrf.mxu0 }
 0x15f   : > { %v505_v45 = vadd.f32 %v492_v16, %v434_v39 }
 0x163   : > { %v1074_v15 = vpop.f32.mrf.mxu1 }
 0x164   : > { %v582_v36 = vadd.f32 %v1074_v15, %v506_v31 }
 0x165   : > { %v565_v18 = vpop.f32.mrf.mxu1 }
 0x166   : > { %v580_v41 = vadd.f32 %v565_v18, %v504_v35 }
 0x167   : > { %v1080_v19 = vpop.f32.mrf.mxu0  ;;  %v1075_v24 = vpop.f32.mrf.mxu1 }
 0x168   : > { %v654_v42 = vadd.f32 %v1080_v19, %v582_v36  ;;  %v583_v46 = vadd.f32 %v1075_v24, %v507_v40 }
 0x169   : > { %v637_v25 = vpop.f32.mrf.mxu0  ;;  %v568_v32 = vpop.f32.mrf.mxu1 }
 0x16a   : > { %v652_v47 = vadd.f32 %v637_v25, %v580_v41  ;;  %v581_v52 = vadd.f32 %v568_v32, %v505_v45 }
 0x16b   : > { %v1081_v33 = vpop.f32.mrf.mxu0 }
 0x16c   : > { %v655_v53 = vadd.f32 %v1081_v33, %v583_v46 }
 0x16d   : > { %v640_v43 = vpop.f32.mrf.mxu0 }
 0x16e   : > { %v653_v59 = vadd.f32 %v640_v43, %v581_v52 }
 0x173   : > { %v1086_v38 = vpop.f32.mrf.mxu1 }
 0x174   : > { %v728_v48 = vadd.f32 %v1086_v38, %v654_v42 }
 0x175   : > { %v711_v44 = vpop.f32.mrf.mxu1 }
 0x176   : > { %v726_v54 = vadd.f32 %v711_v44, %v652_v47 }
 0x177   : > { %v1087_v50 = vpop.f32.mrf.mxu1  ;;  %v1092_v51 = vpop.f32.mrf.mxu0 }
 0x178   : > { %v800_v55 = vadd.f32 %v1092_v51, %v728_v48  ;;  %v729_v60 = vadd.f32 %v1087_v50, %v655_v53 }
 0x179   : > { %v783_v57 = vpop.f32.mrf.mxu0  ;;  %v714_v58 = vpop.f32.mrf.mxu1 }
 0x17a   : > { %v798_v61 = vadd.f32 %v783_v57, %v726_v54  ;;  %v828_v63 = vadd.f32 %v819_v56, %v800_v55  ;;  %v727_v0 = vadd.f32 %v714_v58, %v653_v59 }
 0x17b   : > { %v1093_v62 = vpop.f32.mrf.mxu0 }
 0x17c   : > { %v801_v1 = vadd.f32 %v1093_v62, %v729_v60  ;;  %v826_v4 = vadd.f32 %v809_v49, %v798_v61  ;;  %v832_v7 = vmax.f32 %v828_v63, 0.0 }
 0x17d   : > { %v786_v3 = vpop.f32.mrf.mxu0 }
 0x17e   : > { %v829_v5 = vadd.f32 %v824_v2, %v801_v1  ;;  %v799_v6 = vadd.f32 %v786_v3, %v727_v0  ;;  %v830_v10 = vmax.f32 %v826_v4, 0.0 }
 0x180   : > { %v833_v8 = vmax.f32 %v829_v5, 0.0  ;;  %v827_v9 = vadd.f32 %v814_v37, %v799_v6 }
 0x182   : > { %v1010_v11 = vpack.c.bf16 %v833_v8, %v832_v7  ;;  %v831_v12 = vmax.f32 %v827_v9, 0.0  ;;  %860 = sbr.rel (!%p1231_p4) target bundleno = 399 (0x18f), region = 36 }
 0x184   : > { %1012 = vst [vmem:[%s144_s4 + $0x8] sm:$0xff] %v1010_v11   ;;  %v1005_v13 = vpack.c.bf16 %v831_v12, %v830_v10 }
 0x186   : > { %1006 = vst [vmem:[%s144_s4] sm:$0xff] %v1005_v13  }
 0x18b   : > { %v883_v16 = vld [vmem:[%s144_s4 + $0x8] sm:$0xf]  ;;  %v885_v17 = vld [vmem:[%s144_s4 + $0xc] sm:$0xf] }
 0x18c   : > { %884 = vst [vmem:[%s862_s7 + $0x10] sm:$0xf] %v883_v16  ;;  %886 = vst [vmem:[%s862_s7 + $0x18] sm:$0xf] %v885_v17 }
 0x18d   : > { %v879_v14 = vld [vmem:[%s144_s4] sm:$0xf]  ;;  %v881_v15 = vld [vmem:[%s144_s4 + $0x4] sm:$0xf] }
 0x18e   : > { %880 = vst [vmem:[%s862_s7] sm:$0xf] %v879_v14  ;;  %882 = vst [vmem:[%s862_s7 + $0x8] sm:$0xf] %v881_v15 }
 0x18f PF: > { %p10_p7 = scmp.ge.s32.totalorder %s1221_s16, 4   ;;  %s1347_s12 = smov %s1168_s13 }
 0x190   : > { %s1348_s13 = smov %s1229_s19  ;;  %s1349_s14 = smov %s1221_s16 }
 0x191   :  { %12 = sbr.rel (!%p10_p7) target bundleno = 2 (0x2), region = 101 }

// kernel: qa_qcae_forward.6
= control target key start
LH: loop header
LB: loop body
LE: loop exit
PB: predicated region body
PF: predicated region fallthrough
CT: control target
= control target key end

     0   :  { %v1252_v1 = vmov 0.0   ;;  %vm1253_vm0 = vmmov 0   ;;  %s1254_s16 = smov 96   ;;  %s1255_s23 = smov 127   ;;  %v1260_v19 = vmov 0   ;;  %vm64_vm1 = vcmask 261120   ;;  %s1594_s0 = inlined_call_operand.vmem [shape: bf16[40,288], index: 0, kind: input, shape index: {}]   ;;  %s1595_s2 = inlined_call_operand.vmem [shape: bf16[128,256], index: 2, kind: input, shape index: {}]   ;;  %s1596_s1 = inlined_call_operand.vmem [shape: f32[40,1], index: 1, kind: input, shape index: {}]   ;;  %s1597_s3 = inlined_call_operand.vmem [shape: bf16[40,128], index: 3, kind: output, shape index: {}]  }
   0x1   :  { %v1284_v0 = vld [vmem:[%s1594_s0 + $0x18] ss:$12 sps:$4 sm:$0xff]   ;;  %1208 = vmatprep.subr.bf16.mxu1 %v1252_v1  ;;  %1064 = vmatprep.subr.bf16.mxu0 %v1252_v1  ;;  %v1291_v2 = vld [vmem:[%s1594_s0] ss:$12 sps:$4 sm:$0xff]   ;;  %v1302_v3 = vld [vmem:[%s1594_s0 + $0x30] ss:$0 sps:$4 sm:$0xff]  }
   0x2   :  { %1068 = vmatprep.mubr.msk.bf16.mxu0 %vm1253_vm0, %v1252_v1  ;;  %1072 = vmatprep.mubr.msk.bf16.mxu1 %vm1253_vm0, %v1252_v1  ;;  %v1309_v4 = vld [vmem:[%s1595_s2 + $0x10] ss:$8 sps:$4 sm:$0xff]   ;;  %v1228_v5 = vld [vmem:[%s1595_s2 + $0x14] ss:$8 sps:$4 sm:$0xff]   ;;  %v1321_v6 = vld [vmem:[%s1595_s2] ss:$8 sps:$4 sm:$0xff]  }
   0x3   :  { %48 = vrot.lane.b32.xlu0 %v1284_v0, %s1254_s16  ;;  %46 = vrot.lane.b32.xlu1 %v1291_v2, %s1254_s16  ;;  %v1231_v7 = vld [vmem:[%s1595_s2 + $0x4] ss:$8 sps:$4 sm:$0xff]   ;;  %v1241_v8 = vld [vmem:[%s1595_s2 + $0x30] ss:$8 sps:$4 sm:$0xff]   ;;  %s1256_s30 = smov 64   ;;  %s1257_s6 = smov 32  }
   0x4   :  { %1210 = vmatpush3.bf16.msra.mxu1 %v1241_v8  ;;  %1065 = vmatpush3.bf16.msra.mxu0 %v1241_v8  ;;  %v1246_v9 = vld [vmem:[%s1595_s2 + $0x20] ss:$8 sps:$4 sm:$0xff]   ;;  %v1353_v10 = vld [vmem:[%s1595_s2 + $0x50] ss:$8 sps:$4 sm:$0xff]   ;;  %v1234_v11 = vld [vmem:[%s1595_s2 + $0x54] ss:$8 sps:$4 sm:$0xff]  }
   0x5   :  { %1209 = vmatprep.subr.bf16.mxu1 %v1252_v1  ;;  %1066 = vmatprep.subr.bf16.mxu0 %v1252_v1  ;;  %s1258_s11 = smov 123   ;;  %v1367_v12 = vld [vmem:[%s1595_s2 + $0x40] ss:$8 sps:$4 sm:$0xff]   ;;  %v1237_v13 = vld [vmem:[%s1595_s2 + $0x44] ss:$8 sps:$4 sm:$0xff]   ;;  %s1259_s25 = smov 122  }
   0x6   :  { %v1379_v14 = vld [vmem:[%s1594_s0 + $0x4] ss:$12 sps:$4 sm:$0xff]   ;;  %v1386_v15 = vld [vmem:[%s1594_s0 + $0x1c] ss:$12 sps:$4 sm:$0xff]   ;;  %v1395_v16 = vld [vmem:[%s1594_s0 + $0x34] ss:$0 sps:$4 sm:$0xff]   ;;  %1222 = vset.pattern.permute.xlu1 %v1260_v19  ;;  %1221 = vset.pattern.permute.xlu0 %v1260_v19 }
   0x7   :  { %50 = vrot.lane.b32.xlu0 %v1302_v3, %s1254_s16  ;;  %223 = vrot.lane.b32.xlu1 %v1309_v4, %s1255_s23  ;;  %v1243_v17 = vld [vmem:[%s1595_s2 + $0x34] ss:$8 sps:$4 sm:$0xff]   ;;  %v1244_v18 = vld [vmem:[%s1595_s2 + $0x24] ss:$8 sps:$4 sm:$0xff]   ;;  %vm227_vm2 = vcmask 1039360   ;;  %vm606_vm3 = vcmask 1006592  }
   0x8   :  { %1211 = vmatpush3.bf16.msra.mxu1 %v1246_v9  ;;  %1067 = vmatpush3.bf16.msra.mxu0 %v1246_v9  ;;  %v876_v20 = vld [vmem:[%s1596_s1] sm:$0xff]  ;;  %v877_v21 = vld [vmem:[%s1596_s1 + $0x8] sm:$0xff]  ;;  %v878_v22 = vld [vmem:[%s1596_s1 + $0x10] sm:$0xff]  ;;  %vm801_vm4 = vcmask 998400  }
   0x9   :  { %1080 = vmatprep.subr.bf16.mxu1 %v1252_v1  ;;  %1096 = vmatprep.subr.bf16.mxu0 %v1252_v1  ;;  %v879_v23 = vld [vmem:[%s1596_s1 + $0x18] sm:$0xff]  ;;  %v880_v24 = vld [vmem:[%s1596_s1 + $0x20] sm:$0xff] }
   0xa   :  { %v1247_v35 = vld [vmem:[%s1595_s2 + $0x70] ss:$8 sps:$4 sm:$0xff]   ;;  %v1248_v38 = vld [vmem:[%s1595_s2 + $0x60] ss:$8 sps:$4 sm:$0xff]  }
   0xb   :  { %225 = vrot.lane.b32.xlu0 %v1228_v5, %s1255_s23  ;;  %219 = vrot.lane.b32.xlu1 %v1321_v6, %s1255_s23 }
   0xf   :  { %221 = vrot.lane.b32.xlu0 %v1231_v7, %s1255_s23  ;;  %207 = vrot.lane.b32.xlu1 %v1291_v2, %s1256_s30 }
  0x13   :  { %209 = vrot.lane.b32.xlu0 %v1284_v0, %s1256_s30  ;;  %211 = vrot.lane.b32.xlu1 %v1302_v3, %s1256_s30 }
  0x17   :  { %306 = vrot.lane.b32.xlu0 %v1291_v2, %s1257_s6  ;;  %308 = vrot.lane.b32.xlu1 %v1284_v0, %s1257_s6 }
  0x1b   :  { %310 = vrot.lane.b32.xlu0 %v1302_v3, %s1257_s6  ;;  %514 = vrot.lane.b32.xlu1 %v1353_v10, %s1255_s23 }
  0x1f   :  { %516 = vrot.lane.b32.xlu0 %v1234_v11, %s1255_s23  ;;  %602 = vrot.lane.b32.xlu1 %v1309_v4, %s1258_s11  ;;  %v1250_v11 = vld [vmem:[%s1594_s0 + $0x20] ss:$12 sps:$4 sm:$0xff]  }
  0x23   :  { %604 = vrot.lane.b32.xlu0 %v1228_v5, %s1258_s11  ;;  %510 = vrot.lane.b32.xlu1 %v1367_v12, %s1255_s23 }
  0x27   :  { %512 = vrot.lane.b32.xlu0 %v1237_v13, %s1255_s23  ;;  %598 = vrot.lane.b32.xlu1 %v1321_v6, %s1258_s11  ;;  %v1251_v13 = vld [vmem:[%s1594_s0 + $0x38] ss:$0 sps:$4 sm:$0xff]  }
  0x2b   :  { %600 = vrot.lane.b32.xlu0 %v1231_v7, %s1258_s11  ;;  %498 = vrot.lane.b32.xlu1 %v1379_v14, %s1254_s16 }
  0x2f   :  { %592 = vrot.lane.b32.xlu0 %v1379_v14, %s1256_s30  ;;  %500 = vrot.lane.b32.xlu1 %v1386_v15, %s1254_s16 }
  0x33   :  { %594 = vrot.lane.b32.xlu0 %v1386_v15, %s1256_s30  ;;  %502 = vrot.lane.b32.xlu1 %v1395_v16, %s1254_s16 }
  0x37   :  { %697 = vrot.lane.b32.xlu0 %v1241_v8, %s1258_s11  ;;  %699 = vrot.lane.b32.xlu1 %v1243_v17, %s1258_s11 }
  0x3b   :  { %596 = vrot.lane.b32.xlu0 %v1395_v16, %s1256_s30  ;;  %797 = vrot.lane.b32.xlu1 %v1309_v4, %s1259_s25 }
  0x3f   :  { %799 = vrot.lane.b32.xlu0 %v1228_v5, %s1259_s25  ;;  %693 = vrot.lane.b32.xlu1 %v1246_v9, %s1258_s11  ;;  %v1249_v9 = vld [vmem:[%s1594_s0 + $0x8] ss:$12 sps:$4 sm:$0xff]  }
  0x43   :  { %695 = vrot.lane.b32.xlu0 %v1244_v18, %s1258_s11  ;;  %793 = vrot.lane.b32.xlu1 %v1321_v6, %s1259_s25 }
  0x47   :  { %795 = vrot.lane.b32.xlu0 %v1231_v7, %s1259_s25  ;;  %681 = vrot.lane.b32.xlu1 %v1379_v14, %s1257_s6 }
  0x4b   :  { %683 = vrot.lane.b32.xlu0 %v1386_v15, %s1257_s6  ;;  %685 = vrot.lane.b32.xlu1 %v1395_v16, %s1257_s6 }
  0x4f   :  { %883 = vperm.xlu0 %1221, %v876_v20   ;;  %888 = vperm.xlu1 %1222, %v877_v21  }
  0x53   :  { %893 = vperm.xlu1 %1222, %v878_v22   ;;  %898 = vperm.xlu0 %1221, %v879_v23  }
  0x57   :  { %903 = vperm.xlu1 %1222, %v880_v24  }
  0x75   :  { %v49_v25 = vpop.permute.xlu0 %48  ;;  %v47_v26 = vpop.permute.xlu1 %46 }
  0x76   :  { %1073 = vmatmul.mubr.msk.bf16.vlgmr.msra.gmra.mxu1 %vm64_vm1, %v49_v25  ;;  %1069 = vmatmul.mubr.msk.bf16.vlgmr.msra.gmra.mxu0 %vm64_vm1, %v47_v26 }
  0x77   :  { %1081 = vmatpush3.bf16.msra.mxu1 %v1309_v4  ;;  %1076 = vmatprep.mubr.msk.bf16.mxu1 %vm1253_vm0, %v1252_v1 }
  0x78   :  { %1082 = vmatprep.subr.bf16.mxu1 %v1252_v1  ;;  %1100 = vmatprep.mubr.msk.bf16.mxu0 %vm1253_vm0, %v1252_v1 }
  0x79   :  { %v51_v27 = vpop.permute.xlu0 %50  ;;  %v224_v28 = vpop.permute.xlu1 %223 }
  0x7b   :  { %1083 = vmatpush3.bf16.msra.mxu1 %v1321_v6 }
  0x7c   :  { %1112 = vmatprep.subr.bf16.mxu1 %v1252_v1 }
  0x7d   :  { %v226_v29 = vpop.permute.xlu0 %225  ;;  %v220_v31 = vpop.permute.xlu1 %219 }
  0x7e   :  { %v229_v30 = vsel %vm227_vm2, %v224_v28, %v226_v29  ;;  %1077 = vmatmul.mubr.msk.bf16.gmra.mxu1 %vm64_vm1, %v51_v27 }
  0x7f   :  { %1097 = vmatpush3.bf16.msra.mxu0 %v229_v30  ;;  %1084 = vmatprep.mubr.msk.bf16.mxu1 %vm1253_vm0, %v1252_v1 }
  0x80   :  { %1098 = vmatprep.subr.bf16.mxu0 %v1252_v1 }
  0x81   :  { %v222_v32 = vpop.permute.xlu0 %221  ;;  %v208_v34 = vpop.permute.xlu1 %207 }
  0x82   :  { %v228_v33 = vsel %vm227_vm2, %v220_v31, %v222_v32 }
  0x83   :  { %1099 = vmatpush3.bf16.msra.mxu0 %v228_v33 }
  0x84   :  { %1128 = vmatprep.subr.bf16.mxu0 %v1252_v1 }
  0x85   :  { %v210_v36 = vpop.permute.xlu0 %209  ;;  %v212_v37 = vpop.permute.xlu1 %211 }
  0x86   :  { %1085 = vmatmul.mubr.msk.bf16.vlgmr.msra.gmra.mxu1 %vm64_vm1, %v1291_v2  ;;  %1101 = vmatmul.mubr.msk.bf16.vlgmr.msra.gmra.mxu0 %vm64_vm1, %v208_v34 }
  0x87   :  { %1113 = vmatpush3.bf16.msra.mxu1 %v1353_v10  ;;  %1129 = vmatpush3.bf16.msra.mxu0 %v1247_v35 }
  0x88   :  { %1088 = vmatprep.mubr.msk.bf16.mxu1 %vm1253_vm0, %v1252_v1  ;;  %1104 = vmatprep.mubr.msk.bf16.mxu0 %vm1253_vm0, %v1252_v1 }
  0x89   :  { %v307_v39 = vpop.permute.xlu0 %306  ;;  %1114 = vmatprep.subr.bf16.mxu1 %v1252_v1  ;;  %1130 = vmatprep.subr.bf16.mxu0 %v1252_v1  ;;  %v309_v40 = vpop.permute.xlu1 %308 }
  0x8b   :  { %1115 = vmatpush3.bf16.msra.mxu1 %v1367_v12  ;;  %1131 = vmatpush3.bf16.msra.mxu0 %v1248_v38 }
  0x8c   :  { %1144 = vmatprep.subr.bf16.mxu1 %v1252_v1  ;;  %1160 = vmatprep.subr.bf16.mxu0 %v1252_v1 }
  0x8d   :  { %v311_v41 = vpop.permute.xlu0 %310  ;;  %v515_v42 = vpop.permute.xlu1 %514 }
  0x8e   :  { %1105 = vmatmul.mubr.msk.bf16.gmra.mxu0 %vm64_vm1, %v210_v36  ;;  %1089 = vmatmul.mubr.msk.bf16.gmra.mxu1 %vm64_vm1, %v1284_v0 }
  0x8f   :  { %1092 = vmatprep.mubr.msk.bf16.mxu1 %vm1253_vm0, %v1252_v1  ;;  %1108 = vmatprep.mubr.msk.bf16.mxu0 %vm1253_vm0, %v1252_v1 }
  0x91   :  { %v517_v43 = vpop.permute.xlu0 %516  ;;  %v603_v44 = vpop.permute.xlu1 %602 }
  0x92   :  { %v519_v49 = vsel %vm227_vm2, %v515_v42, %v517_v43 }
  0x95   :  { %v605_v45 = vpop.permute.xlu0 %604  ;;  %v511_v46 = vpop.permute.xlu1 %510 }
  0x96   :  { %1109 = vmatmul.mubr.msk.bf16.gmra.mxu0 %vm64_vm1, %v212_v37  ;;  %1093 = vmatmul.mubr.msk.bf16.gmra.mxu1 %vm64_vm1, %v1302_v3  ;;  %v608_v50 = vsel %vm606_vm3, %v603_v44, %v605_v45 }
  0x97   :  { %1116 = vmatprep.mubr.msk.bf16.mxu1 %vm1253_vm0, %v1252_v1  ;;  %1132 = vmatprep.mubr.msk.bf16.mxu0 %vm1253_vm0, %v1252_v1 }
  0x99   :  { %v513_v47 = vpop.permute.xlu0 %512  ;;  %v599_v48 = vpop.permute.xlu1 %598 }
  0x9a   :  { %v518_v53 = vsel %vm227_vm2, %v511_v46, %v513_v47 }
  0x9d   :  { %v601_v51 = vpop.permute.xlu0 %600  ;;  %v499_v52 = vpop.permute.xlu1 %498 }
  0x9e   :  { %1133 = vmatmul.mubr.msk.bf16.vlgmr.msra.gmra.mxu0 %vm64_vm1, %v1379_v14  ;;  %1117 = vmatmul.mubr.msk.bf16.vlgmr.msra.gmra.mxu1 %vm64_vm1, %v307_v39  ;;  %v607_v54 = vsel %vm606_vm3, %v599_v48, %v601_v51 }
  0x9f   :  { %1161 = vmatpush3.bf16.msra.mxu0 %v608_v50  ;;  %1145 = vmatpush3.bf16.msra.mxu1 %v519_v49 }
  0xa0   :  { %1146 = vmatprep.subr.bf16.mxu1 %v1252_v1  ;;  %1162 = vmatprep.subr.bf16.mxu0 %v1252_v1 }
  0xa1   :  { %1120 = vmatprep.mubr.msk.bf16.mxu1 %vm1253_vm0, %v1252_v1  ;;  %1136 = vmatprep.mubr.msk.bf16.mxu0 %vm1253_vm0, %v1252_v1  ;;  %v593_v55 = vpop.permute.xlu0 %592  ;;  %v501_v56 = vpop.permute.xlu1 %500 }
  0xa3   :  { %1147 = vmatpush3.bf16.msra.mxu1 %v518_v53  ;;  %1163 = vmatpush3.bf16.msra.mxu0 %v607_v54 }
  0xa4   :  { %1176 = vmatprep.subr.bf16.mxu1 %v1252_v1  ;;  %1192 = vmatprep.subr.bf16.mxu0 %v1252_v1 }
  0xa5   :  { %v595_v57 = vpop.permute.xlu0 %594  ;;  %v503_v58 = vpop.permute.xlu1 %502 }
  0xa6   :  { %1137 = vmatmul.mubr.msk.bf16.gmra.mxu0 %vm64_vm1, %v1386_v15  ;;  %1121 = vmatmul.mubr.msk.bf16.gmra.mxu1 %vm64_vm1, %v309_v40 }
  0xa7   :  { %1124 = vmatprep.mubr.msk.bf16.mxu1 %vm1253_vm0, %v1252_v1  ;;  %1140 = vmatprep.mubr.msk.bf16.mxu0 %vm1253_vm0, %v1252_v1 }
  0xa9   :  { %v698_v59 = vpop.permute.xlu0 %697  ;;  %v700_v60 = vpop.permute.xlu1 %699 }
  0xaa   :  { %v702_v2 = vsel %vm606_vm3, %v698_v59, %v700_v60 }
  0xad   :  { %v597_v61 = vpop.permute.xlu0 %596  ;;  %v798_v62 = vpop.permute.xlu1 %797 }
  0xae   :  { %1141 = vmatmul.mubr.msk.bf16.gmra.mxu0 %vm64_vm1, %v1395_v16  ;;  %1125 = vmatmul.mubr.msk.bf16.gmra.mxu1 %vm64_vm1, %v311_v41 }
  0xaf   :  { %1148 = vmatprep.mubr.msk.bf16.mxu1 %vm1253_vm0, %v1252_v1  ;;  %1164 = vmatprep.mubr.msk.bf16.mxu0 %vm1253_vm0, %v1252_v1 }
  0xb1   :  { %v800_v63 = vpop.permute.xlu0 %799  ;;  %v694_v0 = vpop.permute.xlu1 %693 }
  0xb2   :  { %v803_v3 = vsel %vm801_vm4, %v798_v62, %v800_v63 }
  0xb5   :  { %v696_v4 = vpop.permute.xlu0 %695  ;;  %v794_v5 = vpop.permute.xlu1 %793 }
  0xb6   :  { %1165 = vmatmul.mubr.msk.bf16.vlgmr.msra.gmra.mxu0 %vm64_vm1, %v593_v55  ;;  %1149 = vmatmul.mubr.msk.bf16.vlgmr.msra.gmra.mxu1 %vm64_vm1, %v499_v52  ;;  %v701_v6 = vsel %vm606_vm3, %v694_v0, %v696_v4 }
  0xb7   :  { %1177 = vmatpush3.bf16.msra.mxu1 %v702_v2  ;;  %1193 = vmatpush3.bf16.msra.mxu0 %v803_v3 }
  0xb8   :  { %1152 = vmatprep.mubr.msk.bf16.mxu1 %vm1253_vm0, %v1252_v1  ;;  %1168 = vmatprep.mubr.msk.bf16.mxu0 %vm1253_vm0, %v1252_v1 }
  0xb9   :  { %1178 = vmatprep.subr.bf16.mxu1 %v1252_v1  ;;  %v796_v7 = vpop.permute.xlu0 %795  ;;  %1194 = vmatprep.subr.bf16.mxu0 %v1252_v1  ;;  %v682_v10 = vpop.permute.xlu1 %681 }
  0xba   :  { %v802_v8 = vsel %vm801_vm4, %v794_v5, %v796_v7 }
  0xbb   :  { %1179 = vmatpush3.bf16.msra.mxu1 %v701_v6  ;;  %1195 = vmatpush3.bf16.msra.mxu0 %v802_v8 }
  0xbd   :  { %v684_v12 = vpop.permute.xlu0 %683  ;;  %v686_v14 = vpop.permute.xlu1 %685 }
  0xbe   :  { %1169 = vmatmul.mubr.msk.bf16.gmra.mxu0 %vm64_vm1, %v595_v57  ;;  %1153 = vmatmul.mubr.msk.bf16.gmra.mxu1 %vm64_vm1, %v501_v56 }
  0xbf   :  { %1156 = vmatprep.mubr.msk.bf16.mxu1 %vm1253_vm0, %v1252_v1  ;;  %1172 = vmatprep.mubr.msk.bf16.mxu0 %vm1253_vm0, %v1252_v1 }
  0xc6   :  { %1157 = vmatmul.mubr.msk.bf16.gmra.mxu1 %vm64_vm1, %v503_v58  ;;  %1173 = vmatmul.mubr.msk.bf16.gmra.mxu0 %vm64_vm1, %v597_v61 }
  0xc7   :  { %1196 = vmatprep.mubr.msk.bf16.mxu0 %vm1253_vm0, %v1252_v1  ;;  %1180 = vmatprep.mubr.msk.bf16.mxu1 %vm1253_vm0, %v1252_v1 }
  0xce   :  { %1181 = vmatmul.mubr.msk.bf16.vlgmr.msra.gmra.mxu1 %vm64_vm1, %v682_v10  ;;  %1197 = vmatmul.mubr.msk.bf16.vlgmr.msra.gmra.mxu0 %vm64_vm1, %v1249_v9 }
  0xcf   :  { %1184 = vmatprep.mubr.msk.bf16.mxu1 %vm1253_vm0, %v1252_v1  ;;  %1200 = vmatprep.mubr.msk.bf16.mxu0 %vm1253_vm0, %v1252_v1 }
  0xd6   :  { %1185 = vmatmul.mubr.msk.bf16.gmra.mxu1 %vm64_vm1, %v684_v12  ;;  %1201 = vmatmul.mubr.msk.bf16.gmra.mxu0 %vm64_vm1, %v1250_v11 }
  0xd7   :  { %1204 = vmatprep.mubr.msk.bf16.mxu0 %vm1253_vm0, %v1252_v1  ;;  %1188 = vmatprep.mubr.msk.bf16.mxu1 %vm1253_vm0, %v1252_v1 }
  0xde   :  { %1189 = vmatmul.mubr.msk.bf16.gmra.mxu1 %vm64_vm1, %v686_v14  ;;  %1205 = vmatmul.mubr.msk.bf16.gmra.mxu0 %vm64_vm1, %v1251_v13 }
 0x136   :  { %v116_v15 = vpop.f32.mrf.mxu1  ;;  %v108_v16 = vpop.f32.mrf.mxu0 }
 0x138   :  { %v1074_v17 = vpop.f32.mrf.mxu1  ;;  %v1070_v18 = vpop.f32.mrf.mxu0 }
 0x13a   :  { %v1558_v19 = vpop.f32.mrf.mxu1  ;;  %v1560_v20 = vpop.f32.mrf.mxu0 }
 0x13c   :  { %v1075_v21 = vpop.f32.mrf.mxu1  ;;  %v1071_v22 = vpop.f32.mrf.mxu0 }
 0x13e   :  { %v1562_v1 = vpop.f32.mrf.mxu1 }
 0x140   :  { %v1078_v23 = vpop.f32.mrf.mxu1 }
 0x142   :  { %v127_v24 = vpop.f32.mrf.mxu1 }
 0x144   :  { %v1079_v25 = vpop.f32.mrf.mxu1 }
 0x146   :  { %v185_v26 = vpop.f32.mrf.mxu1  ;;  %v275_v27 = vpop.f32.mrf.mxu0 }
 0x147   :  { %v186_v28 = vadd.f32 %v185_v26, %v108_v16 }
 0x148   :  { %v1086_v29 = vpop.f32.mrf.mxu1  ;;  %v1102_v30 = vpop.f32.mrf.mxu0 }
 0x149   :  { %v297_v31 = vadd.f32 %v275_v27, %v186_v28 }
 0x14a   :  { %v188_v32 = vpop.f32.mrf.mxu1  ;;  %v1564_v33 = vpop.f32.mrf.mxu0 }
 0x14b   :  { %v189_v29 = vadd.f32 %v188_v32, %v1560_v20 }
 0x14c   :  { %v1087_v34 = vpop.f32.mrf.mxu1  ;;  %v1103_v35 = vpop.f32.mrf.mxu0 }
 0x14e   :  { %v193_v36 = vpop.f32.mrf.mxu1  ;;  %v283_v37 = vpop.f32.mrf.mxu0 }
 0x14f   :  { %v194_v38 = vadd.f32 %v193_v36, %v116_v15 }
 0x150   :  { %v1090_v39 = vpop.f32.mrf.mxu1  ;;  %v1106_v40 = vpop.f32.mrf.mxu0 }
 0x151   :  { %v1566_v41 = vadd.f32 %v283_v37, %v194_v38  ;;  %v298_v38 = vadd.f32 %v1564_v33, %v189_v29 }
 0x152   :  { %v196_v42 = vpop.f32.mrf.mxu1  ;;  %v1568_v43 = vpop.f32.mrf.mxu0 }
 0x154   :  { %v1091_v44 = vpop.f32.mrf.mxu1  ;;  %v1107_v45 = vpop.f32.mrf.mxu0 }
 0x156   :  { %v1570_v46 = vpop.f32.mrf.mxu1  ;;  %v1572_v47 = vpop.f32.mrf.mxu0 }
 0x157   :  { %v202_v33 = vadd.f32 %v1570_v46, %v1562_v1 }
 0x158   :  { %v1094_v48 = vpop.f32.mrf.mxu1  ;;  %v1110_v49 = vpop.f32.mrf.mxu0 }
 0x159   :  { %v197_v48 = vadd.f32 %v196_v42, %v1558_v19 }
 0x15a   :  { %v204_v50 = vpop.f32.mrf.mxu1  ;;  %v294_v51 = vpop.f32.mrf.mxu0 }
 0x15c   :  { %v1095_v52 = vpop.f32.mrf.mxu1  ;;  %v1111_v53 = vpop.f32.mrf.mxu0 }
 0x15e   :  { %v367_v54 = vpop.f32.mrf.mxu1  ;;  %v471_v55 = vpop.f32.mrf.mxu0 }
 0x15f   :  { %v389_v35 = vadd.f32 %v367_v54, %v297_v31  ;;  %v300_v31 = vadd.f32 %v1568_v43, %v197_v48  ;;  %v884_v43 = vpop.permute.xlu0 %883 }
 0x160   :  { %v1118_v56 = vpop.f32.mrf.mxu1  ;;  %v1134_v57 = vpop.f32.mrf.mxu0 }
 0x161   :  { %v493_v44 = vadd.f32 %v471_v55, %v389_v35 }
 0x162   :  { %v370_v58 = vpop.f32.mrf.mxu1  ;;  %v474_v59 = vpop.f32.mrf.mxu0 }
 0x163   :  { %v390_v45 = vadd.f32 %v370_v58, %v298_v38 }
 0x164   :  { %v1119_v60 = vpop.f32.mrf.mxu1  ;;  %v1135_v61 = vpop.f32.mrf.mxu0 }
 0x165   :  { %v494_v56 = vadd.f32 %v474_v59, %v390_v45  ;;  %v301_v59 = vadd.f32 %v1572_v47, %v202_v33 }
 0x166   :  { %v375_v62 = vpop.f32.mrf.mxu1  ;;  %v479_v63 = vpop.f32.mrf.mxu0 }
 0x167   :  { %v391_v20 = vadd.f32 %v375_v62, %v1566_v41 }
 0x168   :  { %v1122_v0 = vpop.f32.mrf.mxu1  ;;  %v1138_v2 = vpop.f32.mrf.mxu0 }
 0x169   :  { %v495_v42 = vadd.f32 %v479_v63, %v391_v20  ;;  %v889_v63 = vpop.permute.xlu1 %888 }
 0x16a   :  { %v378_v3 = vpop.f32.mrf.mxu1  ;;  %v482_v4 = vpop.f32.mrf.mxu0 }
 0x16b   :  { %v392_v58 = vadd.f32 %v378_v3, %v300_v31 }
 0x16c   :  { %v1123_v5 = vpop.f32.mrf.mxu1  ;;  %v1139_v6 = vpop.f32.mrf.mxu0 }
 0x16d   :  { %v496_v6 = vadd.f32 %v482_v4, %v392_v58 }
 0x16e   :  { %v383_v7 = vpop.f32.mrf.mxu1  ;;  %v1574_v8 = vpop.f32.mrf.mxu0 }
 0x170   :  { %v1126_v9 = vpop.f32.mrf.mxu1  ;;  %v1142_v10 = vpop.f32.mrf.mxu0 }
 0x172   :  { %v386_v11 = vpop.f32.mrf.mxu1  ;;  %v490_v12 = vpop.f32.mrf.mxu0 }
 0x173   :  { %v393_v11 = vadd.f32 %v383_v7, %v301_v59 }
 0x174   :  { %v1127_v13 = vpop.f32.mrf.mxu1  ;;  %v1143_v14 = vpop.f32.mrf.mxu0 }
 0x175   :  { %v497_v47 = vadd.f32 %v1574_v8, %v393_v11 }
 0x176   :  { %v565_v15 = vpop.f32.mrf.mxu1  ;;  %v654_v16 = vpop.f32.mrf.mxu0 }
 0x177   :  { %v587_v51 = vadd.f32 %v565_v15, %v493_v44 }
 0x178   :  { %v1150_v17 = vpop.f32.mrf.mxu1  ;;  %v1166_v18 = vpop.f32.mrf.mxu0 }
 0x179   :  { %v676_v57 = vadd.f32 %v654_v16, %v587_v51 }
 0x17a   :  { %v568_v21 = vpop.f32.mrf.mxu1  ;;  %v657_v22 = vpop.f32.mrf.mxu0 }
 0x17b   :  { %v588_v55 = vadd.f32 %v568_v21, %v494_v56 }
 0x17c   :  { %v1151_v23 = vpop.f32.mrf.mxu1  ;;  %v1167_v24 = vpop.f32.mrf.mxu0 }
 0x17d   :  { %v677_v5 = vadd.f32 %v657_v22, %v588_v55 }
 0x17e   :  { %v573_v25 = vpop.f32.mrf.mxu1  ;;  %v662_v26 = vpop.f32.mrf.mxu0 }
 0x17f   :  { %v589_v41 = vadd.f32 %v573_v25, %v495_v42 }
 0x180   :  { %v1154_v27 = vpop.f32.mrf.mxu1  ;;  %v1170_v28 = vpop.f32.mrf.mxu0 }
 0x181   :  { %v678_v13 = vadd.f32 %v662_v26, %v589_v41  ;;  %v894_v26 = vpop.permute.xlu1 %893 }
 0x182   :  { %v576_v30 = vpop.f32.mrf.mxu1  ;;  %v665_v34 = vpop.f32.mrf.mxu0 }
 0x183   :  { %v590_v46 = vadd.f32 %v576_v30, %v496_v6 }
 0x184   :  { %v1155_v36 = vpop.f32.mrf.mxu1  ;;  %v1171_v37 = vpop.f32.mrf.mxu0 }
 0x185   :  { %v679_v22 = vadd.f32 %v665_v34, %v590_v46  ;;  %v899_v36 = vpop.permute.xlu0 %898 }
 0x186   :  { %v581_v39 = vpop.f32.mrf.mxu1  ;;  %v670_v40 = vpop.f32.mrf.mxu0 }
 0x187   :  { %v591_v24 = vadd.f32 %v581_v39, %v497_v47 }
 0x188   :  { %v1158_v49 = vpop.f32.mrf.mxu1  ;;  %v1174_v50 = vpop.f32.mrf.mxu0 }
 0x189   :  { %v680_v44 = vadd.f32 %v670_v40, %v591_v24 }
 0x18a   :  { %v584_v52 = vpop.f32.mrf.mxu1  ;;  %v673_v53 = vpop.f32.mrf.mxu0 }
 0x18b   :  { %v904_v52 = vpop.permute.xlu1 %903 }
 0x18c   :  { %v1159_v32 = vpop.f32.mrf.mxu1  ;;  %v1175_v54 = vpop.f32.mrf.mxu0 }
 0x18e   :  { %v748_v60 = vpop.f32.mrf.mxu1  ;;  %v849_v19 = vpop.f32.mrf.mxu0 }
 0x18f   :  { %v770_v61 = vadd.f32 %v748_v60, %v676_v57 }
 0x190   :  { %v1182_v0 = vpop.f32.mrf.mxu1  ;;  %v1198_v2 = vpop.f32.mrf.mxu0 }
 0x191   :  { %v871_v62 = vadd.f32 %v849_v19, %v770_v61 }
 0x192   :  { %v852_v9 = vpop.f32.mrf.mxu0  ;;  %v751_v10 = vpop.f32.mrf.mxu1 }
 0x193   :  { %v771_v1 = vadd.f32 %v751_v10, %v677_v5  ;;  %v906_v14 = vadd.f32 %v884_v43, %v871_v62 }
 0x194   :  { %v1183_v12 = vpop.f32.mrf.mxu1  ;;  %v1199_v3 = vpop.f32.mrf.mxu0 }
 0x195   :  { %v872_v15 = vadd.f32 %v852_v9, %v771_v1  ;;  %v911_v25 = vmax.f32 %v906_v14, 0.0 }
 0x196   :  { %v857_v16 = vpop.f32.mrf.mxu0  ;;  %v756_v17 = vpop.f32.mrf.mxu1 }
 0x197   :  { %v907_v18 = vadd.f32 %v889_v63, %v872_v15  ;;  %v772_v21 = vadd.f32 %v756_v17, %v678_v13 }
 0x198   :  { %v1186_v23 = vpop.f32.mrf.mxu1  ;;  %v1202_v4 = vpop.f32.mrf.mxu0 }
 0x199   :  { %v912_v7 = vmax.f32 %v907_v18, 0.0  ;;  %v873_v27 = vadd.f32 %v857_v16, %v772_v21 }
 0x19a   :  { %v860_v28 = vpop.f32.mrf.mxu0  ;;  %v759_v29 = vpop.f32.mrf.mxu1 }
 0x19b   :  { %v1011_v30 = vpack.c.bf16 %v912_v7, %v911_v25  ;;  %v773_v35 = vadd.f32 %v759_v29, %v679_v22  ;;  %v908_v45 = vadd.f32 %v894_v26, %v873_v27 }
 0x19c   :  { %v1187_v37 = vpop.f32.mrf.mxu1  ;;  %v1203_v38 = vpop.f32.mrf.mxu0 }
 0x19d   :  { %v874_v8 = vadd.f32 %v860_v28, %v773_v35  ;;  %1012 = vst [vmem:[%s1597_s3] sm:$0xff] %v1011_v30   ;;  %v913_v53 = vmax.f32 %v908_v45, 0.0 }
 0x19e   :  { %v764_v34 = vpop.f32.mrf.mxu1  ;;  %v865_v39 = vpop.f32.mrf.mxu0 }
 0x19f   :  { %v909_v48 = vadd.f32 %v899_v36, %v874_v8  ;;  %v774_v49 = vadd.f32 %v764_v34, %v680_v44 }
 0x1a0   :  { %v1190_v50 = vpop.f32.mrf.mxu1  ;;  %v1206_v51 = vpop.f32.mrf.mxu0 }
 0x1a1   :  { %v914_v56 = vmax.f32 %v909_v48, 0.0  ;;  %v875_v20 = vadd.f32 %v865_v39, %v774_v49 }
 0x1a2   :  { %v767_v31 = vpop.f32.mrf.mxu1  ;;  %v868_v32 = vpop.f32.mrf.mxu0 }
 0x1a3   :  { %v1016_v54 = vpack.c.bf16 %v914_v56, %v913_v53  ;;  %v910_v40 = vadd.f32 %v904_v52, %v875_v20 }
 0x1a4   :  { %v1191_v33 = vpop.f32.mrf.mxu1  ;;  %v1207_v57 = vpop.f32.mrf.mxu0 }
 0x1a5   :  { %1018 = vst [vmem:[%s1597_s3 + $0x8] sm:$0xff] %v1016_v54   ;;  %v915_v55 = vmax.f32 %v910_v40, 0.0 }
 0x1a7   :  { %v1007_v58 = vpack.c.bf16 %v915_v55, %v915_v55 }
 0x1a9   :  { %941 = vst [vmem:[%s1597_s3 + $0x10] sm:$0xf] %v1007_v58 }

// kernel: qa_qcae_forward.7
= control target key start
LH: loop header
LB: loop body
LE: loop exit
PB: predicated region body
PF: predicated region fallthrough
CT: control target
= control target key end

     0   :  { %vm161_vm0 = vcmask 1043456   ;;  %s1381_s18 = smov 127   ;;  %vm136_vm1 = vcmask 326656   ;;  %s1382_s29 = smov 88   ;;  %v1387_v28 = vmov 0   ;;  %vm130_vm2 = vcmask 1039360   ;;  %s1705_s2 = inlined_call_operand.vmem [shape: bf16[40,256], index: 2, kind: input, shape index: {}]   ;;  %s1706_s0 = inlined_call_operand.vmem [shape: bf16[128,160], index: 0, kind: input, shape index: {}]   ;;  %s1707_s1 = inlined_call_operand.vmem [shape: f32[128,1], index: 1, kind: input, shape index: {}]   ;;  %s1708_s3 = inlined_call_operand.vmem [shape: bf16[128,128], index: 3, kind: output, shape index: {}]  }
   0x1   :  { %v24_v0 = vld [vmem:[%s1705_s2 + $0x20] sm:$0xff]  ;;  %v1342_v2 = vld [vmem:[%s1705_s2 + $0x10] ss:$8 sps:$4 sm:$0xff]   ;;  %v1345_v3 = vld [vmem:[%s1705_s2 + $0x14] ss:$8 sps:$4 sm:$0xff]   ;;  %s1383_s8 = smov 123   ;;  %1340 = vset.pattern.permute.xlu1 %v1387_v28  ;;  %1339 = vset.pattern.permute.xlu0 %v1387_v28 }
   0x2   :  { %v1067_v1 = vcombine.low %v24_v0, %v24_v0  ;;  %122 = vrot.lane.b32.xlu1 %v1342_v2, %s1381_s18  ;;  %v1068_v4 = vcombine.high %v24_v0, %v24_v0  ;;  %v1346_v6 = vld [vmem:[%s1705_s2 + $0x4] ss:$8 sps:$4 sm:$0xff]   ;;  %v1350_v7 = vld [vmem:[%s1706_s0] ss:$8 sps:$4 sm:$0xff]   ;;  %v1349_v9 = vld [vmem:[%s1706_s0 + $0x10] ss:$8 sps:$4 sm:$0xff]  }
   0x3   :  { %v1348_v8 = vld [vmem:[%s1705_s2] ss:$8 sps:$4 sm:$0xff]   ;;  %1268 = vmatprep.mubr.msk.bf16.mxu1 %vm136_vm1, %v1350_v7  ;;  %v1351_v10 = vld [vmem:[%s1706_s0 + $0x30] ss:$8 sps:$4 sm:$0xff]   ;;  %s1384_s9 = smov 122   ;;  %s1385_s14 = smov 48  }
   0x4   :  { %126 = vrot.lane.b32.xlu0 %v1067_v1, %s1381_s18  ;;  %v289_v5 = vsel %vm161_vm0, %v1067_v1, 0  ;;  %1329 = vmatprep.subr.msk.bf16.mxu1 %vm161_vm0, %v1067_v1  ;;  %v1352_v11 = vld [vmem:[%s1706_s0 + $0x20] ss:$8 sps:$4 sm:$0xff]   ;;  %v1353_v12 = vld [vmem:[%s1706_s0 + $0x50] ss:$8 sps:$4 sm:$0xff]   ;;  %s1386_s19 = smov 8  }
   0x5   :  { %1263 = vmatpush3.bf16.msra.mxu1 %v289_v5  ;;  %v1354_v13 = vld [vmem:[%s1706_s0 + $0x40] ss:$8 sps:$4 sm:$0xff]   ;;  %v1356_v15 = vld [vmem:[%s1706_s0 + $0x70] ss:$8 sps:$4 sm:$0xff]   ;;  %v1357_v16 = vld [vmem:[%s1706_s0 + $0x4] ss:$8 sps:$4 sm:$0xff]  }
   0x6   :  { %1264 = vmatprep.subr.bf16.mxu1 %v1342_v2  ;;  %124 = vrot.lane.b32.xlu1 %v1345_v3, %s1381_s18  ;;  %v1355_v14 = vld [vmem:[%s1706_s0 + $0x60] ss:$8 sps:$4 sm:$0xff]   ;;  %v1360_v18 = vld [vmem:[%s1706_s0 + $0x14] ss:$8 sps:$4 sm:$0xff]   ;;  %v1362_v19 = vld [vmem:[%s1706_s0 + $0x10] ss:$8 sps:$4 sm:$0xff]  }
   0x7   :  { %v1359_v17 = vld [vmem:[%s1706_s0] ss:$8 sps:$4 sm:$0xff]   ;;  %v1363_v20 = vld [vmem:[%s1706_s0 + $0x24] ss:$8 sps:$4 sm:$0xff]   ;;  %v1366_v22 = vld [vmem:[%s1706_s0 + $0x34] ss:$8 sps:$4 sm:$0xff]  }
   0x8   :  { %128 = vrot.lane.b32.xlu0 %v1068_v4, %s1381_s18  ;;  %v1365_v21 = vld [vmem:[%s1706_s0 + $0x20] ss:$8 sps:$4 sm:$0xff]   ;;  %v1368_v23 = vld [vmem:[%s1706_s0 + $0x30] ss:$8 sps:$4 sm:$0xff]   ;;  %v1369_v24 = vld [vmem:[%s1706_s0 + $0x44] ss:$8 sps:$4 sm:$0xff]  }
   0x9   :  { %1265 = vmatpush3.bf16.msra.mxu1 %v1342_v2  ;;  %v1371_v25 = vld [vmem:[%s1706_s0 + $0x40] ss:$8 sps:$4 sm:$0xff]   ;;  %v1372_v26 = vld [vmem:[%s1706_s0 + $0x54] ss:$8 sps:$4 sm:$0xff]   ;;  %v1374_v27 = vld [vmem:[%s1706_s0 + $0x50] ss:$8 sps:$4 sm:$0xff]  }
   0xa   :  { %1266 = vmatprep.subr.bf16.mxu1 %v1348_v8  ;;  %120 = vrot.lane.b32.xlu1 %v1346_v6, %s1381_s18  ;;  %v1375_v29 = vld [vmem:[%s1706_s0 + $0x64] ss:$8 sps:$4 sm:$0xff]   ;;  %v1377_v30 = vld [vmem:[%s1706_s0 + $0x60] ss:$8 sps:$4 sm:$0xff]   ;;  %v1378_v31 = vld [vmem:[%s1706_s0 + $0x74] ss:$8 sps:$4 sm:$0xff]  }
   0xb   :  { %v1380_v32 = vld [vmem:[%s1706_s0 + $0x70] ss:$8 sps:$4 sm:$0xff]   ;;  %v842_v33 = vld [vmem:[%s1707_s1 + $0x8] sm:$0xff]  ;;  %v841_v34 = vld [vmem:[%s1707_s1] sm:$0xff]  ;;  %vm416_vm3 = vcmask 1006592   ;;  %vm695_vm4 = vcmask 998400  }
   0xc   :  { %118 = vrot.lane.b32.xlu0 %v1348_v8, %s1381_s18  ;;  %v843_v35 = vld [vmem:[%s1707_s1 + $0x10] sm:$0xff]  ;;  %v844_v36 = vld [vmem:[%s1707_s1 + $0x18] sm:$0xff]  ;;  %v845_v37 = vld [vmem:[%s1707_s1 + $0x20] sm:$0xff]  ;;  %vm674_vm5 = vcmask 64512  }
   0xd   :  { %1267 = vmatpush3.bf16.msra.mxu1 %v1348_v8  ;;  %v846_v38 = vld [vmem:[%s1707_s1 + $0x28] sm:$0xff]  ;;  %v847_v39 = vld [vmem:[%s1707_s1 + $0x30] sm:$0xff]  ;;  %v848_v40 = vld [vmem:[%s1707_s1 + $0x38] sm:$0xff] }
   0xe   :  { %83 = vrot.lane.b32.xlu1 %v1349_v9, %s1382_s29  ;;  %v849_v41 = vld [vmem:[%s1707_s1 + $0x40] sm:$0xff]  ;;  %v850_v42 = vld [vmem:[%s1707_s1 + $0x48] sm:$0xff]  ;;  %v851_v45 = vld [vmem:[%s1707_s1 + $0x50] sm:$0xff] }
   0xf   :  { %v852_v48 = vld [vmem:[%s1707_s1 + $0x58] sm:$0xff]  ;;  %v853_v52 = vld [vmem:[%s1707_s1 + $0x60] sm:$0xff]  ;;  %v854_v55 = vld [vmem:[%s1707_s1 + $0x68] sm:$0xff] }
  0x10   :  { %81 = vrot.lane.b32.xlu0 %v1350_v7, %s1382_s29  ;;  %1269 = vmatmul.mubr.msk.bf16.vlgmr.msra.gmra.mxu1 %vm136_vm1, %v1349_v9  ;;  %v855_v57 = vld [vmem:[%s1707_s1 + $0x70] sm:$0xff]  ;;  %v856_v60 = vld [vmem:[%s1707_s1 + $0x78] sm:$0xff] }
  0x11   :  { %1272 = vmatprep.mubr.msk.bf16.mxu1 %vm136_vm1, %v1352_v11 }
  0x12   :  { %87 = vrot.lane.b32.xlu1 %v1351_v10, %s1382_s29 }
  0x14   :  { %85 = vrot.lane.b32.xlu0 %v1352_v11, %s1382_s29 }
  0x16   :  { %91 = vrot.lane.b32.xlu1 %v1353_v12, %s1382_s29 }
  0x18   :  { %89 = vrot.lane.b32.xlu0 %v1354_v13, %s1382_s29  ;;  %1273 = vmatmul.mubr.msk.bf16.gmra.mxu1 %vm136_vm1, %v1351_v10 }
  0x19   :  { %1276 = vmatprep.mubr.msk.bf16.mxu1 %vm136_vm1, %v1354_v13 }
  0x1a   :  { %414 = vrot.lane.b32.xlu1 %v1068_v4, %s1383_s8 }
  0x1c   :  { %412 = vrot.lane.b32.xlu0 %v1067_v1, %s1383_s8 }
  0x1e   :  { %693 = vrot.lane.b32.xlu1 %v1068_v4, %s1384_s9 }
  0x20   :  { %691 = vrot.lane.b32.xlu0 %v1067_v1, %s1384_s9  ;;  %1277 = vmatmul.mubr.msk.bf16.gmra.mxu1 %vm136_vm1, %v1353_v12 }
  0x21   :  { %1280 = vmatprep.mubr.msk.bf16.mxu1 %vm136_vm1, %v1355_v14 }
  0x22   :  { %408 = vrot.lane.b32.xlu1 %v1342_v2, %s1383_s8 }
  0x24   :  { %93 = vrot.lane.b32.xlu0 %v1355_v14, %s1382_s29 }
  0x26   :  { %95 = vrot.lane.b32.xlu1 %v1356_v15, %s1382_s29 }
  0x28   :  { %410 = vrot.lane.b32.xlu0 %v1345_v3, %s1383_s8  ;;  %1281 = vmatmul.mubr.msk.bf16.gmra.mxu1 %vm136_vm1, %v1356_v15 }
  0x2a   :  { %689 = vrot.lane.b32.xlu1 %v1345_v3, %s1384_s9 }
  0x2c   :  { %687 = vrot.lane.b32.xlu0 %v1342_v2, %s1384_s9 }
  0x2e   :  { %406 = vrot.lane.b32.xlu1 %v1346_v6, %s1383_s8 }
  0x30   :  { %404 = vrot.lane.b32.xlu0 %v1348_v8, %s1383_s8 }
  0x32   :  { %685 = vrot.lane.b32.xlu1 %v1346_v6, %s1384_s9 }
  0x34   :  { %683 = vrot.lane.b32.xlu0 %v1348_v8, %s1384_s9 }
  0x36   :  { %390 = vrot.lane.b32.xlu1 %v1349_v9, %s1385_s14 }
  0x38   :  { %388 = vrot.lane.b32.xlu0 %v1350_v7, %s1385_s14 }
  0x3a   :  { %644 = vrot.lane.b32.xlu1 %v1357_v16, %s1386_s19 }
  0x3c   :  { %642 = vrot.lane.b32.xlu0 %v1359_v17, %s1386_s19 }
  0x3e   :  { %648 = vrot.lane.b32.xlu1 %v1360_v18, %s1386_s19 }
  0x40   :  { %646 = vrot.lane.b32.xlu0 %v1362_v19, %s1386_s19 }
  0x42   :  { %394 = vrot.lane.b32.xlu1 %v1351_v10, %s1385_s14 }
  0x44   :  { %392 = vrot.lane.b32.xlu0 %v1352_v11, %s1385_s14 }
  0x46   :  { %652 = vrot.lane.b32.xlu1 %v1363_v20, %s1386_s19 }
  0x48   :  { %650 = vrot.lane.b32.xlu0 %v1365_v21, %s1386_s19 }
  0x4a   :  { %656 = vrot.lane.b32.xlu1 %v1366_v22, %s1386_s19 }
  0x4c   :  { %654 = vrot.lane.b32.xlu0 %v1368_v23, %s1386_s19 }
  0x4e   :  { %398 = vrot.lane.b32.xlu1 %v1353_v12, %s1385_s14 }
  0x50   :  { %396 = vrot.lane.b32.xlu0 %v1354_v13, %s1385_s14 }
  0x52   :  { %660 = vrot.lane.b32.xlu1 %v1369_v24, %s1386_s19 }
  0x54   :  { %658 = vrot.lane.b32.xlu0 %v1371_v25, %s1386_s19 }
  0x56   :  { %664 = vrot.lane.b32.xlu1 %v1372_v26, %s1386_s19 }
  0x58   :  { %662 = vrot.lane.b32.xlu0 %v1374_v27, %s1386_s19 }
  0x5a   :  { %402 = vrot.lane.b32.xlu1 %v1356_v15, %s1385_s14 }
  0x5c   :  { %400 = vrot.lane.b32.xlu0 %v1355_v14, %s1385_s14 }
  0x5e   :  { %668 = vrot.lane.b32.xlu1 %v1375_v29, %s1386_s19 }
  0x60   :  { %666 = vrot.lane.b32.xlu0 %v1377_v30, %s1386_s19 }
  0x62   :  { %672 = vrot.lane.b32.xlu1 %v1378_v31, %s1386_s19 }
  0x64   :  { %670 = vrot.lane.b32.xlu0 %v1380_v32, %s1386_s19 }
  0x66   :  { %864 = vperm.xlu1 %1340, %v842_v33  }
  0x68   :  { %859 = vperm.xlu0 %1339, %v841_v34  }
  0x6a   :  { %869 = vperm.xlu1 %1340, %v843_v35  }
  0x6c   :  { %874 = vperm.xlu0 %1339, %v844_v36  }
  0x6e   :  { %879 = vperm.xlu1 %1340, %v845_v37  }
  0x70   :  { %884 = vperm.xlu0 %1339, %v846_v38  }
  0x72   :  { %889 = vperm.xlu1 %1340, %v847_v39  }
  0x74   :  { %894 = vperm.xlu0 %1339, %v848_v40   ;;  %v123_v44 = vpop.permute.xlu1 %122 }
  0x76   :  { %v127_v43 = vpop.permute.xlu0 %126  ;;  %899 = vperm.xlu1 %1340, %v849_v41  }
  0x78   :  { %904 = vperm.xlu0 %1339, %v850_v42   ;;  %v125_v47 = vpop.permute.xlu1 %124 }
  0x79   :  { %v132_v51 = vsel %vm130_vm2, %v123_v44, %v125_v47 }
  0x7a   :  { %v129_v46 = vpop.permute.xlu0 %128  ;;  %909 = vperm.xlu1 %1340, %v851_v45  }
  0x7b   :  { %v133_v49 = vsel %vm130_vm2, %v127_v43, %v129_v46 }
  0x7c   :  { %1328 = vmatprep.subr.msk.bf16.mxu0 %vm161_vm0, %v133_v49  ;;  %v163_v50 = vsel %vm161_vm0, %v133_v49, 0  ;;  %914 = vperm.xlu0 %1339, %v852_v48   ;;  %v121_v53 = vpop.permute.xlu1 %120 }
  0x7d   :  { %1241 = vmatpush3.bf16.msra.mxu0 %v163_v50 }
  0x7e   :  { %1242 = vmatprep.subr.bf16.mxu0 %v132_v51  ;;  %v119_v54 = vpop.permute.xlu0 %118  ;;  %919 = vperm.xlu1 %1340, %v853_v52  }
  0x7f   :  { %v131_v56 = vsel %vm130_vm2, %v119_v54, %v121_v53 }
  0x80   :  { %924 = vperm.xlu0 %1339, %v854_v55   ;;  %v84_v58 = vpop.permute.xlu1 %83 }
  0x81   :  { %1243 = vmatpush3.bf16.msra.mxu0 %v132_v51 }
  0x82   :  { %1244 = vmatprep.subr.bf16.mxu0 %v131_v56  ;;  %v82_v59 = vpop.permute.xlu0 %81  ;;  %929 = vperm.xlu1 %1340, %v855_v57  }
  0x83   :  { %1246 = vmatprep.mubr.msk.bf16.mxu0 %vm136_vm1, %v82_v59 }
  0x84   :  { %934 = vperm.xlu0 %1339, %v856_v60   ;;  %v88_v61 = vpop.permute.xlu1 %87 }
  0x85   :  { %1245 = vmatpush3.bf16.msra.mxu0 %v131_v56 }
  0x86   :  { %v86_v62 = vpop.permute.xlu0 %85 }
  0x88   :  { %1247 = vmatmul.mubr.msk.bf16.vlgmr.msra.gmra.mxu0 %vm136_vm1, %v84_v58  ;;  %v92_v63 = vpop.permute.xlu1 %91 }
  0x89   :  { %1250 = vmatprep.mubr.msk.bf16.mxu0 %vm136_vm1, %v86_v62 }
  0x8a   :  { %v90_v0 = vpop.permute.xlu0 %89 }
  0x8c   :  { %v415_v1 = vpop.permute.xlu1 %414 }
  0x8e   :  { %v413_v2 = vpop.permute.xlu0 %412 }
  0x8f   :  { %v419_v3 = vsel %vm416_vm3, %v413_v2, %v415_v1 }
  0x90   :  { %v447_v4 = vsel %vm161_vm0, %v419_v3, 0  ;;  %1251 = vmatmul.mubr.msk.bf16.gmra.mxu0 %vm136_vm1, %v88_v61  ;;  %1330 = vmatprep.subr.msk.bf16.mxu0 %vm161_vm0, %v419_v3  ;;  %v694_v5 = vpop.permute.xlu1 %693 }
  0x91   :  { %1254 = vmatprep.mubr.msk.bf16.mxu0 %vm136_vm1, %v90_v0  ;;  %1285 = vmatpush3.bf16.msra.mxu0 %v447_v4 }
  0x92   :  { %v692_v6 = vpop.permute.xlu0 %691 }
  0x93   :  { %v698_v7 = vsel %vm695_vm4, %v692_v6, %v694_v5 }
  0x94   :  { %v726_v8 = vsel %vm161_vm0, %v698_v7, 0  ;;  %1331 = vmatprep.subr.msk.bf16.mxu1 %vm161_vm0, %v698_v7  ;;  %v409_v9 = vpop.permute.xlu1 %408 }
  0x95   :  { %1307 = vmatpush3.bf16.msra.mxu1 %v726_v8 }
  0x96   :  { %v94_v10 = vpop.permute.xlu0 %93 }
  0x98   :  { %1255 = vmatmul.mubr.msk.bf16.gmra.mxu0 %vm136_vm1, %v92_v63  ;;  %v96_v11 = vpop.permute.xlu1 %95 }
  0x99   :  { %1258 = vmatprep.mubr.msk.bf16.mxu0 %vm136_vm1, %v94_v10 }
  0x9a   :  { %v411_v12 = vpop.permute.xlu0 %410 }
  0x9b   :  { %v418_v13 = vsel %vm416_vm3, %v409_v9, %v411_v12 }
  0x9c   :  { %1286 = vmatprep.subr.bf16.mxu0 %v418_v13  ;;  %v690_v14 = vpop.permute.xlu1 %689 }
  0x9d   :  { %1287 = vmatpush3.bf16.msra.mxu0 %v418_v13 }
  0x9e   :  { %v688_v15 = vpop.permute.xlu0 %687 }
  0x9f   :  { %v697_v16 = vsel %vm695_vm4, %v688_v15, %v690_v14 }
  0xa0   :  { %1259 = vmatmul.mubr.msk.bf16.gmra.mxu0 %vm136_vm1, %v96_v11  ;;  %1308 = vmatprep.subr.bf16.mxu1 %v697_v16  ;;  %v407_v17 = vpop.permute.xlu1 %406 }
  0xa1   :  { %1309 = vmatpush3.bf16.msra.mxu1 %v697_v16 }
  0xa2   :  { %v405_v18 = vpop.permute.xlu0 %404 }
  0xa3   :  { %v417_v19 = vsel %vm416_vm3, %v405_v18, %v407_v17 }
  0xa4   :  { %1288 = vmatprep.subr.bf16.mxu0 %v417_v19  ;;  %v686_v20 = vpop.permute.xlu1 %685 }
  0xa5   :  { %1289 = vmatpush3.bf16.msra.mxu0 %v417_v19 }
  0xa6   :  { %v684_v21 = vpop.permute.xlu0 %683 }
  0xa7   :  { %v696_v22 = vsel %vm695_vm4, %v684_v21, %v686_v20 }
  0xa8   :  { %1310 = vmatprep.subr.bf16.mxu1 %v696_v22  ;;  %v391_v23 = vpop.permute.xlu1 %390 }
  0xa9   :  { %1311 = vmatpush3.bf16.msra.mxu1 %v696_v22 }
  0xaa   :  { %v389_v24 = vpop.permute.xlu0 %388 }
  0xab   :  { %1290 = vmatprep.mubr.msk.bf16.mxu0 %vm136_vm1, %v389_v24 }
  0xac   :  { %1291 = vmatmul.mubr.msk.bf16.vlgmr.msra.gmra.mxu0 %vm136_vm1, %v391_v23  ;;  %v645_v25 = vpop.permute.xlu1 %644 }
  0xae   :  { %v643_v26 = vpop.permute.xlu0 %642 }
  0xaf   :  { %v675_v27 = vsel %vm674_vm5, %v643_v26, %v645_v25 }
  0xb0   :  { %1312 = vmatprep.mubr.msk.bf16.mxu1 %vm136_vm1, %v675_v27  ;;  %v649_v28 = vpop.permute.xlu1 %648 }
  0xb2   :  { %v647_v29 = vpop.permute.xlu0 %646 }
  0xb3   :  { %v676_v30 = vsel %vm674_vm5, %v647_v29, %v649_v28 }
  0xb4   :  { %1313 = vmatmul.mubr.msk.bf16.vlgmr.msra.gmra.mxu1 %vm136_vm1, %v676_v30  ;;  %v395_v31 = vpop.permute.xlu1 %394 }
  0xb6   :  { %v393_v32 = vpop.permute.xlu0 %392 }
  0xb7   :  { %1294 = vmatprep.mubr.msk.bf16.mxu0 %vm136_vm1, %v393_v32 }
  0xb8   :  { %1295 = vmatmul.mubr.msk.bf16.gmra.mxu0 %vm136_vm1, %v395_v31  ;;  %v653_v33 = vpop.permute.xlu1 %652 }
  0xba   :  { %v651_v34 = vpop.permute.xlu0 %650 }
  0xbb   :  { %v677_v35 = vsel %vm674_vm5, %v651_v34, %v653_v33 }
  0xbc   :  { %1316 = vmatprep.mubr.msk.bf16.mxu1 %vm136_vm1, %v677_v35  ;;  %v657_v36 = vpop.permute.xlu1 %656 }
  0xbe   :  { %v655_v37 = vpop.permute.xlu0 %654 }
  0xbf   :  { %v678_v38 = vsel %vm674_vm5, %v655_v37, %v657_v36 }
  0xc0   :  { %1317 = vmatmul.mubr.msk.bf16.gmra.mxu1 %vm136_vm1, %v678_v38  ;;  %v399_v39 = vpop.permute.xlu1 %398 }
  0xc2   :  { %v397_v40 = vpop.permute.xlu0 %396 }
  0xc3   :  { %1298 = vmatprep.mubr.msk.bf16.mxu0 %vm136_vm1, %v397_v40 }
  0xc4   :  { %1299 = vmatmul.mubr.msk.bf16.gmra.mxu0 %vm136_vm1, %v399_v39  ;;  %v661_v41 = vpop.permute.xlu1 %660 }
  0xc6   :  { %v659_v42 = vpop.permute.xlu0 %658 }
  0xc7   :  { %v679_v43 = vsel %vm674_vm5, %v659_v42, %v661_v41 }
  0xc8   :  { %1320 = vmatprep.mubr.msk.bf16.mxu1 %vm136_vm1, %v679_v43  ;;  %v665_v44 = vpop.permute.xlu1 %664 }
  0xca   :  { %v663_v45 = vpop.permute.xlu0 %662 }
  0xcb   :  { %v680_v46 = vsel %vm674_vm5, %v663_v45, %v665_v44 }
  0xcc   :  { %1321 = vmatmul.mubr.msk.bf16.gmra.mxu1 %vm136_vm1, %v680_v46  ;;  %v403_v47 = vpop.permute.xlu1 %402 }
  0xce   :  { %v401_v48 = vpop.permute.xlu0 %400 }
  0xcf   :  { %1302 = vmatprep.mubr.msk.bf16.mxu0 %vm136_vm1, %v401_v48 }
  0xd0   :  { %1303 = vmatmul.mubr.msk.bf16.gmra.mxu0 %vm136_vm1, %v403_v47  ;;  %v669_v49 = vpop.permute.xlu1 %668  ;;  %v1270_v55 = vpop.f32.mrf.mxu1 }
  0xd2   :  { %v667_v50 = vpop.permute.xlu0 %666  ;;  %v325_v56 = vpop.f32.mrf.mxu1 }
  0xd3   :  { %v681_v51 = vsel %vm674_vm5, %v667_v50, %v669_v49 }
  0xd4   :  { %1324 = vmatprep.mubr.msk.bf16.mxu1 %vm136_vm1, %v681_v51  ;;  %v673_v52 = vpop.permute.xlu1 %672  ;;  %v1271_v57 = vpop.f32.mrf.mxu1 }
  0xd6   :  { %v671_v53 = vpop.permute.xlu0 %670  ;;  %v328_v58 = vpop.f32.mrf.mxu1 }
  0xd7   :  { %v682_v54 = vsel %vm674_vm5, %v671_v53, %v673_v52 }
  0xd8   :  { %1325 = vmatmul.mubr.msk.bf16.gmra.mxu1 %vm136_vm1, %v682_v54  ;;  %v1274_v59 = vpop.f32.mrf.mxu1 }
  0xda   :  { %v341_v62 = vpop.f32.mrf.mxu1 }
  0xdc   :  { %v1624_v1 = vpop.f32.mrf.mxu1 }
  0xde   :  { %v1626_v4 = vpop.f32.mrf.mxu1 }
  0xe0   :  { %v1630_v7 = vpop.f32.mrf.mxu1 }
  0xe1   :  { %v865_v25 = vpop.permute.xlu1 %864 }
  0xe2   :  { %v1636_v10 = vpop.f32.mrf.mxu1 }
  0xe3   :  { %v860_v29 = vpop.permute.xlu0 %859 }
  0xe4   :  { %v1640_v12 = vpop.f32.mrf.mxu1 }
  0xe5   :  { %v870_v38 = vpop.permute.xlu1 %869 }
  0xe6   :  { %v1646_v15 = vpop.f32.mrf.mxu1 }
  0xe7   :  { %v875_v43 = vpop.permute.xlu0 %874 }
  0xe8   :  { %v1650_v17 = vpop.f32.mrf.mxu1 }
  0xe9   :  { %v880_v53 = vpop.permute.xlu1 %879 }
  0xea   :  { %v1654_v19 = vpop.f32.mrf.mxu1 }
  0xec   :  { %v1658_v22 = vpop.f32.mrf.mxu1 }
  0xee   :  { %v1660_v26 = vpop.f32.mrf.mxu1 }
 0x148   :  { %v1248_v60 = vpop.f32.mrf.mxu0 }
 0x149   :  { %v334_v24 = vadd.f32 %v1270_v55, %v1248_v60  ;;  %v885_v60 = vpop.permute.xlu0 %884 }
 0x14a   :  { %v199_v61 = vpop.f32.mrf.mxu0 }
 0x14b   :  { %v326_v28 = vadd.f32 %v325_v56, %v199_v61 }
 0x14c   :  { %v1249_v63 = vpop.f32.mrf.mxu0 }
 0x14d   :  { %v337_v32 = vadd.f32 %v1271_v57, %v1249_v63 }
 0x14e   :  { %v202_v0 = vpop.f32.mrf.mxu0 }
 0x14f   :  { %v329_v37 = vadd.f32 %v328_v58, %v202_v0 }
 0x150   :  { %v1252_v2 = vpop.f32.mrf.mxu0 }
 0x151   :  { %v350_v52 = vadd.f32 %v1274_v59, %v1252_v2 }
 0x152   :  { %v215_v3 = vpop.f32.mrf.mxu0 }
 0x153   :  { %v342_v57 = vadd.f32 %v341_v62, %v215_v3  ;;  %v890_v3 = vpop.permute.xlu1 %889 }
 0x154   :  { %v1253_v5 = vpop.f32.mrf.mxu0 }
 0x156   :  { %v1628_v6 = vpop.f32.mrf.mxu0 }
 0x157   :  { %v345_v62 = vadd.f32 %v1626_v4, %v1628_v6  ;;  %v900_v6 = vpop.permute.xlu1 %899 }
 0x158   :  { %v1632_v8 = vpop.f32.mrf.mxu0 }
 0x159   :  { %v366_v4 = vadd.f32 %v1630_v7, %v1632_v8 }
 0x15a   :  { %v1634_v9 = vpop.f32.mrf.mxu0 }
 0x15c   :  { %v1638_v11 = vpop.f32.mrf.mxu0 }
 0x15e   :  { %v1642_v13 = vpop.f32.mrf.mxu0 }
 0x160   :  { %v1644_v14 = vpop.f32.mrf.mxu0 }
 0x162   :  { %v1648_v16 = vpop.f32.mrf.mxu0 }
 0x164   :  { %v1652_v18 = vpop.f32.mrf.mxu0 }
 0x166   :  { %v1656_v20 = vpop.f32.mrf.mxu0 }
 0x16c   :  { %v1292_v21 = vpop.f32.mrf.mxu0 }
 0x16d   :  { %v548_v30 = vadd.f32 %v1292_v21, %v334_v24  ;;  %v353_v24 = vadd.f32 %v1624_v1, %v1253_v5 }
 0x16e   :  { %v483_v23 = vpop.f32.mrf.mxu0 }
 0x16f   :  { %v546_v33 = vadd.f32 %v483_v23, %v326_v28 }
 0x170   :  { %v1293_v27 = vpop.f32.mrf.mxu0 }
 0x171   :  { %v549_v39 = vadd.f32 %v1293_v27, %v337_v32 }
 0x172   :  { %v486_v35 = vpop.f32.mrf.mxu0 }
 0x173   :  { %v547_v44 = vadd.f32 %v486_v35, %v329_v37 }
 0x174   :  { %v1314_v31 = vpop.f32.mrf.mxu1 }
 0x175   :  { %v827_v34 = vadd.f32 %v1314_v31, %v548_v30  ;;  %v895_v31 = vpop.permute.xlu0 %894 }
 0x176   :  { %v762_v36 = vpop.f32.mrf.mxu1 }
 0x177   :  { %v825_v40 = vadd.f32 %v762_v36, %v546_v33  ;;  %v939_v45 = vadd.f32 %v870_v38, %v827_v34 }
 0x178   :  { %v1296_v41 = vpop.f32.mrf.mxu0  ;;  %v1315_v42 = vpop.f32.mrf.mxu1 }
 0x179   :  { %v828_v46 = vadd.f32 %v1315_v42, %v549_v39  ;;  %v937_v49 = vadd.f32 %v860_v29, %v825_v40  ;;  %v955_v54 = vmax.f32 %v939_v45, 0.0  ;;  %v552_v63 = vadd.f32 %v1296_v41, %v350_v52  ;;  %v905_v45 = vpop.permute.xlu0 %904 }
 0x17a   :  { %v499_v47 = vpop.f32.mrf.mxu0  ;;  %v765_v48 = vpop.f32.mrf.mxu1 }
 0x17b   :  { %v940_v50 = vadd.f32 %v875_v43, %v828_v46  ;;  %v826_v51 = vadd.f32 %v765_v48, %v547_v44  ;;  %v953_v61 = vmax.f32 %v937_v49, 0.0  ;;  %v550_v27 = vadd.f32 %v499_v47, %v342_v57 }
 0x17c   :  { %v1297_v58 = vpop.f32.mrf.mxu0  ;;  %v358_v43 = vadd.f32 %v1636_v10, %v1634_v9  ;;  %v361_v9 = vadd.f32 %v1646_v15, %v1642_v13  ;;  %v910_v10 = vpop.permute.xlu1 %909  ;;  %v382_v13 = vadd.f32 %v1650_v17, %v1644_v14 }
 0x17d   :  { %v956_v55 = vmax.f32 %v940_v50, 0.0  ;;  %v938_v56 = vadd.f32 %v865_v25, %v826_v51  ;;  %v553_v25 = vadd.f32 %v1297_v58, %v353_v24  ;;  %v369_v51 = vadd.f32 %v1640_v12, %v1638_v11  ;;  %v915_v57 = vpop.permute.xlu0 %914 }
 0x17e   :  { %v502_v28 = vpop.f32.mrf.mxu0 }
 0x17f   :  { %v1157_v0 = vpack.c.bf16 %v956_v55, %v955_v54  ;;  %v954_v21 = vmax.f32 %v938_v56, 0.0  ;;  %v551_v32 = vadd.f32 %v502_v28, %v345_v62 }
 0x180   :  { %v1318_v23 = vpop.f32.mrf.mxu1  ;;  %v920_v28 = vpop.permute.xlu1 %919 }
 0x181   :  { %1189 = vst [vmem:[%s1708_s3 + $0x8] sm:$0xff] %v1157_v0   ;;  %v1152_v59 = vpack.c.bf16 %v954_v21, %v953_v61  ;;  %v831_v2 = vadd.f32 %v1318_v23, %v552_v63 }
 0x182   :  { %v778_v29 = vpop.f32.mrf.mxu1 }
 0x183   :  { %1153 = vst [vmem:[%s1708_s3] sm:$0xff] %v1152_v59   ;;  %v829_v30 = vadd.f32 %v778_v29, %v550_v27  ;;  %v943_v33 = vadd.f32 %v890_v3, %v831_v2  ;;  %v374_v2 = vadd.f32 %v1654_v19, %v1648_v16  ;;  %v377_v19 = vadd.f32 %v1660_v26, %v1656_v20 }
 0x184   :  { %v1300_v1 = vpop.f32.mrf.mxu0  ;;  %v1319_v5 = vpop.f32.mrf.mxu1 }
 0x185   :  { %v832_v34 = vadd.f32 %v1319_v5, %v553_v25  ;;  %v941_v37 = vadd.f32 %v880_v53, %v829_v30  ;;  %v959_v40 = vmax.f32 %v943_v33, 0.0  ;;  %v556_v47 = vadd.f32 %v1300_v1, %v366_v4  ;;  %v925_v1 = vpop.permute.xlu0 %924 }
 0x186   :  { %v515_v35 = vpop.f32.mrf.mxu0  ;;  %v781_v36 = vpop.f32.mrf.mxu1 }
 0x187   :  { %v944_v38 = vadd.f32 %v895_v31, %v832_v34  ;;  %v830_v39 = vadd.f32 %v781_v36, %v551_v32  ;;  %v957_v46 = vmax.f32 %v941_v37, 0.0  ;;  %v554_v7 = vadd.f32 %v515_v35, %v358_v43  ;;  %v930_v36 = vpop.permute.xlu1 %929 }
 0x188   :  { %v1301_v44 = vpop.f32.mrf.mxu0  ;;  %v385_v31 = vadd.f32 %v1658_v22, %v1652_v18 }
 0x189   :  { %v960_v41 = vmax.f32 %v944_v38, 0.0  ;;  %v942_v42 = vadd.f32 %v885_v60, %v830_v39  ;;  %v557_v55 = vadd.f32 %v1301_v44, %v369_v51  ;;  %v935_v39 = vpop.permute.xlu0 %934 }
 0x18a   :  { %v518_v53 = vpop.f32.mrf.mxu0 }
 0x18b   :  { %v1167_v48 = vpack.c.bf16 %v960_v41, %v959_v40  ;;  %v958_v49 = vmax.f32 %v942_v42, 0.0  ;;  %v555_v58 = vadd.f32 %v518_v53, %v361_v9 }
 0x18c   :  { %v1322_v50 = vpop.f32.mrf.mxu1 }
 0x18d   :  { %1191 = vst [vmem:[%s1708_s3 + $0x18] sm:$0xff] %v1167_v48   ;;  %v1162_v8 = vpack.c.bf16 %v958_v49, %v957_v46  ;;  %v835_v52 = vadd.f32 %v1322_v50, %v556_v47 }
 0x18e   :  { %v794_v54 = vpop.f32.mrf.mxu1 }
 0x18f   :  { %1190 = vst [vmem:[%s1708_s3 + $0x10] sm:$0xff] %v1162_v8   ;;  %v833_v56 = vadd.f32 %v794_v54, %v554_v7  ;;  %v947_v60 = vadd.f32 %v910_v10, %v835_v52 }
 0x190   :  { %v1304_v11 = vpop.f32.mrf.mxu0  ;;  %v1323_v12 = vpop.f32.mrf.mxu1 }
 0x191   :  { %v836_v61 = vadd.f32 %v1323_v12, %v557_v55  ;;  %v945_v21 = vadd.f32 %v900_v6, %v833_v56  ;;  %v963_v15 = vmax.f32 %v947_v60, 0.0  ;;  %v560_v3 = vadd.f32 %v1304_v11, %v382_v13 }
 0x192   :  { %v531_v63 = vpop.f32.mrf.mxu0  ;;  %v797_v0 = vpop.f32.mrf.mxu1 }
 0x193   :  { %v948_v23 = vadd.f32 %v915_v57, %v836_v61  ;;  %v834_v24 = vadd.f32 %v797_v0, %v555_v58  ;;  %v961_v62 = vmax.f32 %v945_v21, 0.0  ;;  %v558_v14 = vadd.f32 %v531_v63, %v374_v2 }
 0x194   :  { %v1305_v29 = vpop.f32.mrf.mxu0 }
 0x195   :  { %v964_v27 = vmax.f32 %v948_v23, 0.0  ;;  %v946_v59 = vadd.f32 %v905_v45, %v834_v24  ;;  %v561_v34 = vadd.f32 %v1305_v29, %v385_v31 }
 0x196   :  { %v534_v33 = vpop.f32.mrf.mxu0 }
 0x197   :  { %v1177_v25 = vpack.c.bf16 %v964_v27, %v963_v15  ;;  %v962_v30 = vmax.f32 %v946_v59, 0.0  ;;  %v559_v22 = vadd.f32 %v534_v33, %v377_v19 }
 0x198   :  { %v1326_v5 = vpop.f32.mrf.mxu1 }
 0x199   :  { %1193 = vst [vmem:[%s1708_s3 + $0x28] sm:$0xff] %v1177_v25   ;;  %v1172_v17 = vpack.c.bf16 %v962_v30, %v961_v62  ;;  %v839_v32 = vadd.f32 %v1326_v5, %v560_v3 }
 0x19a   :  { %v810_v16 = vpop.f32.mrf.mxu1 }
 0x19b   :  { %1192 = vst [vmem:[%s1708_s3 + $0x20] sm:$0xff] %v1172_v17   ;;  %v837_v35 = vadd.f32 %v810_v16, %v558_v14  ;;  %v951_v37 = vadd.f32 %v930_v36, %v839_v32 }
 0x19c   :  { %v1327_v18 = vpop.f32.mrf.mxu1 }
 0x19d   :  { %v840_v38 = vadd.f32 %v1327_v18, %v561_v34  ;;  %v949_v6 = vadd.f32 %v920_v28, %v837_v35  ;;  %v967_v42 = vmax.f32 %v951_v37, 0.0 }
 0x19e   :  { %v813_v4 = vpop.f32.mrf.mxu1 }
 0x19f   :  { %v952_v40 = vadd.f32 %v935_v39, %v840_v38  ;;  %v838_v41 = vadd.f32 %v813_v4, %v559_v22  ;;  %v965_v20 = vmax.f32 %v949_v6, 0.0 }
 0x1a1   :  { %v968_v43 = vmax.f32 %v952_v40, 0.0  ;;  %v950_v44 = vadd.f32 %v925_v1, %v838_v41 }
 0x1a3   :  { %v1187_v26 = vpack.c.bf16 %v968_v43, %v967_v42  ;;  %v966_v45 = vmax.f32 %v950_v44, 0.0 }
 0x1a5   :  { %1195 = vst [vmem:[%s1708_s3 + $0x38] sm:$0xff] %v1187_v26   ;;  %v1182_v46 = vpack.c.bf16 %v966_v45, %v965_v20 }
 0x1a7   :  { %1194 = vst [vmem:[%s1708_s3 + $0x30] sm:$0xff] %v1182_v46  }

// kernel: qa_qcae_forward.8
= control target key start
LH: loop header
LB: loop body
LE: loop exit
PB: predicated region body
PF: predicated region fallthrough
CT: control target
= control target key end

     0   :  { %vm59_vm0 = vcmask 261120   ;;  %v380_v8 = vmov 0.0   ;;  %vm381_vm1 = vmmov 0   ;;  %vm243_vm2 = vcmask 1043456   ;;  %s462_s4 = inlined_call_operand.vmem [shape: bf16[32,128], index: 4, kind: input, shape index: {}]   ;;  %s463_s3 = inlined_call_operand.vmem [shape: bf16[32,128], index: 3, kind: input, shape index: {}]   ;;  %s464_s1 = inlined_call_operand.vmem [shape: bf16[32,32], index: 1, kind: input, shape index: {}]   ;;  %s465_s0 = inlined_call_operand.vmem [shape: bf16[32,32], index: 0, kind: input, shape index: {}]   ;;  %s466_s2 = inlined_call_operand.vmem [shape: bf16[4,32], index: 2, kind: input, shape index: {}]   ;;  %s467_s5 = inlined_call_operand.vmem [shape: bf16[32,128], index: 5, kind: output, shape index: {}]  }
   0x1   :  { %v415_v0 = vld [vmem:[%s462_s4 + $0x8] sm:$0xff]   ;;  %v423_v2 = vld [vmem:[%s462_s4] sm:$0xff]  }
   0x2   :  { %v365_v1 = vld [vmem:[%s463_s3 + $0x8] sm:$0xff]   ;;  %v367_v3 = vld [vmem:[%s463_s3] sm:$0xff]   ;;  %338 = vmatprep.subr.bf16.mxu0 %v415_v0  ;;  %v265_v49 = vunpack.c.l.bf16 %v415_v0  ;;  %v266_v50 = vunpack.c.h.bf16 %v415_v0  ;;  %v263_v51 = vunpack.c.l.bf16 %v423_v2  ;;  %v264_v52 = vunpack.c.h.bf16 %v423_v2 }
   0x3   :  { %346 = vmatprep.subr.bf16.mxu1 %v365_v1  ;;  %v368_v4 = vld [vmem:[%s464_s1] sm:$0xff]   ;;  %339 = vmatpush3.bf16.msra.mxu0 %v415_v0  ;;  %v370_v6 = vld [vmem:[%s464_s1 + $0x8] sm:$0xff]  }
   0x4   :  { %347 = vmatpush3.bf16.msra.mxu1 %v365_v1  ;;  %v369_v5 = vld [vmem:[%s465_s0] sm:$0xff]   ;;  %340 = vmatprep.subr.bf16.mxu0 %v423_v2  ;;  %v371_v7 = vld [vmem:[%s465_s0 + $0x8] sm:$0xff]  }
   0x5   :  { %348 = vmatprep.subr.bf16.mxu1 %v367_v3  ;;  %342 = vmatprep.mubr.msk.bf16.mxu0 %vm59_vm0, %v368_v4  ;;  %v198_v27 = vld [vmem:[%s466_s2] sm:$0x3] }
   0x6   :  { %350 = vmatprep.mubr.msk.bf16.mxu1 %vm59_vm0, %v369_v5 }
   0x7   :  { %341 = vmatpush3.bf16.msra.mxu0 %v423_v2 }
   0x8   :  { %349 = vmatpush3.bf16.msra.mxu1 %v367_v3  ;;  %354 = vmatprep.subr.bf16.mxu0 %v380_v8 }
   0xa   :  { %343 = vmatmul.mubr.msk.bf16.vlgmr.msra.gmra.mxu0 %vm59_vm0, %v370_v6 }
   0xb   :  { %351 = vmatmul.mubr.msk.bf16.vlgmr.msra.gmra.mxu1 %vm59_vm0, %v371_v7  ;;  %358 = vmatprep.mubr.msk.bf16.mxu0 %vm381_vm1, %v380_v8 }
  0xca   :  { %v344_v9 = vpop.f32.mrf.mxu0 }
  0xcb   :  { %v352_v10 = vpop.f32.mrf.mxu1 }
  0xcc   :  { %v100_v11 = vpop.f32.mrf.mxu0  ;;  %v186_v13 = vadd.f32 %v352_v10, %v344_v9 }
  0xcd   :  { %v177_v12 = vpop.f32.mrf.mxu1 }
  0xce   :  { %v345_v14 = vpop.f32.mrf.mxu0  ;;  %v194_v19 = vmax.f32 %v186_v13, 0.0  ;;  %v178_v20 = vadd.f32 %v177_v12, %v100_v11 }
  0xcf   :  { %v353_v15 = vpop.f32.mrf.mxu1 }
  0xd0   :  { %v189_v16 = vadd.f32 %v353_v15, %v345_v14  ;;  %v103_v17 = vpop.f32.mrf.mxu0  ;;  %v192_v25 = vmax.f32 %v178_v20, 0.0 }
  0xd1   :  { %v180_v18 = vpop.f32.mrf.mxu1 }
  0xd2   :  { %v195_v21 = vmax.f32 %v189_v16, 0.0  ;;  %v181_v22 = vadd.f32 %v180_v18, %v103_v17 }
  0xd4   :  { %v197_v23 = vpack.c.bf16 %v195_v21, %v194_v19  ;;  %v193_v24 = vmax.f32 %v181_v22, 0.0 }
  0xd6   :  { %355 = vmatpush3.bf16.msra.mxu0 %v197_v23  ;;  %v196_v26 = vpack.c.bf16 %v193_v24, %v192_v25 }
  0xd7   :  { %356 = vmatprep.subr.bf16.mxu0 %v380_v8 }
  0xda   :  { %357 = vmatpush3.bf16.msra.mxu0 %v196_v26 }
  0xdd   :  { %359 = vmatmul.mubr.msk.bf16.vlgmr.msra.gmra.mxu0 %vm59_vm0, %v198_v27 }
 0x19d   :  { %v236_v28 = vpop.f32.mrf.mxu0 }
 0x19e   :  { %v242_v29 = vmul.f32 %v236_v28, %v236_v28 }
 0x19f   :  { %v360_v30 = vpop.f32.mrf.mxu0 }
 0x1a0   :  { %v244_v31 = vsel %vm243_vm2, %v242_v29, 0.0 }
 0x1a1   :  { %v245_v32 = vrot.slane %v244_v31, 4  ;;  %v239_v33 = vpop.f32.mrf.mxu0 }
 0x1a3   :  { %v246_v34 = vadd.f32 %v245_v32, %v244_v31  ;;  %v361_v35 = vpop.f32.mrf.mxu0 }
 0x1a5   :  { %v247_v36 = vrot.slane %v246_v34, 2 }
 0x1a7   :  { %v248_v37 = vadd.f32 %v247_v36, %v246_v34 }
 0x1a9   :  { %v249_v38 = vrot.slane %v248_v37, 1 }
 0x1ab   :  { %v250_v39 = vadd.f32 %v249_v38, %v248_v37 }
 0x1ad   :  { %374 = vrsqrt.f32 %v250_v39  ;;  %vm253_vm3 = vcmp.eq.f32.partialorder %v250_v39, inf  ;;  %v256_v42 = vand.u32 2147483648, %v250_v39  ;;  %vm255_vm4 = vcmp.eq.f32.partialorder %v250_v39, 0.0 }
 0x1ba   :  { %v375_v40 = vpop.eup %374 }
 0x1bb   :  { %v252_v41 = vmul.f32 %v375_v40, %v250_v39 }
 0x1bd   :  { %v254_v43 = vsel %vm253_vm3, %v250_v39, %v252_v41 }
 0x1be   :  { %v257_v44 = vsel %vm255_vm4, %v256_v42, %v254_v43 }
 0x1bf   :  { %v258_v45 = vsub.f32 0.0, %v257_v44 }
 0x1c1   :  { %v259_v46 = vmul.f32 1.442695, %v258_v45 }
 0x1c3   :  { %376 = vpow2.f32 %v259_v46 }
 0x1d0   :  { %v377_v47 = vpop.eup %376 }
 0x1d1   :  { %v261_v48 = vadd.f32 1.0, %v377_v47 }
 0x1d3   :  { %378 = vrcp.f32 %v261_v48 }
 0x1e0   :  { %v379_v53 = vpop.eup %378 }
 0x1e1   :  { %v267_v54 = vmul.f32 %v379_v53, %v263_v51  ;;  %v268_v55 = vmul.f32 %v379_v53, %v264_v52  ;;  %v269_v56 = vmul.f32 %v379_v53, %v265_v49  ;;  %v270_v57 = vmul.f32 %v379_v53, %v266_v50 }
 0x1e3   :  { %v319_v58 = vpack.c.bf16 %v268_v55, %v267_v54  ;;  %v324_v59 = vpack.c.bf16 %v270_v57, %v269_v56 }
 0x1e5   :  { %320 = vst [vmem:[%s467_s5] sm:$0xff] %v319_v58   ;;  %326 = vst [vmem:[%s467_s5 + $0x8] sm:$0xff] %v324_v59  }

// kernel: qa_qcae_forward.9
= control target key start
LH: loop header
LB: loop body
LE: loop exit
PB: predicated region body
PF: predicated region fallthrough
CT: control target
= control target key end

     0   :  { %s1021_s15 = smov 0   ;;  %s1023_s16 = smov 0   ;;  %s1146_s0 = inlined_call_operand.vmem [shape: bf16[16,256], index: 0, kind: input, shape index: {}]   ;;  %s1147_s1 = inlined_call_operand.vmem [shape: f32[16,1], index: 1, kind: input, shape index: {}]   ;;  %s1148_s2 = inlined_call_operand.vmem [shape: bf16[32,384], index: 2, kind: input, shape index: {}]   ;;  %s1149_s3 = inlined_call_operand.vmem [shape: bf16[32,384], index: 3, kind: input, shape index: {}]   ;;  %s1150_s4 = inlined_call_operand.vmem [shape: f32[16,256], index: 4, kind: output, shape index: {}]  }
   0x1   :  { %s1025_s17 = smov 0  }
   0x2 LB: > { %s1034_s18 = sadd.s32 4294967295, %s985_s17   ;;  %s1036_s19 = sadd.s32 1, %s985_s17   ;;  %s985_s17 = sphi %s1025_s17, %s1154_s17   ;;  %s981_s16 = sphi %s1023_s16, %s1153_s16   ;;  %s977_s15 = sphi %s1021_s15, %s1152_s15  }
   0x3   : > { %s102_s20 = ssub.s32 %s985_s17, %s1036_s19  ;;  %s105_s21 = sadd.s32 1, %s981_s16 }
   0x4   : > { %p103_p0 = scmp.eq.s32.totalorder %s102_s20, 0  ;;  %p115_p1 = scmp.ne.s32.totalorder %s981_s16, %s977_s15 }
   0x5   : > { %p116_p2 = scmp.eq.s32.totalorder %s1034_s18, 1  ;;  %p799_p3 = scmp.ge.s32.totalorder %s985_s17, 1 }
   0x6   : > { %s1044_s22 = scalar_select %p103_p0, %s981_s16, %s105_s21  }
   0x7   : > { %p1046_p4 = por %p116_p2, %p115_p1  ;;  %p152_p5 = scmp.lt.s32.totalorder %s985_s17, 3 }
   0x9   : > { %p153_p6 = pnand %p799_p3, %p152_p5 }
   0xa   : > { %s801_s26 = sshll.u32 (!%p153_p6), %s1034_s18, 7  ;;  %s987_s27 = smov (!%p153_p6), 96  }
   0xb   : > { %156 = sbr.rel (%p153_p6) target bundleno = 402 (0x192), region = 36  ;;  %s174_s28 = sshra.s32 (!%p153_p6), %s801_s26, 7 }
   0xc   : > { %s802_s29 = sshll.u32 (!%p153_p6), %s174_s28, 2  ;;  %s990_s10 = smov (!%p153_p6), 127  }
   0xd   : > { %s177_s6 = scalar_lea.vmem (!%p153_p6), %s1148_s2, %s802_s29  ;;  %s185_s9 = scalar_lea.vmem (!%p153_p6), %s1149_s3, %s802_s29 }
   0xe   : > { %s991_s11 = smov (!%p153_p6), 64   ;;  %s992_s12 = smov (!%p153_p6), 119  }
   0xf   : > { %s993_s13 = smov (!%p153_p6), 32   ;;  %s994_s14 = smov (!%p153_p6), 118  }
  0x10   : > { %v949_v0 = vld [vmem:[%s1146_s0] ss:$8 sps:$4 sm:$0xff]   ;;  %v988_v1 = vmov 0.0   ;;  %vm989_vm0 = vmmov 0   ;;  %v952_v3 = vld [vmem:[%s177_s6 + $0x18] ss:$12 sps:$4 sm:$0xff]  }
  0x11   : > { %195 = vrot.lane.b32.xlu0 %v949_v0, %s987_s27  ;;  %850 = vmatprep.subr.bf16.mxu0 %v988_v1  ;;  %v950_v2 = vld [vmem:[%s177_s6 + $0x1c] ss:$12 sps:$4 sm:$0xff]   ;;  %v953_v4 = vld [vmem:[%s185_s9 + $0x18] ss:$12 sps:$4 sm:$0xff]   ;;  %v958_v6 = vld [vmem:[%s177_s6] ss:$12 sps:$4 sm:$0xff]  }
  0x12   : > { %858 = vmatprep.subr.bf16.mxu1 %v988_v1  ;;  %854 = vmatprep.mubr.msk.bf16.mxu0 %vm989_vm0, %v988_v1  ;;  %v955_v5 = vld [vmem:[%s185_s9 + $0x1c] ss:$12 sps:$4 sm:$0xff]   ;;  %v959_v7 = vld [vmem:[%s185_s9] ss:$12 sps:$4 sm:$0xff]   ;;  %v956_v8 = vld [vmem:[%s177_s6 + $0x4] ss:$12 sps:$4 sm:$0xff]  }
  0x13   : > { %862 = vmatprep.mubr.msk.bf16.mxu1 %vm989_vm0, %v988_v1  ;;  %324 = vrot.lane.b32.xlu1 %v950_v2, %s990_s10  ;;  %vm209_vm1 = vcmask 261120   ;;  %v961_v9 = vld [vmem:[%s185_s9 + $0x4] ss:$12 sps:$4 sm:$0xff]   ;;  %v995_v11 = vmov 0   ;;  %v691_v13 = vld [vmem:[%s1147_s1 + $0x8] sm:$0xff]  ;;  %vm326_vm2 = vcmask 1039360  }
  0x14   : > { %859 = vmatpush3.bf16.msra.mxu1 %v952_v3  ;;  %851 = vmatpush3.bf16.msra.mxu0 %v953_v4  ;;  %v1077_v10 = vld [vmem:[%s1146_s0 + $0x4] ss:$8 sps:$4 sm:$0xff]   ;;  %vm458_vm3 = vcmask 973824   ;;  %vm579_vm4 = vcmask 965632  }
  0x15   : > { %322 = vrot.lane.b32.xlu0 %v952_v3, %s990_s10  ;;  %860 = vmatprep.subr.bf16.mxu1 %v988_v1  ;;  %v690_v12 = vld [vmem:[%s1147_s1] sm:$0xff] }
  0x16   : > { %852 = vmatprep.subr.bf16.mxu0 %v988_v1  ;;  %947 = vset.pattern.permute.xlu0 %v995_v11 }
  0x17   : > { %389 = vrot.lane.b32.xlu1 %v953_v4, %s990_s10 }
  0x18   : > { %861 = vmatpush3.bf16.msra.mxu1 %v958_v6  ;;  %853 = vmatpush3.bf16.msra.mxu0 %v959_v7 }
  0x19   : > { %391 = vrot.lane.b32.xlu0 %v955_v5, %s990_s10  ;;  %874 = vmatprep.subr.bf16.mxu1 %v988_v1 }
  0x1a   : > { %866 = vmatprep.subr.bf16.mxu0 %v988_v1  ;;  %948 = vset.pattern.permute.xlu1 %v995_v11 }
  0x1b   : > { %318 = vrot.lane.b32.xlu1 %v958_v6, %s990_s10  ;;  %863 = vmatmul.mubr.msk.bf16.vlgmr.msra.gmra.mxu1 %vm209_vm1, %v949_v0 }
  0x1c   : > { %878 = vmatprep.mubr.msk.bf16.mxu1 %vm989_vm0, %v988_v1 }
  0x1d   : > { %320 = vrot.lane.b32.xlu0 %v956_v8, %s990_s10 }
  0x1f   : > { %385 = vrot.lane.b32.xlu1 %v959_v7, %s990_s10 }
  0x21   : > { %387 = vrot.lane.b32.xlu0 %v961_v9, %s990_s10 }
  0x23   : > { %310 = vrot.lane.b32.xlu1 %v949_v0, %s991_s11 }
  0x25   : > { %454 = vrot.lane.b32.xlu0 %v952_v3, %s992_s12 }
  0x27   : > { %456 = vrot.lane.b32.xlu1 %v950_v2, %s992_s12 }
  0x29   : > { %377 = vrot.lane.b32.xlu0 %v949_v0, %s993_s13 }
  0x2b   : > { %515 = vrot.lane.b32.xlu1 %v953_v4, %s992_s12 }
  0x2d   : > { %517 = vrot.lane.b32.xlu0 %v955_v5, %s992_s12 }
  0x2f   : > { %450 = vrot.lane.b32.xlu1 %v958_v6, %s992_s12 }
  0x31   : > { %452 = vrot.lane.b32.xlu0 %v956_v8, %s992_s12 }
  0x33   : > { %511 = vrot.lane.b32.xlu1 %v959_v7, %s992_s12 }
  0x35   : > { %513 = vrot.lane.b32.xlu0 %v961_v9, %s992_s12 }
  0x37   : > { %575 = vrot.lane.b32.xlu1 %v952_v3, %s994_s14 }
  0x39   : > { %577 = vrot.lane.b32.xlu0 %v950_v2, %s994_s14 }
  0x3b   : > { %509 = vrot.lane.b32.xlu1 %v1077_v10, %s987_s27  ;;  %s169_s27 = sand.u32 1, %s977_s15   ;;  %s823_s15 = sshll.u32 (%p1046_p4), %s1034_s18, 3 }
  0x3c   : > { %s800_s28 = sshll.u32 %s169_s27, 4  ;;  %s716_s6 = scalar_lea.vmem (%p1046_p4), %s1150_s4, %s823_s15 }
  0x3d   : > { %636 = vrot.lane.b32.xlu0 %v953_v4, %s994_s14  ;;  %s171_s29 = scalar_lea.vmem [#allocation2], %s800_s28 }
  0x3f   : > { %638 = vrot.lane.b32.xlu1 %v955_v5, %s994_s14 }
  0x41   : > { %571 = vrot.lane.b32.xlu0 %v958_v6, %s994_s14 }
  0x43   : > { %573 = vrot.lane.b32.xlu1 %v956_v8, %s994_s14 }
  0x45   : > { %632 = vrot.lane.b32.xlu0 %v959_v7, %s994_s14 }
  0x47   : > { %634 = vrot.lane.b32.xlu1 %v961_v9, %s994_s14 }
  0x49   : > { %569 = vrot.lane.b32.xlu0 %v1077_v10, %s991_s11 }
  0x4b   : > { %630 = vrot.lane.b32.xlu1 %v1077_v10, %s993_s13 }
  0x4d   : > { %694 = vperm.xlu0 %947, %v690_v12  }
  0x4f   : > { %699 = vperm.xlu1 %948, %v691_v13  }
  0x83   : > { %v196_v14 = vpop.permute.xlu0 %195 }
  0x84   : > { %855 = vmatmul.mubr.msk.bf16.vlgmr.msra.gmra.mxu0 %vm209_vm1, %v196_v14 }
  0x85   : > { %870 = vmatprep.mubr.msk.bf16.mxu0 %vm989_vm0, %v988_v1  ;;  %v325_v15 = vpop.permute.xlu1 %324 }
  0x87   : > { %v323_v16 = vpop.permute.xlu0 %322 }
  0x88   : > { %v328_v17 = vsel %vm326_vm2, %v323_v16, %v325_v15 }
  0x89   : > { %867 = vmatpush3.bf16.msra.mxu0 %v328_v17  ;;  %v390_v18 = vpop.permute.xlu1 %389 }
  0x8a   : > { %868 = vmatprep.subr.bf16.mxu0 %v988_v1 }
  0x8b   : > { %v392_v19 = vpop.permute.xlu0 %391 }
  0x8c   : > { %v394_v20 = vsel %vm326_vm2, %v390_v18, %v392_v19 }
  0x8d   : > { %875 = vmatpush3.bf16.msra.mxu1 %v394_v20  ;;  %v319_v21 = vpop.permute.xlu1 %318 }
  0x8e   : > { %876 = vmatprep.subr.bf16.mxu1 %v988_v1 }
  0x8f   : > { %v321_v22 = vpop.permute.xlu0 %320 }
  0x90   : > { %v327_v23 = vsel %vm326_vm2, %v319_v21, %v321_v22 }
  0x91   : > { %869 = vmatpush3.bf16.msra.mxu0 %v327_v23  ;;  %v386_v24 = vpop.permute.xlu1 %385 }
  0x92   : > { %882 = vmatprep.subr.bf16.mxu0 %v988_v1 }
  0x93   : > { %v388_v25 = vpop.permute.xlu0 %387 }
  0x94   : > { %v393_v26 = vsel %vm326_vm2, %v386_v24, %v388_v25 }
  0x95   : > { %877 = vmatpush3.bf16.msra.mxu1 %v393_v26  ;;  %v311_v27 = vpop.permute.xlu1 %310 }
  0x96   : > { %890 = vmatprep.subr.bf16.mxu1 %v988_v1  ;;  %871 = vmatmul.mubr.msk.bf16.vlgmr.msra.gmra.mxu0 %vm209_vm1, %v311_v27 }
  0x97   : > { %v455_v28 = vpop.permute.xlu0 %454  ;;  %886 = vmatprep.mubr.msk.bf16.mxu0 %vm989_vm0, %v988_v1 }
  0x99   : > { %v457_v29 = vpop.permute.xlu1 %456 }
  0x9a   : > { %v460_v31 = vsel %vm458_vm3, %v455_v28, %v457_v29 }
  0x9b   : > { %v378_v30 = vpop.permute.xlu0 %377  ;;  %883 = vmatpush3.bf16.msra.mxu0 %v460_v31 }
  0x9c   : > { %879 = vmatmul.mubr.msk.bf16.vlgmr.msra.gmra.mxu1 %vm209_vm1, %v378_v30  ;;  %884 = vmatprep.subr.bf16.mxu0 %v988_v1 }
  0x9d   : > { %894 = vmatprep.mubr.msk.bf16.mxu1 %vm989_vm0, %v988_v1  ;;  %v516_v32 = vpop.permute.xlu1 %515 }
  0x9f   : > { %v518_v33 = vpop.permute.xlu0 %517 }
  0xa0   : > { %v520_v34 = vsel %vm458_vm3, %v516_v32, %v518_v33 }
  0xa1   : > { %891 = vmatpush3.bf16.msra.mxu1 %v520_v34  ;;  %v451_v35 = vpop.permute.xlu1 %450 }
  0xa2   : > { %892 = vmatprep.subr.bf16.mxu1 %v988_v1 }
  0xa3   : > { %v453_v36 = vpop.permute.xlu0 %452 }
  0xa4   : > { %v459_v37 = vsel %vm458_vm3, %v451_v35, %v453_v36 }
  0xa5   : > { %885 = vmatpush3.bf16.msra.mxu0 %v459_v37  ;;  %v512_v38 = vpop.permute.xlu1 %511 }
  0xa6   : > { %898 = vmatprep.subr.bf16.mxu0 %v988_v1 }
  0xa7   : > { %v514_v39 = vpop.permute.xlu0 %513 }
  0xa8   : > { %v519_v40 = vsel %vm458_vm3, %v512_v38, %v514_v39  ;;  %887 = vmatmul.mubr.msk.bf16.vlgmr.msra.gmra.mxu0 %vm209_vm1, %v1077_v10 }
  0xa9   : > { %893 = vmatpush3.bf16.msra.mxu1 %v519_v40  ;;  %902 = vmatprep.mubr.msk.bf16.mxu0 %vm989_vm0, %v988_v1  ;;  %v576_v41 = vpop.permute.xlu1 %575 }
  0xaa   : > { %906 = vmatprep.subr.bf16.mxu1 %v988_v1 }
  0xab   : > { %v578_v42 = vpop.permute.xlu0 %577 }
  0xac   : > { %v581_v43 = vsel %vm579_vm4, %v576_v41, %v578_v42 }
  0xad   : > { %899 = vmatpush3.bf16.msra.mxu0 %v581_v43  ;;  %v510_v44 = vpop.permute.xlu1 %509 }
  0xae   : > { %900 = vmatprep.subr.bf16.mxu0 %v988_v1  ;;  %895 = vmatmul.mubr.msk.bf16.vlgmr.msra.gmra.mxu1 %vm209_vm1, %v510_v44 }
  0xaf   : > { %v637_v45 = vpop.permute.xlu0 %636  ;;  %910 = vmatprep.mubr.msk.bf16.mxu1 %vm989_vm0, %v988_v1 }
  0xb1   : > { %v639_v46 = vpop.permute.xlu1 %638 }
  0xb2   : > { %v641_v48 = vsel %vm579_vm4, %v637_v45, %v639_v46 }
  0xb3   : > { %v572_v47 = vpop.permute.xlu0 %571  ;;  %907 = vmatpush3.bf16.msra.mxu1 %v641_v48 }
  0xb4   : > { %908 = vmatprep.subr.bf16.mxu1 %v988_v1 }
  0xb5   : > { %v574_v49 = vpop.permute.xlu1 %573 }
  0xb6   : > { %v580_v51 = vsel %vm579_vm4, %v572_v47, %v574_v49 }
  0xb7   : > { %v633_v50 = vpop.permute.xlu0 %632  ;;  %901 = vmatpush3.bf16.msra.mxu0 %v580_v51 }
  0xb9   : > { %v635_v52 = vpop.permute.xlu1 %634 }
  0xba   : > { %v640_v54 = vsel %vm579_vm4, %v633_v50, %v635_v52 }
  0xbb   : > { %v570_v53 = vpop.permute.xlu0 %569  ;;  %909 = vmatpush3.bf16.msra.mxu1 %v640_v54 }
  0xbc   : > { %903 = vmatmul.mubr.msk.bf16.vlgmr.msra.gmra.mxu0 %vm209_vm1, %v570_v53 }
  0xbd   : > { %v631_v55 = vpop.permute.xlu1 %630 }
  0xbe   : > { %911 = vmatmul.mubr.msk.bf16.vlgmr.msra.gmra.mxu1 %vm209_vm1, %v631_v55 }
  0xc8   : > { %v695_v29 = vpop.permute.xlu0 %694 }
  0xca   : > { %v700_v38 = vpop.permute.xlu1 %699 }
  0xdb   : > { %v303_v56 = vpop.f32.mrf.mxu1 }
  0xdd   : > { %v864_v57 = vpop.f32.mrf.mxu1 }
  0xdf   : > { %v306_v58 = vpop.f32.mrf.mxu1 }
  0xe1   : > { %v865_v59 = vpop.f32.mrf.mxu1 }
 0x144   : > { %v247_v60 = vpop.f32.mrf.mxu0 }
 0x145   : > { %v304_v15 = vadd.f32 %v303_v56, %v247_v60 }
 0x146   : > { %v856_v61 = vpop.f32.mrf.mxu0 }
 0x148   : > { %v250_v62 = vpop.f32.mrf.mxu0 }
 0x149   : > { %v307_v18 = vadd.f32 %v306_v58, %v250_v62 }
 0x14a   : > { %v857_v63 = vpop.f32.mrf.mxu0 }
 0x156   : > { %v368_v0 = vpop.f32.mrf.mxu0 }
 0x157   : > { %v375_v17 = vadd.f32 %v368_v0, %v304_v15 }
 0x158   : > { %v872_v1 = vpop.f32.mrf.mxu0 }
 0x15a   : > { %v371_v2 = vpop.f32.mrf.mxu0 }
 0x15b   : > { %v376_v20 = vadd.f32 %v371_v2, %v307_v18 }
 0x15c   : > { %v434_v3 = vpop.f32.mrf.mxu1  ;;  %v873_v4 = vpop.f32.mrf.mxu0 }
 0x15d   : > { %v441_v19 = vadd.f32 %v434_v3, %v375_v17 }
 0x15e   : > { %v880_v5 = vpop.f32.mrf.mxu1 }
 0x160   : > { %v437_v6 = vpop.f32.mrf.mxu1 }
 0x161   : > { %v442_v22 = vadd.f32 %v437_v6, %v376_v20 }
 0x162   : > { %v881_v7 = vpop.f32.mrf.mxu1 }
 0x168   : > { %v500_v8 = vpop.f32.mrf.mxu0 }
 0x169   : > { %v507_v21 = vadd.f32 %v500_v8, %v441_v19 }
 0x16a   : > { %v888_v9 = vpop.f32.mrf.mxu0 }
 0x16c   : > { %v503_v10 = vpop.f32.mrf.mxu0 }
 0x16d   : > { %v508_v25 = vadd.f32 %v503_v10, %v442_v22 }
 0x16e   : > { %v889_v11 = vpop.f32.mrf.mxu0  ;;  %v560_v12 = vpop.f32.mrf.mxu1 }
 0x16f   : > { %v567_v23 = vadd.f32 %v560_v12, %v507_v21 }
 0x170   : > { %v896_v13 = vpop.f32.mrf.mxu1 }
 0x172   : > { %v563_v14 = vpop.f32.mrf.mxu1 }
 0x173   : > { %v568_v30 = vadd.f32 %v563_v14, %v508_v25 }
 0x174   : > { %v897_v16 = vpop.f32.mrf.mxu1 }
 0x17c   : > { %v621_v24 = vpop.f32.mrf.mxu0 }
 0x17d   : > { %v628_v26 = vadd.f32 %v621_v24, %v567_v23 }
 0x17e   : > { %v904_v27 = vpop.f32.mrf.mxu0  ;;  %v681_v28 = vpop.f32.mrf.mxu1 }
 0x17f   : > { %v688_v32 = vadd.f32 %v681_v28, %v628_v26 }
 0x180   : > { %v624_v31 = vpop.f32.mrf.mxu0  ;;  %v912_v33 = vpop.f32.mrf.mxu1 }
 0x181   : > { %v629_v34 = vadd.f32 %v624_v31, %v568_v30  ;;  %v702_v35 = vadd.f32 %v695_v29, %v688_v32 }
 0x182   : > { %v905_v36 = vpop.f32.mrf.mxu0  ;;  %v684_v37 = vpop.f32.mrf.mxu1 }
 0x183   : > { %v704_v39 = vmax.f32 %v702_v35, 0.0  ;;  %v689_v40 = vadd.f32 %v684_v37, %v629_v34 }
 0x184   : > { %v913_v41 = vpop.f32.mrf.mxu1 }
 0x185   : > { %706 = vst [vmem:[%s171_s29] sm:$0xff] %v704_v39  ;;  %v703_v42 = vadd.f32 %v700_v38, %v689_v40  ;;  %714 = sbr.rel (!%p1046_p4) target bundleno = 402 (0x192), region = 40 }
 0x187   : > { %v705_v43 = vmax.f32 %v703_v42, 0.0 }
 0x189   : > { %707 = vst [vmem:[%s171_s29 + $0x8] sm:$0xff] %v705_v43 }
 0x18c   : > { %v747_v44 = vld [vmem:[%s171_s29] sm:$0xff] }
 0x18d   : > { %748 = vst [vmem:[%s716_s6] sm:$0xff] %v747_v44 }
 0x190   : > { %v749_v45 = vld [vmem:[%s171_s29 + $0x8] sm:$0xff] }
 0x191   : > { %750 = vst [vmem:[%s716_s6 + $0x10] sm:$0xff] %v749_v45 }
 0x192 PF: > { %p11_p7 = scmp.ge.s32.totalorder %s1036_s19, 4   ;;  %s1152_s15 = smov %s981_s16 }
 0x193   : > { %s1153_s16 = smov %s1044_s22  ;;  %s1154_s17 = smov %s1036_s19 }
 0x194   :  { %13 = sbr.rel (!%p11_p7) target bundleno = 2 (0x2), region = 103 }

</bundles_post_ra>
